<compile_context>
chip_gen: v6e
topology: v6e:2x2x1
jax: 0.10.0
libtpu: 0.0.40
codegen_flags: <defaults>
</compile_context>

<pallas_src>
import functools
import inspect
import math

import jax
import jax.numpy as jnp
from jax.experimental import pallas as pl
from jax.experimental.pallas import tpu as pltpu


def _layernorm(x, g, b, eps=1e-5):
    mu = jnp.mean(x, axis=-1, keepdims=True)
    xc = x - mu
    var = jnp.mean(xc * xc, axis=-1, keepdims=True)
    return xc * jax.lax.rsqrt(var + eps) * g + b


def lcca_kernel(q_ref, k_ref, v_ref, geo_ref, ps_ref, pc_ref,
                wq_ref, bq_ref, wk_ref, bk_ref, wv_ref, bv_ref,
                wo_ref, bo_ref,
                g_mh_ref, b_mh_ref, g_ln_ref, b_ln_ref,
                w1_ref, b1_ref, w2_ref, b2_ref, g_ff_ref, b_ff_ref,
                out_ref, o_all_ref, *, h, d_k, d_v):
    bt, nq, d_model = q_ref.shape
    nk = k_ref.shape[1]
    rq = bt * nq                    # query rows processed this grid step
    rk = bt * nk                    # key/value rows processed this grid step
    mm_dtype = wq_ref.dtype         # matmul-input dtype (bf16 or f32); acc is f32

    # ---- flatten the Bt batch elements into the matmul row dimension -------
    # TODO(synk): pad nq/nk to a sublane multiple at the wrapper (or keep the
    # 3-D layout through the projections) when they are not multiples of 8.
    queries = q_ref[...].reshape(rq, d_model)               # original queries
    q_in = queries + ps_ref[...].reshape(rq, d_model)       # queries + pos_source
    k_in = k_ref[...].reshape(rk, d_model) + pc_ref[...].reshape(rk, d_model)
    v_in = v_ref[...].reshape(rk, d_model)

    # ---- Q/K/V projections on full (Bt*n, d_model) slabs (MXU, bf16 in/f32 acc)
    Q = jnp.dot(q_in.astype(mm_dtype), wq_ref[...],
                preferred_element_type=jnp.float32) + bq_ref[...]
    K = jnp.dot(k_in.astype(mm_dtype), wk_ref[...],
                preferred_element_type=jnp.float32) + bk_ref[...]
    V = jnp.dot(v_in.astype(mm_dtype), wv_ref[...],
                preferred_element_type=jnp.float32) + bv_ref[...]
    # cast ONCE for the attention matmuls (not per head-slice inside the loop)
    Qb = Q.astype(mm_dtype).reshape(bt, nq, h * d_k)
    Kb = K.astype(mm_dtype).reshape(bt, nk, h * d_k)
    Vb = V.astype(mm_dtype).reshape(bt, nk, h * d_v)

    # log(clip(geo, 1e-6)) hoisted out of the head loop: one EUP pass.
    # TODO(synk): fold h into the lane axis of geo at the wrapper when nk is
    # small (lane underfill of the (nq, nk) tiles).
    log_geo = jnp.log(jnp.maximum(geo_ref[...], 1e-6))       # (Bt, h, nq, nk)

    scale = 1.0 / math.sqrt(d_k)
    # Per-head attention; each head's output is staged into its static slice of
    # the VMEM scratch so W_o is applied once with full contraction K = h*d_v.
    # TODO(synk): for large h, switch to a head-major (bt*h)-batched dot_general
    # (one score matmul / one softmax / one p@V) instead of this static unroll.
    for hh in range(h):
        q_h = Qb[:, :, hh * d_k:(hh + 1) * d_k]               # (Bt, nq, d_k)
        k_h = Kb[:, :, hh * d_k:(hh + 1) * d_k]               # (Bt, nk, d_k)
        v_h = Vb[:, :, hh * d_v:(hh + 1) * d_v]               # (Bt, nk, d_v)
        # contract the last dims directly (no explicit k_h.T)
        att = jnp.einsum('bqd,bkd->bqk', q_h, k_h,
                         preferred_element_type=jnp.float32) * scale
        w_mn = log_geo[:, hh] + att                           # (Bt, nq, nk)
        m = jnp.max(w_mn, axis=-1, keepdims=True)
        p = jnp.exp(w_mn - m)
        p = p * pl.reciprocal(jnp.sum(p, axis=-1, keepdims=True), approx=True)
        o_h = jnp.einsum('bqk,bkd->bqd', p.astype(mm_dtype), v_h,
                         preferred_element_type=jnp.float32)  # (Bt, nq, d_v)
        o_all_ref[:, hh * d_v:(hh + 1) * d_v] = (
            o_h.reshape(rq, d_v).astype(mm_dtype))

    # ONE output projection with full K = h*d_v (fills the MXU contraction).
    mh = jnp.dot(o_all_ref[...], wo_ref[...],
                 preferred_element_type=jnp.float32) + bo_ref[...]

    # MultiHeadBoxAttention: LN(q_in + attention_out)
    x = _layernorm(q_in + mh, g_mh_ref[...], b_mh_ref[...])
    # LCCA.lnorm: LN(original_queries + x)
    y = _layernorm(queries + x, g_ln_ref[...], b_ln_ref[...])
    # PositionWiseFeedForward: LN(y + fc2(relu(fc1(y))))
    hdn = jnp.maximum(
        jnp.dot(y.astype(mm_dtype), w1_ref[...],
                preferred_element_type=jnp.float32) + b1_ref[...], 0.0)
    ff = jnp.dot(hdn.astype(mm_dtype), w2_ref[...],
                 preferred_element_type=jnp.float32) + b2_ref[...]
    z = _layernorm(y + ff, g_ff_ref[...], b_ff_ref[...])
    out_ref[...] = z.reshape(bt, nq, d_model).astype(out_ref.dtype)


_PARAM_ORDER = ('wq', 'bq', 'wk', 'bk', 'wv', 'bv', 'wo', 'bo',
                'g_mh', 'b_mh', 'g_ln', 'b_ln',
                'w1', 'b1', 'w2', 'b2', 'g_ff', 'b_ff')
_WEIGHT_NAMES = ('wq', 'wk', 'wv', 'wo', 'w1', 'w2')


def _rup(x, m):
    return ((x + m - 1) // m) * m


def _padded_elems(shape):
    """Element count after padding the last two dims to the (8, 128) tile."""
    s = list(shape)
    if len(s) >= 2:
        s[-2] = _rup(s[-2], 8)
    if len(s) >= 1:
        s[-1] = _rup(s[-1], 128)
    return math.prod(s) if s else 1


def _tpu_generation():
    """Return (physical_vmem_bytes, is_small_vmem_two_tc_part)."""
    vmem = 128 << 20
    try:
        vmem = int(pltpu.get_tpu_info().vmem_capacity_bytes)
    except Exception:
        pass
    kind = ""
    try:
        kind = jax.devices()[0].device_kind.lower()
    except Exception:
        pass
    is_v7x = ("v7" in kind) or ("7x" in kind) or (vmem <= (96 << 20))
    return vmem, is_v7x


def _buffered_param_spec_supported():
    """Explicit detection of BlockSpec(pipeline_mode=pl.Buffered(...)) support."""
    if not hasattr(pl, "Buffered"):
        return False
    try:
        return "pipeline_mode" in inspect.signature(pl.BlockSpec).parameters
    except (TypeError, ValueError):
        return False


def _pick_block_b(B, nq, row_cap, need_even_steps, fits):
    """Largest divisor Bt of B with Bt*nq <= row_cap that fits VMEM.

    On 2-TC parts (v7x) prefer an EVEN number of grid steps so neither
    TensorCore idles; on 1-TC parts Bt=B (a single step) is fine.
    """
    row_cap = max(row_cap, nq)               # Bt=1 must always be admissible
    divisors = sorted((d for d in range(1, B + 1) if B % d == 0), reverse=True)
    admissible = [d for d in divisors if d * nq <= row_cap and fits(d)]
    if not admissible:
        return 1
    if need_even_steps:
        for d in admissible:
            if (B // d) % 2 == 0:
                return d
    return admissible[0]


def lcca_pallas(queries, keys, values, geo, pos_source, pos_cross, P, *,
                h, d_k, d_v, block_b=None, param_dtype=jnp.bfloat16,
                out_dtype=None, single_buffer_params=True):
    B, nq, d_model = queries.shape
    nk = keys.shape[1]
    d_ff = P['w1'].shape[1]
    out_dtype = queries.dtype if out_dtype is None else out_dtype
    mm_itemsize = jnp.dtype(param_dtype).itemsize

    # bf16 weights (default) halve DMA bytes / resident VMEM and give
    # single-pass MXU inputs on every generation; biases / LN params and all
    # LayerNorm / softmax math stay f32.
    params = [P[n].astype(param_dtype) if n in _WEIGHT_NAMES else P[n]
              for n in _PARAM_ORDER]
    seq_args = [queries, keys, values, geo, pos_source, pos_cross]

    vmem_phys, is_v7x = _tpu_generation()
    if is_v7x:
        # 64 MiB part, 2 TensorCores: conservative cap, even grid-step count.
        vmem_cap = min(vmem_phys - (16 << 20), 48 << 20)
        row_cap, need_even_steps = 256, True
    else:
        # 128 MiB parts (v5e / v6e), 1 TC: big blocks, as few grid steps as fit.
        vmem_cap = min(vmem_phys - (24 << 20), 104 << 20)
        row_cap, need_even_steps = 512, False
    vmem_cap = max(vmem_cap, 32 << 20)

    sbuf = single_buffer_params and _buffered_param_spec_supported()
    param_bytes = sum(_padded_elems(p.shape) * p.dtype.itemsize for p in params)
    param_bytes *= (1 if sbuf else 2)

    def est_vmem(bt):
        rq, rk = bt * nq, bt * nk
        hdk, hdv = h * d_k, h * d_v
        f32 = 4
        # double-buffered activation blocks (inputs + output)
        blocks = (2 * _padded_elems((bt, nq, d_model))        # q, ps
                  + 3 * _padded_elems((bt, nk, d_model))      # k, pc, v
                  + _padded_elems((bt, h, nq, nk))            # geo
                  + _padded_elems((bt, nq, d_model)))         # out
        blocks *= 2 * f32
        # major in-body intermediates (f32 accumulations + mm-dtype copies)
        inter = ((f32 + mm_itemsize) * (_padded_elems((rq, hdk))
                                        + _padded_elems((rk, hdk))
                                        + _padded_elems((rk, hdv)))      # Q,K,V
                 + f32 * _padded_elems((bt, h, nq, nk))                  # log_geo
                 + 3 * f32 * _padded_elems((bt, nq, nk))                 # att/w_mn/p
                 + mm_itemsize * _padded_elems((rq, hdv))                # o_all scratch
                 + 6 * f32 * _padded_elems((rq, d_model))                # q_in,mh,x,y,ff,z
                 + 2 * f32 * _padded_elems((rk, d_model))                # k_in,v_in
                 + (f32 + mm_itemsize) * _padded_elems((rq, d_ff)))      # hdn
        return blocks + param_bytes + int(1.25 * inter)

    if block_b is None:
        bt = _pick_block_b(B, nq, row_cap, need_even_steps,
                           lambda d: est_vmem(d) <= vmem_cap)
    else:
        bt = block_b
    assert B % bt == 0, f"block_b={bt} must divide batch={B}"
    grid = (B // bt,)

    vmem_limit = int(min(vmem_cap, max(32 << 20, 2 * est_vmem(bt))))

    kernel = functools.partial(lcca_kernel, h=h, d_k=d_k, d_v=d_v)

    def seq_spec(a):
        nd = a.ndim
        return pl.BlockSpec((bt,) + a.shape[1:],
                            lambda g, nd=nd: (g,) + (0,) * (nd - 1))

    def run(use_single_buffer):
        def param_spec(a):
            nd = a.ndim
            kwargs = ({'pipeline_mode': pl.Buffered(1)}
                      if use_single_buffer else {})
            # constant index_map across the grid -> a second buffer is waste
            return pl.BlockSpec(a.shape, lambda g, nd=nd: (0,) * nd, **kwargs)

        return pl.pallas_call(
            kernel,
            out_shape=jax.ShapeDtypeStruct((B, nq, d_model), out_dtype),
            grid=grid,
            in_specs=([seq_spec(a) for a in seq_args]
                      + [param_spec(p) for p in params]),
            out_specs=pl.BlockSpec((bt, nq, d_model), lambda g: (g, 0, 0)),
            scratch_shapes=[pltpu.VMEM((bt * nq, h * d_v), param_dtype)],
            compiler_params=pltpu.CompilerParams(
                dimension_semantics=("parallel",),
                vmem_limit_bytes=vmem_limit),
        )(*(seq_args + params))

    if sbuf:
        try:
            return run(True)
        except Exception as e:
            # Narrow fallback: only swallow Buffered(1)/pipeline_mode-specific
            # failures; genuine errors (VMEM OOM, lowering bugs) propagate.
            msg = f"{type(e).__name__}: {e}"
            if not any(t in msg for t in ("Buffered", "pipeline_mode",
                                          "buffer_count", "buffer count",
                                          "multiple buffering")):
                raise
        return run(False)
    return run(False)


def lcca_ref(queries, keys, values, geo, ps, pc, P, *, h, d_k, d_v):
    """Pure-JAX reference (eval mode, dropout = identity)."""
    def ln(x, g, b, eps=1e-5):
        mu = x.mean(-1, keepdims=True)
        var = ((x - mu) ** 2).mean(-1, keepdims=True)
        return (x - mu) / jnp.sqrt(var + eps) * g + b

    q = queries + ps
    k = keys + pc
    B, nq, dm = q.shape
    nk = k.shape[1]
    Q = (q @ P['wq'] + P['bq']).reshape(B, nq, h, d_k).transpose(0, 2, 1, 3)
    K = (k @ P['wk'] + P['bk']).reshape(B, nk, h, d_k).transpose(0, 2, 1, 3)
    V = (values @ P['wv'] + P['bv']).reshape(B, nk, h, d_v).transpose(0, 2, 1, 3)
    att = jnp.einsum('bhqd,bhkd->bhqk', Q, K) / math.sqrt(d_k)
    w_mn = jnp.log(jnp.clip(geo, 1e-6, None)) + att
    p = jax.nn.softmax(w_mn, axis=-1)
    o = jnp.einsum('bhqk,bhkd->bhqd', p, V).transpose(0, 2, 1, 3).reshape(B, nq, h * d_v)
    o = o @ P['wo'] + P['bo']
    x = ln(q + o, P['g_mh'], P['b_mh'])
    y = ln(queries + x, P['g_ln'], P['b_ln'])
    ff = jnp.maximum(y @ P['w1'] + P['b1'], 0.0) @ P['w2'] + P['b2']
    return ln(y + ff, P['g_ff'], P['b_ff'])


if __name__ == "__main__":
    # Small, forward-consistent shapes (B=8 so Bt-batching and the even-step
    # constraint on 2-TC parts are both exercised).
    B, nq, nk = 8, 8, 8
    d_model, d_k, d_v, h, d_ff = 32, 8, 8, 4, 64

    key = jax.random.PRNGKey(0)
    ks = jax.random.split(key, 16)

    def xavier(k, shape):
        fan_in, fan_out = shape
        bound = math.sqrt(6.0 / (fan_in + fan_out))
        return jax.random.uniform(k, shape, jnp.float32, -bound, bound)

    # Parameters (weights stored as (in, out); biases / LN params as (1, dim))
    P = {
        'wq': xavier(ks[0], (d_model, h * d_k)), 'bq': jnp.zeros((1, h * d_k), jnp.float32),
        'wk': xavier(ks[1], (d_model, h * d_k)), 'bk': jnp.zeros((1, h * d_k), jnp.float32),
        'wv': xavier(ks[2], (d_model, h * d_v)), 'bv': jnp.zeros((1, h * d_v), jnp.float32),
        'wo': xavier(ks[3], (h * d_v, d_model)), 'bo': jnp.zeros((1, d_model), jnp.float32),
        'g_mh': jnp.ones((1, d_model), jnp.float32), 'b_mh': jnp.zeros((1, d_model), jnp.float32),
        'g_ln': jnp.ones((1, d_model), jnp.float32), 'b_ln': jnp.zeros((1, d_model), jnp.float32),
        'w1': 0.05 * jax.random.normal(ks[4], (d_model, d_ff), jnp.float32),
        'b1': 0.01 * jax.random.normal(ks[5], (1, d_ff), jnp.float32),
        'w2': 0.05 * jax.random.normal(ks[6], (d_ff, d_model), jnp.float32),
        'b2': 0.01 * jax.random.normal(ks[7], (1, d_model), jnp.float32),
        'g_ff': jnp.ones((1, d_model), jnp.float32), 'b_ff': jnp.zeros((1, d_model), jnp.float32),
    }

    queries = jax.random.normal(ks[8], (B, nq, d_model), jnp.float32)
    keys_ = jax.random.normal(ks[9], (B, nk, d_model), jnp.float32)
    values = jax.random.normal(ks[10], (B, nk, d_model), jnp.float32)
    pos_source = jax.random.normal(ks[11], (B, nq, d_model), jnp.float32)
    pos_cross = jax.random.normal(ks[12], (B, nk, d_model), jnp.float32)
    # relative_geometry_weights (positive, as produced by the box-relation embedding)
    geo = jax.random.uniform(ks[13], (B, h, nq, nk), jnp.float32, 0.0, 2.0)

    ref = lcca_ref(queries, keys_, values, geo, pos_source, pos_cross, P,
                   h=h, d_k=d_k, d_v=d_v)

    # 1) strict check: f32 weights / matmul inputs (only the approx softmax
    #    reciprocal deviates from exact math).
    out_f32 = lcca_pallas(queries, keys_, values, geo, pos_source, pos_cross, P,
                          h=h, d_k=d_k, d_v=d_v, param_dtype=jnp.float32)
    out_f32 = jax.block_until_ready(out_f32)
    assert out_f32.shape == (B, nq, d_model)
    assert jnp.allclose(out_f32, ref, rtol=2e-3, atol=2e-3), \
        f"f32 path max abs diff {jnp.max(jnp.abs(out_f32 - ref))}"

    # 2) default (performance) path: bf16 weights / matmul inputs, f32
    #    accumulation and f32 LayerNorm / softmax math — looser tolerance.
    out_bf16 = lcca_pallas(queries, keys_, values, geo, pos_source, pos_cross, P,
                           h=h, d_k=d_k, d_v=d_v)
    out_bf16 = jax.block_until_ready(out_bf16)
    assert out_bf16.shape == (B, nq, d_model)
    assert jnp.allclose(out_bf16, ref, rtol=6e-2, atol=6e-2), \
        f"bf16 path max abs diff {jnp.max(jnp.abs(out_bf16 - ref))}"

    print("KERNEL_OK")
</pallas_src>

<mosaic_0001>
module attributes {stable_mosaic.version = 11 : i64} {
  func.func @lcca_kernel(%arg0: i32, %arg1: memref<8x8x32xf32, #tpu.memory_space<vmem>>, %arg2: memref<8x8x32xf32, #tpu.memory_space<vmem>>, %arg3: memref<8x8x32xf32, #tpu.memory_space<vmem>>, %arg4: memref<8x4x8x8xf32, #tpu.memory_space<vmem>>, %arg5: memref<8x8x32xf32, #tpu.memory_space<vmem>>, %arg6: memref<8x8x32xf32, #tpu.memory_space<vmem>>, %arg7: memref<32x32xf32, #tpu.memory_space<vmem>>, %arg8: memref<1x32xf32, #tpu.memory_space<vmem>>, %arg9: memref<32x32xf32, #tpu.memory_space<vmem>>, %arg10: memref<1x32xf32, #tpu.memory_space<vmem>>, %arg11: memref<32x32xf32, #tpu.memory_space<vmem>>, %arg12: memref<1x32xf32, #tpu.memory_space<vmem>>, %arg13: memref<32x32xf32, #tpu.memory_space<vmem>>, %arg14: memref<1x32xf32, #tpu.memory_space<vmem>>, %arg15: memref<1x32xf32, #tpu.memory_space<vmem>>, %arg16: memref<1x32xf32, #tpu.memory_space<vmem>>, %arg17: memref<1x32xf32, #tpu.memory_space<vmem>>, %arg18: memref<1x32xf32, #tpu.memory_space<vmem>>, %arg19: memref<32x64xf32, #tpu.memory_space<vmem>>, %arg20: memref<1x64xf32, #tpu.memory_space<vmem>>, %arg21: memref<64x32xf32, #tpu.memory_space<vmem>>, %arg22: memref<1x32xf32, #tpu.memory_space<vmem>>, %arg23: memref<1x32xf32, #tpu.memory_space<vmem>>, %arg24: memref<1x32xf32, #tpu.memory_space<vmem>>, %arg25: memref<8x8x32xf32, #tpu.memory_space<vmem>>, %arg26: memref<64x32xf32, #tpu.memory_space<vmem>>) attributes {dimension_semantics = [#tpu.dimension_semantics<parallel>], iteration_bounds = array<i64: 1>, scalar_prefetch = 0 : i64, scratch_operands = 1 : i64, tpu.core_type = #tpu.core_type<tc>, window_params = [{transform_indices = @transform_0, window_bounds = array<i64: 8, 8, 32>}, {transform_indices = @transform_1, window_bounds = array<i64: 8, 8, 32>}, {transform_indices = @transform_2, window_bounds = array<i64: 8, 8, 32>}, {transform_indices = @transform_3, window_bounds = array<i64: 8, 4, 8, 8>}, {transform_indices = @transform_4, window_bounds = array<i64: 8, 8, 32>}, {transform_indices = @transform_5, window_bounds = array<i64: 8, 8, 32>}, {pipeline_mode = #tpu.pipeline_mode<synchronous>, transform_indices = @transform_6, window_bounds = array<i64: 32, 32>}, {pipeline_mode = #tpu.pipeline_mode<synchronous>, transform_indices = @transform_7, window_bounds = array<i64: 1, 32>}, {pipeline_mode = #tpu.pipeline_mode<synchronous>, transform_indices = @transform_8, window_bounds = array<i64: 32, 32>}, {pipeline_mode = #tpu.pipeline_mode<synchronous>, transform_indices = @transform_9, window_bounds = array<i64: 1, 32>}, {pipeline_mode = #tpu.pipeline_mode<synchronous>, transform_indices = @transform_10, window_bounds = array<i64: 32, 32>}, {pipeline_mode = #tpu.pipeline_mode<synchronous>, transform_indices = @transform_11, window_bounds = array<i64: 1, 32>}, {pipeline_mode = #tpu.pipeline_mode<synchronous>, transform_indices = @transform_12, window_bounds = array<i64: 32, 32>}, {pipeline_mode = #tpu.pipeline_mode<synchronous>, transform_indices = @transform_13, window_bounds = array<i64: 1, 32>}, {pipeline_mode = #tpu.pipeline_mode<synchronous>, transform_indices = @transform_14, window_bounds = array<i64: 1, 32>}, {pipeline_mode = #tpu.pipeline_mode<synchronous>, transform_indices = @transform_15, window_bounds = array<i64: 1, 32>}, {pipeline_mode = #tpu.pipeline_mode<synchronous>, transform_indices = @transform_16, window_bounds = array<i64: 1, 32>}, {pipeline_mode = #tpu.pipeline_mode<synchronous>, transform_indices = @transform_17, window_bounds = array<i64: 1, 32>}, {pipeline_mode = #tpu.pipeline_mode<synchronous>, transform_indices = @transform_18, window_bounds = array<i64: 32, 64>}, {pipeline_mode = #tpu.pipeline_mode<synchronous>, transform_indices = @transform_19, window_bounds = array<i64: 1, 64>}, {pipeline_mode = #tpu.pipeline_mode<synchronous>, transform_indices = @transform_20, window_bounds = array<i64: 64, 32>}, {pipeline_mode = #tpu.pipeline_mode<synchronous>, transform_indices = @transform_21, window_bounds = array<i64: 1, 32>}, {pipeline_mode = #tpu.pipeline_mode<synchronous>, transform_indices = @transform_22, window_bounds = array<i64: 1, 32>}, {pipeline_mode = #tpu.pipeline_mode<synchronous>, transform_indices = @transform_23, window_bounds = array<i64: 1, 32>}, {transform_indices = @transform_24, window_bounds = array<i64: 8, 8, 32>}]} {
    %c0 = arith.constant 0 : index
    %c0_0 = arith.constant 0 : index
    %c0_1 = arith.constant 0 : index
    %0 = vector.load %arg1[%c0, %c0_0, %c0_1] : memref<8x8x32xf32, #tpu.memory_space<vmem>>, vector<8x8x32xf32>
    %1 = vector.shape_cast %0 : vector<8x8x32xf32> to vector<64x32xf32>
    %c0_2 = arith.constant 0 : index
    %c0_3 = arith.constant 0 : index
    %c0_4 = arith.constant 0 : index
    %2 = vector.load %arg5[%c0_2, %c0_3, %c0_4] : memref<8x8x32xf32, #tpu.memory_space<vmem>>, vector<8x8x32xf32>
    %3 = vector.shape_cast %2 : vector<8x8x32xf32> to vector<64x32xf32>
    %4 = arith.addf %1, %3 : vector<64x32xf32>
    %c0_5 = arith.constant 0 : index
    %c0_6 = arith.constant 0 : index
    %c0_7 = arith.constant 0 : index
    %5 = vector.load %arg2[%c0_5, %c0_6, %c0_7] : memref<8x8x32xf32, #tpu.memory_space<vmem>>, vector<8x8x32xf32>
    %6 = vector.shape_cast %5 : vector<8x8x32xf32> to vector<64x32xf32>
    %c0_8 = arith.constant 0 : index
    %c0_9 = arith.constant 0 : index
    %c0_10 = arith.constant 0 : index
    %7 = vector.load %arg6[%c0_8, %c0_9, %c0_10] : memref<8x8x32xf32, #tpu.memory_space<vmem>>, vector<8x8x32xf32>
    %8 = vector.shape_cast %7 : vector<8x8x32xf32> to vector<64x32xf32>
    %9 = arith.addf %6, %8 : vector<64x32xf32>
    %c0_11 = arith.constant 0 : index
    %c0_12 = arith.constant 0 : index
    %c0_13 = arith.constant 0 : index
    %10 = vector.load %arg3[%c0_11, %c0_12, %c0_13] : memref<8x8x32xf32, #tpu.memory_space<vmem>>, vector<8x8x32xf32>
    %11 = vector.shape_cast %10 : vector<8x8x32xf32> to vector<64x32xf32>
    %c0_14 = arith.constant 0 : index
    %c0_15 = arith.constant 0 : index
    %12 = vector.load %arg7[%c0_14, %c0_15] : memref<32x32xf32, #tpu.memory_space<vmem>>, vector<32x32xf32>
    %cst = arith.constant dense<0.000000e+00> : vector<64x32xf32>
    %13 = tpu.matmul %4, %12, %cst {dimension_numbers = #tpu.dot_dimension_numbers<[1], [0], [0], [1], [0, 0, 1, 1], [], []>} : vector<64x32xf32>, vector<32x32xf32>, vector<64x32xf32> -> vector<64x32xf32>
    %c0_16 = arith.constant 0 : index
    %c0_17 = arith.constant 0 : index
    %14 = vector.load %arg8[%c0_16, %c0_17] : memref<1x32xf32, #tpu.memory_space<vmem>>, vector<1x32xf32>
    %15 = vector.broadcast %14 : vector<1x32xf32> to vector<64x32xf32>
    %16 = arith.addf %13, %15 : vector<64x32xf32>
    %c0_18 = arith.constant 0 : index
    %c0_19 = arith.constant 0 : index
    %17 = vector.load %arg9[%c0_18, %c0_19] : memref<32x32xf32, #tpu.memory_space<vmem>>, vector<32x32xf32>
    %cst_20 = arith.constant dense<0.000000e+00> : vector<64x32xf32>
    %18 = tpu.matmul %9, %17, %cst_20 {dimension_numbers = #tpu.dot_dimension_numbers<[1], [0], [0], [1], [0, 0, 1, 1], [], []>} : vector<64x32xf32>, vector<32x32xf32>, vector<64x32xf32> -> vector<64x32xf32>
    %c0_21 = arith.constant 0 : index
    %c0_22 = arith.constant 0 : index
    %19 = vector.load %arg10[%c0_21, %c0_22] : memref<1x32xf32, #tpu.memory_space<vmem>>, vector<1x32xf32>
    %20 = vector.broadcast %19 : vector<1x32xf32> to vector<64x32xf32>
    %21 = arith.addf %18, %20 : vector<64x32xf32>
    %c0_23 = arith.constant 0 : index
    %c0_24 = arith.constant 0 : index
    %22 = vector.load %arg11[%c0_23, %c0_24] : memref<32x32xf32, #tpu.memory_space<vmem>>, vector<32x32xf32>
    %cst_25 = arith.constant dense<0.000000e+00> : vector<64x32xf32>
    %23 = tpu.matmul %11, %22, %cst_25 {dimension_numbers = #tpu.dot_dimension_numbers<[1], [0], [0], [1], [0, 0, 1, 1], [], []>} : vector<64x32xf32>, vector<32x32xf32>, vector<64x32xf32> -> vector<64x32xf32>
    %c0_26 = arith.constant 0 : index
    %c0_27 = arith.constant 0 : index
    %24 = vector.load %arg12[%c0_26, %c0_27] : memref<1x32xf32, #tpu.memory_space<vmem>>, vector<1x32xf32>
    %25 = vector.broadcast %24 : vector<1x32xf32> to vector<64x32xf32>
    %26 = arith.addf %23, %25 : vector<64x32xf32>
    %27 = vector.shape_cast %16 : vector<64x32xf32> to vector<8x8x32xf32>
    %28 = vector.shape_cast %21 : vector<64x32xf32> to vector<8x8x32xf32>
    %29 = vector.shape_cast %26 : vector<64x32xf32> to vector<8x8x32xf32>
    %c0_28 = arith.constant 0 : index
    %c0_29 = arith.constant 0 : index
    %c0_30 = arith.constant 0 : index
    %c0_31 = arith.constant 0 : index
    %30 = vector.load %arg4[%c0_28, %c0_29, %c0_30, %c0_31] : memref<8x4x8x8xf32, #tpu.memory_space<vmem>>, vector<8x4x8x8xf32>
    %cst_32 = arith.constant 9.99999997E-7 : f32
    %31 = vector.broadcast %cst_32 : f32 to vector<8x4x8x8xf32>
    %32 = arith.maximumf %30, %31 : vector<8x4x8x8xf32>
    %33 = math.log %32 : vector<8x4x8x8xf32>
    %34 = vector.extract_strided_slice %27 {offsets = [0, 0, 0], sizes = [8, 8, 8], strides = [1, 1, 1]} : vector<8x8x32xf32> to vector<8x8x8xf32>
    %35 = vector.extract_strided_slice %28 {offsets = [0, 0, 0], sizes = [8, 8, 8], strides = [1, 1, 1]} : vector<8x8x32xf32> to vector<8x8x8xf32>
    %36 = vector.extract_strided_slice %29 {offsets = [0, 0, 0], sizes = [8, 8, 8], strides = [1, 1, 1]} : vector<8x8x32xf32> to vector<8x8x8xf32>
    "tpu.trace_start"() <{level = 10 : i32, message = "bqd,bkd->bqk"}> : () -> ()
    %cst_33 = arith.constant dense<0.000000e+00> : vector<8x8x8xf32>
    %37 = tpu.matmul %34, %35, %cst_33 {dimension_numbers = #tpu.dot_dimension_numbers<[2], [2], [1], [1], [0, 0, 0, 1, 1, 1], [0], [0]>} : vector<8x8x8xf32>, vector<8x8x8xf32>, vector<8x8x8xf32> -> vector<8x8x8xf32>
    "tpu.trace_stop"() : () -> ()
    %cst_34 = arith.constant 0.353553385 : f32
    %38 = vector.broadcast %cst_34 : f32 to vector<8x8x8xf32>
    %39 = arith.mulf %37, %38 : vector<8x8x8xf32>
    %40 = vector.extract_strided_slice %33 {offsets = [0, 0, 0, 0], sizes = [8, 1, 8, 8], strides = [1, 1, 1, 1]} : vector<8x4x8x8xf32> to vector<8x1x8x8xf32>
    %41 = vector.shape_cast %40 : vector<8x1x8x8xf32> to vector<8x8x8xf32>
    %42 = arith.addf %41, %39 : vector<8x8x8xf32>
    %cst_35 = arith.constant dense<0xFF800000> : vector<8x8xf32>
    %43 = vector.multi_reduction <maximumf>, %42, %cst_35 [2] : vector<8x8x8xf32> to vector<8x8xf32>
    %44 = vector.shape_cast %43 : vector<8x8xf32> to vector<8x8x1xf32>
    %45 = vector.broadcast %44 : vector<8x8x1xf32> to vector<8x8x8xf32>
    %46 = arith.subf %42, %45 : vector<8x8x8xf32>
    %47 = math.exp %46 : vector<8x8x8xf32>
    %cst_36 = arith.constant dense<0.000000e+00> : vector<8x8xf32>
    %48 = vector.multi_reduction <add>, %47, %cst_36 [2] : vector<8x8x8xf32> to vector<8x8xf32>
    %49 = vector.shape_cast %48 : vector<8x8xf32> to vector<8x8x1xf32>
    %50 = tpu.reciprocal %49 {approx = true} : vector<8x8x1xf32> -> vector<8x8x1xf32>
    %51 = vector.broadcast %50 : vector<8x8x1xf32> to vector<8x8x8xf32>
    %52 = arith.mulf %47, %51 : vector<8x8x8xf32>
    "tpu.trace_start"() <{level = 10 : i32, message = "bqk,bkd->bqd"}> : () -> ()
    %cst_37 = arith.constant dense<0.000000e+00> : vector<8x8x8xf32>
    %53 = tpu.matmul %52, %36, %cst_37 {dimension_numbers = #tpu.dot_dimension_numbers<[2], [1], [1], [2], [0, 0, 0, 1, 1, 2], [0], [0]>} : vector<8x8x8xf32>, vector<8x8x8xf32>, vector<8x8x8xf32> -> vector<8x8x8xf32>
    "tpu.trace_stop"() : () -> ()
    %54 = vector.shape_cast %53 : vector<8x8x8xf32> to vector<64x8xf32>
    %c0_38 = arith.constant 0 : index
    %c0_39 = arith.constant 0 : index
    %55 = vector.load %arg26[%c0_38, %c0_39] : memref<64x32xf32, #tpu.memory_space<vmem>>, vector<64x8xf32>
    tpu.vector_store %arg26[%c0_38, %c0_39], %54 {strides = array<i32>} : memref<64x32xf32, #tpu.memory_space<vmem>>, vector<64x8xf32>,
    %56 = vector.extract_strided_slice %27 {offsets = [0, 0, 8], sizes = [8, 8, 8], strides = [1, 1, 1]} : vector<8x8x32xf32> to vector<8x8x8xf32>
    %57 = vector.extract_strided_slice %28 {offsets = [0, 0, 8], sizes = [8, 8, 8], strides = [1, 1, 1]} : vector<8x8x32xf32> to vector<8x8x8xf32>
    %58 = vector.extract_strided_slice %29 {offsets = [0, 0, 8], sizes = [8, 8, 8], strides = [1, 1, 1]} : vector<8x8x32xf32> to vector<8x8x8xf32>
    "tpu.trace_start"() <{level = 10 : i32, message = "bqd,bkd->bqk"}> : () -> ()
    %cst_40 = arith.constant dense<0.000000e+00> : vector<8x8x8xf32>
    %59 = tpu.matmul %56, %57, %cst_40 {dimension_numbers = #tpu.dot_dimension_numbers<[2], [2], [1], [1], [0, 0, 0, 1, 1, 1], [0], [0]>} : vector<8x8x8xf32>, vector<8x8x8xf32>, vector<8x8x8xf32> -> vector<8x8x8xf32>
    "tpu.trace_stop"() : () -> ()
    %cst_41 = arith.constant 0.353553385 : f32
    %60 = vector.broadcast %cst_41 : f32 to vector<8x8x8xf32>
    %61 = arith.mulf %59, %60 : vector<8x8x8xf32>
    %62 = vector.extract_strided_slice %33 {offsets = [0, 1, 0, 0], sizes = [8, 1, 8, 8], strides = [1, 1, 1, 1]} : vector<8x4x8x8xf32> to vector<8x1x8x8xf32>
    %63 = vector.shape_cast %62 : vector<8x1x8x8xf32> to vector<8x8x8xf32>
    %64 = arith.addf %63, %61 : vector<8x8x8xf32>
    %cst_42 = arith.constant dense<0xFF800000> : vector<8x8xf32>
    %65 = vector.multi_reduction <maximumf>, %64, %cst_42 [2] : vector<8x8x8xf32> to vector<8x8xf32>
    %66 = vector.shape_cast %65 : vector<8x8xf32> to vector<8x8x1xf32>
    %67 = vector.broadcast %66 : vector<8x8x1xf32> to vector<8x8x8xf32>
    %68 = arith.subf %64, %67 : vector<8x8x8xf32>
    %69 = math.exp %68 : vector<8x8x8xf32>
    %cst_43 = arith.constant dense<0.000000e+00> : vector<8x8xf32>
    %70 = vector.multi_reduction <add>, %69, %cst_43 [2] : vector<8x8x8xf32> to vector<8x8xf32>
    %71 = vector.shape_cast %70 : vector<8x8xf32> to vector<8x8x1xf32>
    %72 = tpu.reciprocal %71 {approx = true} : vector<8x8x1xf32> -> vector<8x8x1xf32>
    %73 = vector.broadcast %72 : vector<8x8x1xf32> to vector<8x8x8xf32>
    %74 = arith.mulf %69, %73 : vector<8x8x8xf32>
    "tpu.trace_start"() <{level = 10 : i32, message = "bqk,bkd->bqd"}> : () -> ()
    %cst_44 = arith.constant dense<0.000000e+00> : vector<8x8x8xf32>
    %75 = tpu.matmul %74, %58, %cst_44 {dimension_numbers = #tpu.dot_dimension_numbers<[2], [1], [1], [2], [0, 0, 0, 1, 1, 2], [0], [0]>} : vector<8x8x8xf32>, vector<8x8x8xf32>, vector<8x8x8xf32> -> vector<8x8x8xf32>
    "tpu.trace_stop"() : () -> ()
    %76 = vector.shape_cast %75 : vector<8x8x8xf32> to vector<64x8xf32>
    %c0_45 = arith.constant 0 : index
    %c8 = arith.constant 8 : index
    %77 = vector.load %arg26[%c0_45, %c8] : memref<64x32xf32, #tpu.memory_space<vmem>>, vector<64x8xf32>
    tpu.vector_store %arg26[%c0_45, %c8], %76 {strides = array<i32>} : memref<64x32xf32, #tpu.memory_space<vmem>>, vector<64x8xf32>,
    %78 = vector.extract_strided_slice %27 {offsets = [0, 0, 16], sizes = [8, 8, 8], strides = [1, 1, 1]} : vector<8x8x32xf32> to vector<8x8x8xf32>
    %79 = vector.extract_strided_slice %28 {offsets = [0, 0, 16], sizes = [8, 8, 8], strides = [1, 1, 1]} : vector<8x8x32xf32> to vector<8x8x8xf32>
    %80 = vector.extract_strided_slice %29 {offsets = [0, 0, 16], sizes = [8, 8, 8], strides = [1, 1, 1]} : vector<8x8x32xf32> to vector<8x8x8xf32>
    "tpu.trace_start"() <{level = 10 : i32, message = "bqd,bkd->bqk"}> : () -> ()
    %cst_46 = arith.constant dense<0.000000e+00> : vector<8x8x8xf32>
    %81 = tpu.matmul %78, %79, %cst_46 {dimension_numbers = #tpu.dot_dimension_numbers<[2], [2], [1], [1], [0, 0, 0, 1, 1, 1], [0], [0]>} : vector<8x8x8xf32>, vector<8x8x8xf32>, vector<8x8x8xf32> -> vector<8x8x8xf32>
    "tpu.trace_stop"() : () -> ()
    %cst_47 = arith.constant 0.353553385 : f32
    %82 = vector.broadcast %cst_47 : f32 to vector<8x8x8xf32>
    %83 = arith.mulf %81, %82 : vector<8x8x8xf32>
    %84 = vector.extract_strided_slice %33 {offsets = [0, 2, 0, 0], sizes = [8, 1, 8, 8], strides = [1, 1, 1, 1]} : vector<8x4x8x8xf32> to vector<8x1x8x8xf32>
    %85 = vector.shape_cast %84 : vector<8x1x8x8xf32> to vector<8x8x8xf32>
    %86 = arith.addf %85, %83 : vector<8x8x8xf32>
    %cst_48 = arith.constant dense<0xFF800000> : vector<8x8xf32>
    %87 = vector.multi_reduction <maximumf>, %86, %cst_48 [2] : vector<8x8x8xf32> to vector<8x8xf32>
    %88 = vector.shape_cast %87 : vector<8x8xf32> to vector<8x8x1xf32>
    %89 = vector.broadcast %88 : vector<8x8x1xf32> to vector<8x8x8xf32>
    %90 = arith.subf %86, %89 : vector<8x8x8xf32>
    %91 = math.exp %90 : vector<8x8x8xf32>
    %cst_49 = arith.constant dense<0.000000e+00> : vector<8x8xf32>
    %92 = vector.multi_reduction <add>, %91, %cst_49 [2] : vector<8x8x8xf32> to vector<8x8xf32>
    %93 = vector.shape_cast %92 : vector<8x8xf32> to vector<8x8x1xf32>
    %94 = tpu.reciprocal %93 {approx = true} : vector<8x8x1xf32> -> vector<8x8x1xf32>
    %95 = vector.broadcast %94 : vector<8x8x1xf32> to vector<8x8x8xf32>
    %96 = arith.mulf %91, %95 : vector<8x8x8xf32>
    "tpu.trace_start"() <{level = 10 : i32, message = "bqk,bkd->bqd"}> : () -> ()
    %cst_50 = arith.constant dense<0.000000e+00> : vector<8x8x8xf32>
    %97 = tpu.matmul %96, %80, %cst_50 {dimension_numbers = #tpu.dot_dimension_numbers<[2], [1], [1], [2], [0, 0, 0, 1, 1, 2], [0], [0]>} : vector<8x8x8xf32>, vector<8x8x8xf32>, vector<8x8x8xf32> -> vector<8x8x8xf32>
    "tpu.trace_stop"() : () -> ()
    %98 = vector.shape_cast %97 : vector<8x8x8xf32> to vector<64x8xf32>
    %c0_51 = arith.constant 0 : index
    %c16 = arith.constant 16 : index
    %99 = vector.load %arg26[%c0_51, %c16] : memref<64x32xf32, #tpu.memory_space<vmem>>, vector<64x8xf32>
    tpu.vector_store %arg26[%c0_51, %c16], %98 {strides = array<i32>} : memref<64x32xf32, #tpu.memory_space<vmem>>, vector<64x8xf32>,
    %100 = vector.extract_strided_slice %27 {offsets = [0, 0, 24], sizes = [8, 8, 8], strides = [1, 1, 1]} : vector<8x8x32xf32> to vector<8x8x8xf32>
    %101 = vector.extract_strided_slice %28 {offsets = [0, 0, 24], sizes = [8, 8, 8], strides = [1, 1, 1]} : vector<8x8x32xf32> to vector<8x8x8xf32>
    %102 = vector.extract_strided_slice %29 {offsets = [0, 0, 24], sizes = [8, 8, 8], strides = [1, 1, 1]} : vector<8x8x32xf32> to vector<8x8x8xf32>
    "tpu.trace_start"() <{level = 10 : i32, message = "bqd,bkd->bqk"}> : () -> ()
    %cst_52 = arith.constant dense<0.000000e+00> : vector<8x8x8xf32>
    %103 = tpu.matmul %100, %101, %cst_52 {dimension_numbers = #tpu.dot_dimension_numbers<[2], [2], [1], [1], [0, 0, 0, 1, 1, 1], [0], [0]>} : vector<8x8x8xf32>, vector<8x8x8xf32>, vector<8x8x8xf32> -> vector<8x8x8xf32>
    "tpu.trace_stop"() : () -> ()
    %cst_53 = arith.constant 0.353553385 : f32
    %104 = vector.broadcast %cst_53 : f32 to vector<8x8x8xf32>
    %105 = arith.mulf %103, %104 : vector<8x8x8xf32>
    %106 = vector.extract_strided_slice %33 {offsets = [0, 3, 0, 0], sizes = [8, 1, 8, 8], strides = [1, 1, 1, 1]} : vector<8x4x8x8xf32> to vector<8x1x8x8xf32>
    %107 = vector.shape_cast %106 : vector<8x1x8x8xf32> to vector<8x8x8xf32>
    %108 = arith.addf %107, %105 : vector<8x8x8xf32>
    %cst_54 = arith.constant dense<0xFF800000> : vector<8x8xf32>
    %109 = vector.multi_reduction <maximumf>, %108, %cst_54 [2] : vector<8x8x8xf32> to vector<8x8xf32>
    %110 = vector.shape_cast %109 : vector<8x8xf32> to vector<8x8x1xf32>
    %111 = vector.broadcast %110 : vector<8x8x1xf32> to vector<8x8x8xf32>
    %112 = arith.subf %108, %111 : vector<8x8x8xf32>
    %113 = math.exp %112 : vector<8x8x8xf32>
    %cst_55 = arith.constant dense<0.000000e+00> : vector<8x8xf32>
    %114 = vector.multi_reduction <add>, %113, %cst_55 [2] : vector<8x8x8xf32> to vector<8x8xf32>
    %115 = vector.shape_cast %114 : vector<8x8xf32> to vector<8x8x1xf32>
    %116 = tpu.reciprocal %115 {approx = true} : vector<8x8x1xf32> -> vector<8x8x1xf32>
    %117 = vector.broadcast %116 : vector<8x8x1xf32> to vector<8x8x8xf32>
    %118 = arith.mulf %113, %117 : vector<8x8x8xf32>
    "tpu.trace_start"() <{level = 10 : i32, message = "bqk,bkd->bqd"}> : () -> ()
    %cst_56 = arith.constant dense<0.000000e+00> : vector<8x8x8xf32>
    %119 = tpu.matmul %118, %102, %cst_56 {dimension_numbers = #tpu.dot_dimension_numbers<[2], [1], [1], [2], [0, 0, 0, 1, 1, 2], [0], [0]>} : vector<8x8x8xf32>, vector<8x8x8xf32>, vector<8x8x8xf32> -> vector<8x8x8xf32>
    "tpu.trace_stop"() : () -> ()
    %120 = vector.shape_cast %119 : vector<8x8x8xf32> to vector<64x8xf32>
    %c0_57 = arith.constant 0 : index
    %c24 = arith.constant 24 : index
    %121 = vector.load %arg26[%c0_57, %c24] : memref<64x32xf32, #tpu.memory_space<vmem>>, vector<64x8xf32>
    tpu.vector_store %arg26[%c0_57, %c24], %120 {strides = array<i32>} : memref<64x32xf32, #tpu.memory_space<vmem>>, vector<64x8xf32>,
    %c0_58 = arith.constant 0 : index
    %c0_59 = arith.constant 0 : index
    %122 = vector.load %arg26[%c0_58, %c0_59] : memref<64x32xf32, #tpu.memory_space<vmem>>, vector<64x32xf32>
    %c0_60 = arith.constant 0 : index
    %c0_61 = arith.constant 0 : index
    %123 = vector.load %arg13[%c0_60, %c0_61] : memref<32x32xf32, #tpu.memory_space<vmem>>, vector<32x32xf32>
    %cst_62 = arith.constant dense<0.000000e+00> : vector<64x32xf32>
    %124 = tpu.matmul %122, %123, %cst_62 {dimension_numbers = #tpu.dot_dimension_numbers<[1], [0], [0], [1], [0, 0, 1, 1], [], []>} : vector<64x32xf32>, vector<32x32xf32>, vector<64x32xf32> -> vector<64x32xf32>
    %c0_63 = arith.constant 0 : index
    %c0_64 = arith.constant 0 : index
    %125 = vector.load %arg14[%c0_63, %c0_64] : memref<1x32xf32, #tpu.memory_space<vmem>>, vector<1x32xf32>
    %126 = vector.broadcast %125 : vector<1x32xf32> to vector<64x32xf32>
    %127 = arith.addf %124, %126 : vector<64x32xf32>
    %128 = arith.addf %4, %127 : vector<64x32xf32>
    %c0_65 = arith.constant 0 : index
    %c0_66 = arith.constant 0 : index
    %129 = vector.load %arg15[%c0_65, %c0_66] : memref<1x32xf32, #tpu.memory_space<vmem>>, vector<1x32xf32>
    %c0_67 = arith.constant 0 : index
    %c0_68 = arith.constant 0 : index
    %130 = vector.load %arg16[%c0_67, %c0_68] : memref<1x32xf32, #tpu.memory_space<vmem>>, vector<1x32xf32>
    %cst_69 = arith.constant dense<0.000000e+00> : vector<64xf32>
    %131 = vector.multi_reduction <add>, %128, %cst_69 [1] : vector<64x32xf32> to vector<64xf32>
    %132 = vector.shape_cast %131 : vector<64xf32> to vector<64x1xf32>
    %cst_70 = arith.constant 3.200000e+01 : f32
    %133 = vector.broadcast %cst_70 : f32 to vector<64x1xf32>
    %134 = arith.divf %132, %133 : vector<64x1xf32>
    %135 = vector.broadcast %134 : vector<64x1xf32> to vector<64x32xf32>
    %136 = arith.subf %128, %135 : vector<64x32xf32>
    %137 = arith.mulf %136, %136 : vector<64x32xf32>
    %cst_71 = arith.constant dense<0.000000e+00> : vector<64xf32>
    %138 = vector.multi_reduction <add>, %137, %cst_71 [1] : vector<64x32xf32> to vector<64xf32>
    %139 = vector.shape_cast %138 : vector<64xf32> to vector<64x1xf32>
    %cst_72 = arith.constant 3.200000e+01 : f32
    %140 = vector.broadcast %cst_72 : f32 to vector<64x1xf32>
    %141 = arith.divf %139, %140 : vector<64x1xf32>
    %cst_73 = arith.constant 9.99999974E-6 : f32
    %142 = vector.broadcast %cst_73 : f32 to vector<64x1xf32>
    %143 = arith.addf %141, %142 : vector<64x1xf32>
    %144 = math.rsqrt %143 : vector<64x1xf32>
    %145 = vector.broadcast %144 : vector<64x1xf32> to vector<64x32xf32>
    %146 = arith.mulf %136, %145 : vector<64x32xf32>
    %147 = vector.broadcast %129 : vector<1x32xf32> to vector<64x32xf32>
    %148 = arith.mulf %146, %147 : vector<64x32xf32>
    %149 = vector.broadcast %130 : vector<1x32xf32> to vector<64x32xf32>
    %150 = arith.addf %148, %149 : vector<64x32xf32>
    %151 = arith.addf %1, %150 : vector<64x32xf32>
    %c0_74 = arith.constant 0 : index
    %c0_75 = arith.constant 0 : index
    %152 = vector.load %arg17[%c0_74, %c0_75] : memref<1x32xf32, #tpu.memory_space<vmem>>, vector<1x32xf32>
    %c0_76 = arith.constant 0 : index
    %c0_77 = arith.constant 0 : index
    %153 = vector.load %arg18[%c0_76, %c0_77] : memref<1x32xf32, #tpu.memory_space<vmem>>, vector<1x32xf32>
    %cst_78 = arith.constant dense<0.000000e+00> : vector<64xf32>
    %154 = vector.multi_reduction <add>, %151, %cst_78 [1] : vector<64x32xf32> to vector<64xf32>
    %155 = vector.shape_cast %154 : vector<64xf32> to vector<64x1xf32>
    %cst_79 = arith.constant 3.200000e+01 : f32
    %156 = vector.broadcast %cst_79 : f32 to vector<64x1xf32>
    %157 = arith.divf %155, %156 : vector<64x1xf32>
    %158 = vector.broadcast %157 : vector<64x1xf32> to vector<64x32xf32>
    %159 = arith.subf %151, %158 : vector<64x32xf32>
    %160 = arith.mulf %159, %159 : vector<64x32xf32>
    %cst_80 = arith.constant dense<0.000000e+00> : vector<64xf32>
    %161 = vector.multi_reduction <add>, %160, %cst_80 [1] : vector<64x32xf32> to vector<64xf32>
    %162 = vector.shape_cast %161 : vector<64xf32> to vector<64x1xf32>
    %cst_81 = arith.constant 3.200000e+01 : f32
    %163 = vector.broadcast %cst_81 : f32 to vector<64x1xf32>
    %164 = arith.divf %162, %163 : vector<64x1xf32>
    %cst_82 = arith.constant 9.99999974E-6 : f32
    %165 = vector.broadcast %cst_82 : f32 to vector<64x1xf32>
    %166 = arith.addf %164, %165 : vector<64x1xf32>
    %167 = math.rsqrt %166 : vector<64x1xf32>
    %168 = vector.broadcast %167 : vector<64x1xf32> to vector<64x32xf32>
    %169 = arith.mulf %159, %168 : vector<64x32xf32>
    %170 = vector.broadcast %152 : vector<1x32xf32> to vector<64x32xf32>
    %171 = arith.mulf %169, %170 : vector<64x32xf32>
    %172 = vector.broadcast %153 : vector<1x32xf32> to vector<64x32xf32>
    %173 = arith.addf %171, %172 : vector<64x32xf32>
    %c0_83 = arith.constant 0 : index
    %c0_84 = arith.constant 0 : index
    %174 = vector.load %arg19[%c0_83, %c0_84] : memref<32x64xf32, #tpu.memory_space<vmem>>, vector<32x64xf32>
    %cst_85 = arith.constant dense<0.000000e+00> : vector<64x64xf32>
    %175 = tpu.matmul %173, %174, %cst_85 {dimension_numbers = #tpu.dot_dimension_numbers<[1], [0], [0], [1], [0, 0, 1, 1], [], []>} : vector<64x32xf32>, vector<32x64xf32>, vector<64x64xf32> -> vector<64x64xf32>
    %c0_86 = arith.constant 0 : index
    %c0_87 = arith.constant 0 : index
    %176 = vector.load %arg20[%c0_86, %c0_87] : memref<1x64xf32, #tpu.memory_space<vmem>>, vector<1x64xf32>
    %177 = vector.broadcast %176 : vector<1x64xf32> to vector<64x64xf32>
    %178 = arith.addf %175, %177 : vector<64x64xf32>
    %cst_88 = arith.constant 0.000000e+00 : f32
    %179 = vector.broadcast %cst_88 : f32 to vector<64x64xf32>
    %180 = arith.maximumf %178, %179 : vector<64x64xf32>
    %c0_89 = arith.constant 0 : index
    %c0_90 = arith.constant 0 : index
    %181 = vector.load %arg21[%c0_89, %c0_90] : memref<64x32xf32, #tpu.memory_space<vmem>>, vector<64x32xf32>
    %cst_91 = arith.constant dense<0.000000e+00> : vector<64x32xf32>
    %182 = tpu.matmul %180, %181, %cst_91 {dimension_numbers = #tpu.dot_dimension_numbers<[1], [0], [0], [1], [0, 0, 1, 1], [], []>} : vector<64x64xf32>, vector<64x32xf32>, vector<64x32xf32> -> vector<64x32xf32>
    %c0_92 = arith.constant 0 : index
    %c0_93 = arith.constant 0 : index
    %183 = vector.load %arg22[%c0_92, %c0_93] : memref<1x32xf32, #tpu.memory_space<vmem>>, vector<1x32xf32>
    %184 = vector.broadcast %183 : vector<1x32xf32> to vector<64x32xf32>
    %185 = arith.addf %182, %184 : vector<64x32xf32>
    %186 = arith.addf %173, %185 : vector<64x32xf32>
    %c0_94 = arith.constant 0 : index
    %c0_95 = arith.constant 0 : index
    %187 = vector.load %arg23[%c0_94, %c0_95] : memref<1x32xf32, #tpu.memory_space<vmem>>, vector<1x32xf32>
    %c0_96 = arith.constant 0 : index
    %c0_97 = arith.constant 0 : index
    %188 = vector.load %arg24[%c0_96, %c0_97] : memref<1x32xf32, #tpu.memory_space<vmem>>, vector<1x32xf32>
    %cst_98 = arith.constant dense<0.000000e+00> : vector<64xf32>
    %189 = vector.multi_reduction <add>, %186, %cst_98 [1] : vector<64x32xf32> to vector<64xf32>
    %190 = vector.shape_cast %189 : vector<64xf32> to vector<64x1xf32>
    %cst_99 = arith.constant 3.200000e+01 : f32
    %191 = vector.broadcast %cst_99 : f32 to vector<64x1xf32>
    %192 = arith.divf %190, %191 : vector<64x1xf32>
    %193 = vector.broadcast %192 : vector<64x1xf32> to vector<64x32xf32>
    %194 = arith.subf %186, %193 : vector<64x32xf32>
    %195 = arith.mulf %194, %194 : vector<64x32xf32>
    %cst_100 = arith.constant dense<0.000000e+00> : vector<64xf32>
    %196 = vector.multi_reduction <add>, %195, %cst_100 [1] : vector<64x32xf32> to vector<64xf32>
    %197 = vector.shape_cast %196 : vector<64xf32> to vector<64x1xf32>
    %cst_101 = arith.constant 3.200000e+01 : f32
    %198 = vector.broadcast %cst_101 : f32 to vector<64x1xf32>
    %199 = arith.divf %197, %198 : vector<64x1xf32>
    %cst_102 = arith.constant 9.99999974E-6 : f32
    %200 = vector.broadcast %cst_102 : f32 to vector<64x1xf32>
    %201 = arith.addf %199, %200 : vector<64x1xf32>
    %202 = math.rsqrt %201 : vector<64x1xf32>
    %203 = vector.broadcast %202 : vector<64x1xf32> to vector<64x32xf32>
    %204 = arith.mulf %194, %203 : vector<64x32xf32>
    %205 = vector.broadcast %187 : vector<1x32xf32> to vector<64x32xf32>
    %206 = arith.mulf %204, %205 : vector<64x32xf32>
    %207 = vector.broadcast %188 : vector<1x32xf32> to vector<64x32xf32>
    %208 = arith.addf %206, %207 : vector<64x32xf32>
    %209 = vector.shape_cast %208 : vector<64x32xf32> to vector<8x8x32xf32>
    %c0_103 = arith.constant 0 : index
    %c0_104 = arith.constant 0 : index
    %c0_105 = arith.constant 0 : index
    %210 = vector.load %arg25[%c0_103, %c0_104, %c0_105] : memref<8x8x32xf32, #tpu.memory_space<vmem>>, vector<8x8x32xf32>
    tpu.vector_store %arg25[%c0_103, %c0_104, %c0_105], %209 {strides = array<i32>} : memref<8x8x32xf32, #tpu.memory_space<vmem>>, vector<8x8x32xf32>,
    return
  }
  func.func @transform_0(%arg0: i32) -> (i32, i32, i32) {
    %c0_i32 = arith.constant 0 : i32
    %c0_i32_0 = arith.constant 0 : i32
    %c0_i32_1 = arith.constant 0 : i32
    return %arg0, %c0_i32, %c0_i32_0 : i32, i32, i32
  }
  func.func @transform_1(%arg0: i32) -> (i32, i32, i32) {
    %c0_i32 = arith.constant 0 : i32
    %c0_i32_0 = arith.constant 0 : i32
    %c0_i32_1 = arith.constant 0 : i32
    return %arg0, %c0_i32, %c0_i32_0 : i32, i32, i32
  }
  func.func @transform_2(%arg0: i32) -> (i32, i32, i32) {
    %c0_i32 = arith.constant 0 : i32
    %c0_i32_0 = arith.constant 0 : i32
    %c0_i32_1 = arith.constant 0 : i32
    return %arg0, %c0_i32, %c0_i32_0 : i32, i32, i32
  }
  func.func @transform_3(%arg0: i32) -> (i32, i32, i32, i32) {
    %c0_i32 = arith.constant 0 : i32
    %c0_i32_0 = arith.constant 0 : i32
    %c0_i32_1 = arith.constant 0 : i32
    %c0_i32_2 = arith.constant 0 : i32
    return %arg0, %c0_i32, %c0_i32_0, %c0_i32_1 : i32, i32, i32, i32
  }
  func.func @transform_4(%arg0: i32) -> (i32, i32, i32) {
    %c0_i32 = arith.constant 0 : i32
    %c0_i32_0 = arith.constant 0 : i32
    %c0_i32_1 = arith.constant 0 : i32
    return %arg0, %c0_i32, %c0_i32_0 : i32, i32, i32
  }
  func.func @transform_5(%arg0: i32) -> (i32, i32, i32) {
    %c0_i32 = arith.constant 0 : i32
    %c0_i32_0 = arith.constant 0 : i32
    %c0_i32_1 = arith.constant 0 : i32
    return %arg0, %c0_i32, %c0_i32_0 : i32, i32, i32
  }
  func.func @transform_6(%arg0: i32) -> (i32, i32) {
    %c0_i32 = arith.constant 0 : i32
    %c0_i32_0 = arith.constant 0 : i32
    %c0_i32_1 = arith.constant 0 : i32
    return %c0_i32, %c0_i32_0 : i32, i32
  }
  func.func @transform_7(%arg0: i32) -> (i32, i32) {
    %c0_i32 = arith.constant 0 : i32
    %c0_i32_0 = arith.constant 0 : i32
    %c0_i32_1 = arith.constant 0 : i32
    return %c0_i32, %c0_i32_0 : i32, i32
  }
  func.func @transform_8(%arg0: i32) -> (i32, i32) {
    %c0_i32 = arith.constant 0 : i32
    %c0_i32_0 = arith.constant 0 : i32
    %c0_i32_1 = arith.constant 0 : i32
    return %c0_i32, %c0_i32_0 : i32, i32
  }
  func.func @transform_9(%arg0: i32) -> (i32, i32) {
    %c0_i32 = arith.constant 0 : i32
    %c0_i32_0 = arith.constant 0 : i32
    %c0_i32_1 = arith.constant 0 : i32
    return %c0_i32, %c0_i32_0 : i32, i32
  }
  func.func @transform_10(%arg0: i32) -> (i32, i32) {
    %c0_i32 = arith.constant 0 : i32
    %c0_i32_0 = arith.constant 0 : i32
    %c0_i32_1 = arith.constant 0 : i32
    return %c0_i32, %c0_i32_0 : i32, i32
  }
  func.func @transform_11(%arg0: i32) -> (i32, i32) {
    %c0_i32 = arith.constant 0 : i32
    %c0_i32_0 = arith.constant 0 : i32
    %c0_i32_1 = arith.constant 0 : i32
    return %c0_i32, %c0_i32_0 : i32, i32
  }
  func.func @transform_12(%arg0: i32) -> (i32, i32) {
    %c0_i32 = arith.constant 0 : i32
    %c0_i32_0 = arith.constant 0 : i32
    %c0_i32_1 = arith.constant 0 : i32
    return %c0_i32, %c0_i32_0 : i32, i32
  }
  func.func @transform_13(%arg0: i32) -> (i32, i32) {
    %c0_i32 = arith.constant 0 : i32
    %c0_i32_0 = arith.constant 0 : i32
    %c0_i32_1 = arith.constant 0 : i32
    return %c0_i32, %c0_i32_0 : i32, i32
  }
  func.func @transform_14(%arg0: i32) -> (i32, i32) {
    %c0_i32 = arith.constant 0 : i32
    %c0_i32_0 = arith.constant 0 : i32
    %c0_i32_1 = arith.constant 0 : i32
    return %c0_i32, %c0_i32_0 : i32, i32
  }
  func.func @transform_15(%arg0: i32) -> (i32, i32) {
    %c0_i32 = arith.constant 0 : i32
    %c0_i32_0 = arith.constant 0 : i32
    %c0_i32_1 = arith.constant 0 : i32
    return %c0_i32, %c0_i32_0 : i32, i32
  }
  func.func @transform_16(%arg0: i32) -> (i32, i32) {
    %c0_i32 = arith.constant 0 : i32
    %c0_i32_0 = arith.constant 0 : i32
    %c0_i32_1 = arith.constant 0 : i32
    return %c0_i32, %c0_i32_0 : i32, i32
  }
  func.func @transform_17(%arg0: i32) -> (i32, i32) {
    %c0_i32 = arith.constant 0 : i32
    %c0_i32_0 = arith.constant 0 : i32
    %c0_i32_1 = arith.constant 0 : i32
    return %c0_i32, %c0_i32_0 : i32, i32
  }
  func.func @transform_18(%arg0: i32) -> (i32, i32) {
    %c0_i32 = arith.constant 0 : i32
    %c0_i32_0 = arith.constant 0 : i32
    %c0_i32_1 = arith.constant 0 : i32
    return %c0_i32, %c0_i32_0 : i32, i32
  }
  func.func @transform_19(%arg0: i32) -> (i32, i32) {
    %c0_i32 = arith.constant 0 : i32
    %c0_i32_0 = arith.constant 0 : i32
    %c0_i32_1 = arith.constant 0 : i32
    return %c0_i32, %c0_i32_0 : i32, i32
  }
  func.func @transform_20(%arg0: i32) -> (i32, i32) {
    %c0_i32 = arith.constant 0 : i32
    %c0_i32_0 = arith.constant 0 : i32
    %c0_i32_1 = arith.constant 0 : i32
    return %c0_i32, %c0_i32_0 : i32, i32
  }
  func.func @transform_21(%arg0: i32) -> (i32, i32) {
    %c0_i32 = arith.constant 0 : i32
    %c0_i32_0 = arith.constant 0 : i32
    %c0_i32_1 = arith.constant 0 : i32
    return %c0_i32, %c0_i32_0 : i32, i32
  }
  func.func @transform_22(%arg0: i32) -> (i32, i32) {
    %c0_i32 = arith.constant 0 : i32
    %c0_i32_0 = arith.constant 0 : i32
    %c0_i32_1 = arith.constant 0 : i32
    return %c0_i32, %c0_i32_0 : i32, i32
  }
  func.func @transform_23(%arg0: i32) -> (i32, i32) {
    %c0_i32 = arith.constant 0 : i32
    %c0_i32_0 = arith.constant 0 : i32
    %c0_i32_1 = arith.constant 0 : i32
    return %c0_i32, %c0_i32_0 : i32, i32
  }
  func.func @transform_24(%arg0: i32) -> (i32, i32, i32) {
    %c0_i32 = arith.constant 0 : i32
    %c0_i32_0 = arith.constant 0 : i32
    %c0_i32_1 = arith.constant 0 : i32
    return %arg0, %c0_i32, %c0_i32_0 : i32, i32, i32
  }
}

</mosaic_0001>

<bundles_post_ra>
// kernel: tpu_custom_call.1
= control target key start
LH: loop header
LB: loop body
LE: loop exit
PB: predicated region body
PF: predicated region fallthrough
CT: control target
= control target key end

     0   :  { %s10167_s0 = inlined_call_operand.vmem [shape: f32[8,8,32], index: 0, kind: input, shape index: {}]   ;;  %s10168_s1 = inlined_call_operand.hbm [shape: f32[8,8,32], index: 1, kind: input, shape index: {}]   ;;  %s10169_s2 = inlined_call_operand.hbm [shape: f32[8,8,32], index: 2, kind: input, shape index: {}]   ;;  %s10170_s3 = inlined_call_operand.hbm [shape: f32[8,4,8,8], index: 3, kind: input, shape index: {}]   ;;  %s10171_s4 = inlined_call_operand.hbm [shape: f32[8,8,32], index: 4, kind: input, shape index: {}]   ;;  %s10172_s5 = inlined_call_operand.hbm [shape: f32[8,8,32], index: 5, kind: input, shape index: {}]   ;;  %s10173_s6 = inlined_call_operand.vmem [shape: f32[32,32], index: 6, kind: input, shape index: {}]   ;;  %s10174_s7 = inlined_call_operand.vmem [shape: f32[1,32], index: 7, kind: input, shape index: {}]   ;;  %s10175_s8 = inlined_call_operand.hbm [shape: f32[32,32], index: 8, kind: input, shape index: {}]   ;;  %s10176_s9 = inlined_call_operand.vmem [shape: f32[1,32], index: 9, kind: input, shape index: {}]   ;;  %s10177_s10 = inlined_call_operand.hbm [shape: f32[32,32], index: 10, kind: input, shape index: {}]   ;;  %s10178_s11 = inlined_call_operand.vmem [shape: f32[1,32], index: 11, kind: input, shape index: {}]   ;;  %s10179_s12 = inlined_call_operand.hbm [shape: f32[32,32], index: 12, kind: input, shape index: {}]   ;;  %s10180_s13 = inlined_call_operand.vmem [shape: f32[1,32], index: 13, kind: input, shape index: {}]   ;;  %s10181_s14 = inlined_call_operand.hbm [shape: f32[1,32], index: 14, kind: input, shape index: {}]   ;;  %s10182_s15 = inlined_call_operand.hbm [shape: f32[1,32], index: 15, kind: input, shape index: {}]   ;;  %s10183_s16 = inlined_call_operand.hbm [shape: f32[1,32], index: 16, kind: input, shape index: {}]   ;;  %s10184_s17 = inlined_call_operand.hbm [shape: f32[1,32], index: 17, kind: input, shape index: {}]   ;;  %s10185_s18 = inlined_call_operand.hbm [shape: f32[32,64], index: 18, kind: input, shape index: {}]   ;;  %s10186_s19 = inlined_call_operand.hbm [shape: f32[1,64], index: 19, kind: input, shape index: {}]   ;;  %s10187_s20 = inlined_call_operand.vmem [shape: f32[64,32], index: 20, kind: input, shape index: {}]   ;;  %s10188_s21 = inlined_call_operand.vmem [shape: f32[1,32], index: 21, kind: input, shape index: {}]   ;;  %s10189_s22 = inlined_call_operand.vmem [shape: f32[1,32], index: 22, kind: input, shape index: {}]   ;;  %s10190_s23 = inlined_call_operand.vmem [shape: f32[1,32], index: 23, kind: input, shape index: {}]   ;;  %s10191_s24 = inlined_call_operand.hbm [shape: f32[8,8,32], index: 24, kind: output, shape index: {}]  }
   0x1   :  { %10194 = sst [smem:[#allocation36_spill]] %s10167_s0 }
   0x2   :  { %10195 = sst [smem:[#allocation37_spill]] %s10168_s1 }
   0x3   :  { %10196 = sst [smem:[#allocation38_spill]] %s10169_s2 }
   0x4   :  { %10197 = sst [smem:[#allocation39_spill]] %s10170_s3 }
   0x5   :  { %10198 = sst [smem:[#allocation40_spill]] %s10171_s4 }
   0x6   :  { %10199 = sst [smem:[#allocation41_spill]] %s10172_s5 }
   0x7   :  { %10200 = sst [smem:[#allocation42_spill]] %s10173_s6 }
   0x8   :  { %10201 = sst [smem:[#allocation43_spill]] %s10174_s7 }
   0x9   :  { %10202 = sst [smem:[#allocation44_spill]] %s10175_s8 }
   0xa   :  { %29 = vsyncpa [#allocation4], 0 }
   0xb   :  { %30 = vsyncpa [#allocation7], 0 }
   0xc   :  { %31 = vsyncpa [#allocation10], 0 }
   0xd   :  { %32 = vsyncpa [#allocation13], 0 }
   0xe   :  { %33 = vsyncpa [#allocation16], 0 }
   0xf   :  { %34 = vsyncpa [#allocation19], 0 }
  0x10   :  { %35 = vsyncpa [#allocation22], 0 }
  0x11   :  { %36 = vsyncpa [#allocation25], 0 }
  0x12   :  { %37 = vsyncpa [#allocation5], 0  ;;  %s8613_s5 = smov [#allocation6]   ;;  %s8614_s27 = smov [#allocation9]  }
  0x13   :  { %s57_s26 = sshll.u32 %s8613_s5, 4  ;;  %s81_s28 = sshll.u32 %s8614_s27, 4  ;;  %s58_s26 = int_to_ptr.vmem [resolvable:$true] %s57_s26  ;;  %s82_s28 = int_to_ptr.vmem [resolvable:$true] %s81_s28 }
  0x14   :  { %s8303_s6 = scalar_lea.vmem %s58_s26, 1024  ;;  %p8308_p1 = scmp.lt.s32.totalorder %s58_s26, %s58_s26 }
  0x15   :  { %p8304_p0 = scmp.ne.s32.totalorder %s58_s26, %s8303_s6  ;;  %p8309_p2 = scmp.lt.s32.totalorder %s8303_s6, %s8303_s6 }
  0x17   :  { %p8310_p3 = por %p8309_p2, %p8308_p1 }
  0x19   :  { %p8311_p4 = pnand %p8310_p3, %p8304_p0 }
  0x1b   :  { %8314 = shalt.err (!%p8311_p4)
}
  0x1c   :  { %s8615_s2 = smov 128   ;;  %s8616_s29 = smov 8  }
  0x1d   :  { %s10203_s30 = sld [smem:[#allocation38_spill]]  ;;  %s8323_s3 = scalar_lea.vmem %s82_s28, 1024 }
  0x1e   :  { %p8324_p5 = scmp.ne.s32.totalorder %s82_s28, %s8323_s3  ;;  %p8328_p6 = scmp.lt.s32.totalorder %s82_s28, %s82_s28 }
  0x1f   :  { %p8329_p7 = scmp.lt.s32.totalorder %s8323_s3, %s8323_s3 }
  0x21   :  { %p8330_p8 = por %p8329_p7, %p8328_p6 }
  0x23   :  { %63 = dma.hbm_to_vmem [thread:$0]  %s10203_s30, 1024, %s58_s26, [#allocation7], %s8615_s2, %s8615_s2, %s8616_s29  }
  0x24   :  { %p8331_p9 = pnand %p8330_p8, %p8324_p5 }
  0x26   :  { %8334 = shalt.err (!%p8331_p9)
}
  0x27   :  { %s10204_s4 = sld [smem:[#allocation40_spill]]  ;;  %s8617_s1 = smov [#allocation12]  }
  0x28   :  { %s109_s5 = sshll.u32 %s8617_s1, 4  ;;  %s8618_s27 = smov [#allocation15]   ;;  %s110_s5 = int_to_ptr.vmem [resolvable:$true] %s109_s5 }
  0x29   :  { %s137_s6 = sshll.u32 %s8618_s27, 4  ;;  %s8343_s26 = scalar_lea.vmem %s110_s5, 512  ;;  %s138_s6 = int_to_ptr.vmem [resolvable:$true] %s137_s6 }
  0x2a   :  { %p8344_p10 = scmp.ne.s32.totalorder %s110_s5, %s8343_s26  ;;  %p8348_p11 = scmp.lt.s32.totalorder %s110_s5, %s110_s5 }
  0x2b   :  { %p8349_p12 = scmp.lt.s32.totalorder %s8343_s26, %s8343_s26 }
  0x2d   :  { %87 = dma.hbm_to_vmem [thread:$0]  %s10204_s4, 1024, %s82_s28, [#allocation10], %s8615_s2, %s8615_s2, %s8616_s29  }
  0x2e   :  { %p8350_p13 = por %p8349_p12, %p8348_p11 }
  0x30   :  { %p8351_p0 = pnand %p8350_p13, %p8344_p10 }
  0x32   :  { %8354 = shalt.err (!%p8351_p0)
}
  0x33   :  { %s10205_s30 = sld [smem:[#allocation44_spill]]  ;;  %s8363_s28 = scalar_lea.vmem %s138_s6, 512 }
  0x34   :  { %p8364_p1 = scmp.ne.s32.totalorder %s138_s6, %s8363_s28  ;;  %p8368_p2 = scmp.lt.s32.totalorder %s138_s6, %s138_s6 }
  0x35   :  { %p8369_p3 = scmp.lt.s32.totalorder %s8363_s28, %s8363_s28 }
  0x37   :  { %p8370_p4 = por %p8369_p3, %p8368_p2 }
  0x39   :  { %115 = dma.hbm_to_vmem [thread:$0]  %s10205_s30, 512, %s110_s5, [#allocation13], %s8615_s2, %s8615_s2, %s8616_s29  }
  0x3a   :  { %p8371_p5 = pnand %p8370_p4, %p8364_p1 }
  0x3c   :  { %8374 = shalt.err (!%p8371_p5)
}
  0x3d   :  { %143 = dma.hbm_to_vmem [thread:$0]  %s10179_s12, 512, %s138_s6, [#allocation16], %s8615_s2, %s8615_s2, %s8616_s29  }
  0x3e   :  { %s8619_s8 = smov [#allocation18]   ;;  %s8620_s1 = smov [#allocation21]  }
  0x3f   :  { %s162_s4 = sshll.u32 %s8619_s8, 4  ;;  %s182_s27 = sshll.u32 %s8620_s1, 4  ;;  %s163_s4 = int_to_ptr.vmem [resolvable:$true] %s162_s4  ;;  %s183_s27 = int_to_ptr.vmem [resolvable:$true] %s182_s27 }
  0x40   :  { %s8383_s5 = scalar_lea.vmem %s163_s4, 16  ;;  %s8387_s26 = scalar_lea.vmem %s163_s4, 32 }
  0x41   :  { %p8384_p6 = scmp.ne.s32.totalorder %s163_s4, %s8383_s5  ;;  %p8388_p7 = scmp.lt.s32.totalorder %s163_s4, %s163_s4 }
  0x42   :  { %p8389_p8 = scmp.lt.s32.totalorder %s8387_s26, %s8383_s5 }
  0x44   :  { %p8390_p9 = por %p8389_p8, %p8388_p7 }
  0x46   :  { %p8391_p10 = pnand %p8390_p9, %p8384_p6 }
  0x48   :  { %8394 = shalt.err (!%p8391_p10)
}
  0x49   :  { %165 = dma.hbm_to_vmem [thread:$0]  %s10182_s15, 16, %s163_s4, [#allocation19]  }
  0x4a   :  { %s8403_s30 = scalar_lea.vmem %s183_s27, 16  ;;  %s8407_s12 = scalar_lea.vmem %s183_s27, 32 }
  0x4b   :  { %p8404_p11 = scmp.ne.s32.totalorder %s183_s27, %s8403_s30  ;;  %p8408_p12 = scmp.lt.s32.totalorder %s183_s27, %s183_s27 }
  0x4c   :  { %p8409_p13 = scmp.lt.s32.totalorder %s8407_s12, %s8403_s30 }
  0x4e   :  { %p8410_p0 = por %p8409_p13, %p8408_p12 }
  0x50   :  { %p8411_p1 = pnand %p8410_p0, %p8404_p11 }
  0x52   :  { %8414 = shalt.err (!%p8411_p1)
}
  0x53   :  { %185 = dma.hbm_to_vmem [thread:$0]  %s10184_s17, 16, %s183_s27, [#allocation22]  }
  0x54   :  { %s8621_s3 = smov [#allocation3]   ;;  %s8622_s8 = smov [#allocation8]  }
  0x55   :  { %s45_s25 = sshll.u32 %s8621_s3, 4  ;;  %s69_s1 = sshll.u32 %s8622_s8, 4  ;;  %s46_s25 = int_to_ptr.vmem [resolvable:$true] %s45_s25  ;;  %s70_s1 = int_to_ptr.vmem [resolvable:$true] %s69_s1 }
  0x56   :  { %s8423_s5 = scalar_lea.vmem %s46_s25, 1024  ;;  %p8428_p3 = scmp.lt.s32.totalorder %s46_s25, %s46_s25 }
  0x57   :  { %p8424_p2 = scmp.ne.s32.totalorder %s46_s25, %s8423_s5  ;;  %p8429_p4 = scmp.lt.s32.totalorder %s8423_s5, %s8423_s5 }
  0x59   :  { %p8430_p5 = por %p8429_p4, %p8428_p3 }
  0x5b   :  { %p8431_p6 = pnand %p8430_p5, %p8424_p2 }
  0x5d   :  { %8434 = shalt.err (!%p8431_p6)
}
  0x5e   :  { %s10206_s26 = sld [smem:[#allocation37_spill]]  ;;  %s8443_s17 = scalar_lea.vmem %s70_s1, 4096 }
  0x5f   :  { %p8444_p7 = scmp.ne.s32.totalorder %s70_s1, %s8443_s17  ;;  %p8448_p8 = scmp.lt.s32.totalorder %s70_s1, %s70_s1 }
  0x60   :  { %p8449_p9 = scmp.lt.s32.totalorder %s8443_s17, %s8443_s17 }
  0x62   :  { %p8450_p10 = por %p8449_p9, %p8448_p8 }
  0x64   :  { %51 = dma.hbm_to_vmem [thread:$0]  %s10206_s26, 1024, %s46_s25, [#allocation4], %s8615_s2, %s8615_s2, %s8616_s29  }
  0x65   :  { %p8451_p11 = pnand %p8450_p10, %p8444_p7 }
  0x67   :  { %8454 = shalt.err (!%p8451_p11)
}
  0x68   :  { %s10207_s7 = sld [smem:[#allocation39_spill]]  ;;  %s8623_s30 = smov [#allocation11]  }
  0x69   :  { %s93_s12 = sshll.u32 %s8623_s30, 4  ;;  %s8624_s6 = smov [#allocation14]   ;;  %s94_s12 = int_to_ptr.vmem [resolvable:$true] %s93_s12 }
  0x6a   :  { %s123_s28 = sshll.u32 %s8624_s6, 4  ;;  %s8463_s3 = scalar_lea.vmem %s94_s12, 1024  ;;  %s124_s28 = int_to_ptr.vmem [resolvable:$true] %s123_s28 }
  0x6b   :  { %p8464_p12 = scmp.ne.s32.totalorder %s94_s12, %s8463_s3  ;;  %p8468_p13 = scmp.lt.s32.totalorder %s94_s12, %s94_s12 }
  0x6c   :  { %p8469_p0 = scmp.lt.s32.totalorder %s8463_s3, %s8463_s3 }
  0x6e   :  { %75 = dma.hbm_to_vmem [thread:$0]  %s10207_s7, 4096, %s70_s1, [#allocation7], %s8615_s2, %s8615_s2, %s8616_s29  }
  0x6f   :  { %p8470_p1 = por %p8469_p0, %p8468_p13 }
  0x71   :  { %p8471_p2 = pnand %p8470_p1, %p8464_p12 }
  0x73   :  { %8474 = shalt.err (!%p8471_p2)
}
  0x74   :  { %s10208_s5 = sld [smem:[#allocation41_spill]]  ;;  %s8483_s1 = scalar_lea.vmem %s124_s28, 512 }
  0x75   :  { %p8484_p3 = scmp.ne.s32.totalorder %s124_s28, %s8483_s1  ;;  %p8488_p4 = scmp.lt.s32.totalorder %s124_s28, %s124_s28 }
  0x76   :  { %p8489_p5 = scmp.lt.s32.totalorder %s8483_s1, %s8483_s1 }
  0x78   :  { %p8490_p6 = por %p8489_p5, %p8488_p4 }
  0x7a   :  { %99 = dma.hbm_to_vmem [thread:$0]  %s10208_s5, 1024, %s94_s12, [#allocation10], %s8615_s2, %s8615_s2, %s8616_s29  }
  0x7b   :  { %p8491_p7 = pnand %p8490_p6, %p8484_p3 }
  0x7d   :  { %8494 = shalt.err (!%p8491_p7)
}
  0x7e   :  { %129 = dma.hbm_to_vmem [thread:$0]  %s10177_s10, 512, %s124_s28, [#allocation13], %s8615_s2, %s8615_s2, %s8616_s29  }
  0x7f   :  { %s8625_s26 = smov [#allocation17]   ;;  %s8626_s27 = smov [#allocation20]  }
  0x80   :  { %s152_s17 = sshll.u32 %s8625_s26, 4  ;;  %s172_s0 = sshll.u32 %s8626_s27, 4  ;;  %s153_s17 = int_to_ptr.vmem [resolvable:$true] %s152_s17  ;;  %s173_s0 = int_to_ptr.vmem [resolvable:$true] %s172_s0 }
  0x81   :  { %s8503_s7 = scalar_lea.vmem %s153_s17, 16  ;;  %s8507_s30 = scalar_lea.vmem %s153_s17, 32 }
  0x82   :  { %p8504_p8 = scmp.ne.s32.totalorder %s153_s17, %s8503_s7  ;;  %p8508_p9 = scmp.lt.s32.totalorder %s153_s17, %s153_s17 }
  0x83   :  { %p8509_p10 = scmp.lt.s32.totalorder %s8507_s30, %s8503_s7 }
  0x85   :  { %p8510_p11 = por %p8509_p10, %p8508_p9 }
  0x87   :  { %p8511_p12 = pnand %p8510_p11, %p8504_p8 }
  0x89   :  { %8514 = shalt.err (!%p8511_p12)
}
  0x8a   :  { %155 = dma.hbm_to_vmem [thread:$0]  %s10181_s14, 16, %s153_s17, [#allocation16]  }
  0x8b   :  { %s8523_s3 = scalar_lea.vmem %s173_s0, 16  ;;  %s8527_s10 = scalar_lea.vmem %s173_s0, 32 }
  0x8c   :  { %p8524_p13 = scmp.ne.s32.totalorder %s173_s0, %s8523_s3  ;;  %p8528_p0 = scmp.lt.s32.totalorder %s173_s0, %s173_s0 }
  0x8d   :  { %p8529_p1 = scmp.lt.s32.totalorder %s8527_s10, %s8523_s3 }
  0x8f   :  { %p8530_p2 = por %p8529_p1, %p8528_p0 }
  0x91   :  { %p8531_p3 = pnand %p8530_p2, %p8524_p13 }
  0x93   :  { %8534 = shalt.err (!%p8531_p3)
}
  0x94   :  { %175 = dma.hbm_to_vmem [thread:$0]  %s10183_s16, 16, %s173_s0, [#allocation19]  }
  0x95   :  { %s8627_s8 = smov [#allocation23]   ;;  %s8628_s1 = smov [#allocation24]  }
  0x96   :  { %s191_s5 = sshll.u32 %s8627_s8, 4  ;;  %s204_s15 = sshll.u32 %s8628_s1, 4  ;;  %s192_s5 = int_to_ptr.vmem [resolvable:$true] %s191_s5  ;;  %s205_s15 = int_to_ptr.vmem [resolvable:$true] %s204_s15 }
  0x97   :  { %s8543_s4 = scalar_lea.vmem %s192_s5, 512  ;;  %p8548_p5 = scmp.lt.s32.totalorder %s192_s5, %s192_s5 }
  0x98   :  { %p8544_p4 = scmp.ne.s32.totalorder %s192_s5, %s8543_s4  ;;  %p8549_p6 = scmp.lt.s32.totalorder %s8543_s4, %s8543_s4 }
  0x9a   :  { %p8550_p7 = por %p8549_p6, %p8548_p5 }
  0x9c   :  { %p8551_p8 = pnand %p8550_p7, %p8544_p4 }
  0x9e   :  { %8554 = shalt.err (!%p8551_p8)
}
  0x9f   :  { %197 = dma.hbm_to_vmem [thread:$0]  %s10185_s18, 512, %s192_s5, [#allocation22], %s8615_s2, %s8615_s2, %s8616_s29  }
  0xa0   :  { %s8563_s16 = scalar_lea.vmem %s205_s15, 16  ;;  %s8567_s17 = scalar_lea.vmem %s205_s15, 32 }
  0xa1   :  { %p8564_p9 = scmp.ne.s32.totalorder %s205_s15, %s8563_s16  ;;  %p8568_p10 = scmp.lt.s32.totalorder %s205_s15, %s205_s15 }
  0xa2   :  { %p8569_p11 = scmp.lt.s32.totalorder %s8567_s17, %s8563_s16 }
  0xa4   :  { %p8570_p12 = por %p8569_p11, %p8568_p10 }
  0xa6   :  { %p8571_p13 = pnand %p8570_p12, %p8564_p9 }
  0xa8   :  { %8574 = shalt.err (!%p8571_p13)
}
  0xa9   :  { %207 = dma.hbm_to_vmem [thread:$0]  %s10186_s19, 16, %s205_s15, [#allocation25]  }
  0xaa   :  { %8595 = dma.done.wait [#allocation4], 1024  }
  0xab   :  { %8596 = vsyncadd [#allocation4], 4294966272 }
  0xac   :  { %8597 = dma.done.wait [#allocation7], 5120  }
  0xad   :  { %8598 = vsyncadd [#allocation7], 4294962176 }
  0xae   :  { %8599 = dma.done.wait [#allocation10], 2048  }
  0xaf   :  { %8600 = vsyncadd [#allocation10], 4294965248 }
  0xb0   :  { %8601 = dma.done.wait [#allocation13], 1024  }
  0xb1   :  { %8602 = vsyncadd [#allocation13], 4294966272 }
  0xb2   :  { %8603 = dma.done.wait [#allocation16], 528  }
  0xb3   :  { %8604 = vsyncadd [#allocation16], 4294966768 }
  0xb4   :  { %8605 = dma.done.wait [#allocation19], 32  }
  0xb5   :  { %8606 = vsyncadd [#allocation19], 4294967264 }
  0xb6   :  { %8607 = dma.done.wait [#allocation22], 528  }
  0xb7   :  { %8608 = vsyncadd [#allocation22], 4294966768 }
  0xb8   :  { %8609 = dma.done.wait [#allocation25], 16  }
  0xb9   :  { %8610 = vsyncadd [#allocation25], 4294967280  ;;  %s10209_s30 = sld [smem:[#allocation42_spill]]  ;;  %v270_v3 = vld [vmem:[#allocation9 + $0x20] sm:$0xff]  ;;  %vm325_vm0 = vcmask 261120   ;;  %v271_v7 = vld [vmem:[#allocation9 + $0x28] sm:$0xff] }
  0xba   :  { %s10210_s10 = sld [smem:[#allocation36_spill]]  ;;  %v272_v9 = vld [vmem:[#allocation9 + $0x30] sm:$0xff]  ;;  %v458_v12 = vld [vmem:[#allocation12 + $0x18] sm:$0xff]  ;;  %v282_v17 = vld [vmem:[#allocation3] sm:$0xff]  ;;  %vm8630_vm1 = vmmov 0   ;;  %vm863_vm2 = vcmask 64512  }
  0xbb   :  { %v273_v15 = vld [vmem:[#allocation9 + $0x38] sm:$0xff]  ;;  %v290_v18 = vld [vmem:[#allocation11] sm:$0xff]  ;;  %v457_v20 = vld [vmem:[#allocation12 + $0x10] sm:$0xff]  ;;  %s10211_s8 = sld [smem:[#allocation43_spill]]  ;;  %s8632_s1 = smov 112   ;;  %vm3544_vm3 = vcmask 130112  }
  0xbc   :  { %v266_v19 = vld [vmem:[#allocation9] sm:$0xff]  ;;  %v267_v23 = vld [vmem:[#allocation9 + $0x8] sm:$0xff]  ;;  %v298_v26 = vadd.f32 %v290_v18, %v282_v17  ;;  %v284_v31 = vld [vmem:[#allocation3 + $0x10] sm:$0xff]  ;;  %s8633_s15 = smov 104   ;;  %s8634_s4 = smov 16   ;;  %vm4921_vm4 = vcmask 195712  }
  0xbd   :  { %v456_v25 = vld [vmem:[#allocation12 + $0x8] sm:$0xff]  ;;  %v292_v32 = vld [vmem:[#allocation11 + $0x10] sm:$0xff]  ;;  %v455_v34 = vld [vmem:[#allocation12] sm:$0xff]  ;;  %s8635_s14 = smov 24   ;;  %vm6298_vm5 = vcmask 261312   ;;  %vm6903_vm6 = vcmask 523264  }
  0xbe   :  { %v283_v27 = vld [vmem:[#allocation3 + $0x8] sm:$0xff]  ;;  %v268_v33 = vld [vmem:[#allocation9 + $0x10] sm:$0xff]  ;;  %v269_v37 = vld [vmem:[#allocation9 + $0x18] sm:$0xff]  ;;  %v300_v39 = vadd.f32 %v292_v32, %v284_v31 }
  0xbf   :  { %v317_v0 = vld [vmem:[%s10209_s30 + $0x18] sm:$0xff]  ;;  %v316_v1 = vld [vmem:[%s10209_s30 + $0x10] sm:$0xff]  ;;  %v315_v4 = vld [vmem:[%s10209_s30 + $0x8] sm:$0xff] }
  0xc0   :  { %8015 = vmatprep.subr.mxu1 %v317_v0  ;;  %v262_v2 = vld [vmem:[%s10210_s10 + $0x20] sm:$0xff]  ;;  %7567 = vmatprep.subr.mxu0 %v317_v0  ;;  %v263_v6 = vld [vmem:[%s10210_s10 + $0x28] sm:$0xff]  ;;  %v264_v8 = vld [vmem:[%s10210_s10 + $0x30] sm:$0xff] }
  0xc1   :  { %8019 = vmatpush3.msra.mxu1 %v317_v0  ;;  %v8843_v5 = vadd.f32 %v270_v3, %v262_v2  ;;  %7568 = vmatpush3.msra.mxu0 %v317_v0  ;;  %v314_v10 = vld [vmem:[%s10209_s30] sm:$0xff]  ;;  %v8856_v11 = vadd.f32 %v271_v7, %v263_v6  ;;  %v8858_v13 = vadd.f32 %v272_v9, %v264_v8  ;;  %v265_v14 = vld [vmem:[%s10210_s10 + $0x38] sm:$0xff]  ;;  %v259_v22 = vld [vmem:[%s10210_s10 + $0x8] sm:$0xff]  ;;  %v8629_v0 = vmov 0.0  }
  0xc2   :  { %8016 = vmatprep.subr.mxu1 %v316_v1  ;;  %7569 = vmatprep.subr.mxu0 %v316_v1  ;;  %v258_v16 = vld [vmem:[%s10210_s10] sm:$0xff]  ;;  %v8873_v24 = vadd.f32 %v273_v15, %v265_v14  ;;  %v291_v28 = vld [vmem:[#allocation11 + $0x8] sm:$0xff]  ;;  %v260_v29 = vld [vmem:[%s10210_s10 + $0x10] sm:$0xff]  ;;  %v8880_v30 = vadd.f32 %v267_v23, %v259_v22 }
  0xc3   :  { %8020 = vmatpush3.msra.mxu1 %v316_v1  ;;  %7581 = vmatprep.mubr.msk.f32.mxu1 %vm325_vm0, %v8843_v5  ;;  %v8866_v21 = vadd.f32 %v266_v19, %v258_v16  ;;  %v8884_v35 = vadd.f32 %v268_v33, %v260_v29  ;;  %v261_v36 = vld [vmem:[%s10210_s10 + $0x18] sm:$0xff]  ;;  %v299_v38 = vadd.f32 %v291_v28, %v283_v27  ;;  %v286_v42 = vld [vmem:[#allocation3 + $0x20] sm:$0xff]  ;;  %v287_v47 = vld [vmem:[#allocation3 + $0x28] sm:$0xff] }
  0xc4   :  { %8017 = vmatprep.subr.mxu1 %v315_v4  ;;  %7570 = vmatpush3.msra.mxu0 %v316_v1  ;;  %v285_v40 = vld [vmem:[#allocation3 + $0x18] sm:$0xff]  ;;  %v294_v43 = vld [vmem:[#allocation11 + $0x20] sm:$0xff]  ;;  %v8894_v44 = vadd.f32 %v269_v37, %v261_v36  ;;  %v295_v48 = vld [vmem:[#allocation11 + $0x28] sm:$0xff] }
  0xc5   :  { %8021 = vmatpush3.msra.mxu1 %v315_v4  ;;  %7571 = vmatprep.subr.mxu0 %v315_v4  ;;  %v293_v41 = vld [vmem:[#allocation11 + $0x18] sm:$0xff]  ;;  %v302_v46 = vadd.f32 %v294_v43, %v286_v42  ;;  %v288_v49 = vld [vmem:[#allocation3 + $0x30] sm:$0xff]  ;;  %v303_v51 = vadd.f32 %v295_v48, %v287_v47  ;;  %v596_v58 = vld [vmem:[#allocation14 + $0x8] sm:$0xff] }
  0xc6   :  { %8018 = vmatprep.subr.mxu1 %v314_v10  ;;  %7572 = vmatpush3.msra.mxu0 %v315_v4  ;;  %v301_v45 = vadd.f32 %v293_v41, %v285_v40  ;;  %v296_v50 = vld [vmem:[#allocation11 + $0x30] sm:$0xff]  ;;  %v289_v53 = vld [vmem:[#allocation3 + $0x38] sm:$0xff]  ;;  %v595_v59 = vld [vmem:[#allocation14] sm:$0xff] }
  0xc7   :  { %8022 = vmatpush3.msra.mxu1 %v314_v10  ;;  %7573 = vmatprep.subr.mxu0 %v314_v10  ;;  %v304_v52 = vadd.f32 %v296_v50, %v288_v49  ;;  %v297_v54 = vld [vmem:[#allocation11 + $0x38] sm:$0xff]  ;;  %v597_v57 = vld [vmem:[#allocation14 + $0x10] sm:$0xff]  ;;  %v306_v60 = vld [vmem:[#allocation6] sm:$0xff] }
  0xc8   :  { %7582 = vmatmul.mubr.msk.f32.vlgmr.msra.gmra.mxu1 %vm325_vm0, %v8856_v11  ;;  %7587 = vmatprep.subr.mxu1 %v458_v12  ;;  %v305_v55 = vadd.f32 %v297_v54, %v289_v53  ;;  %v598_v56 = vld [vmem:[#allocation14 + $0x18] sm:$0xff]  ;;  %v307_v61 = vld [vmem:[#allocation6 + $0x8] sm:$0xff]  ;;  %v308_v62 = vld [vmem:[#allocation6 + $0x10] sm:$0xff] }
  0xc9   :  { %7588 = vmatpush3.msra.mxu1 %v458_v12  ;;  %7584 = vmatprep.mubr.msk.f32.mxu1 %vm325_vm0, %v8858_v13  ;;  %v309_v63 = vld [vmem:[#allocation6 + $0x18] sm:$0xff]  ;;  %v310_v1 = vld [vmem:[#allocation6 + $0x20] sm:$0xff]  ;;  %v311_v2 = vld [vmem:[#allocation6 + $0x28] sm:$0xff] }
  0xca   :  { %7589 = vmatprep.subr.mxu1 %v457_v20  ;;  %7574 = vmatpush3.msra.mxu0 %v314_v10  ;;  %v312_v3 = vld [vmem:[#allocation6 + $0x30] sm:$0xff]  ;;  %v313_v4 = vld [vmem:[#allocation6 + $0x38] sm:$0xff]  ;;  %v7216_v14 = vld [vmem:[%s10176_s9] ss:$0 sm:$0xff] }
  0xcb   :  { %7590 = vmatpush3.msra.mxu1 %v457_v20  ;;  %7575 = vmatprep.mubr.msk.f32.mxu0 %vm325_vm0, %v8866_v21  ;;  %v7207_v19 = vld [vmem:[%s10211_s8] ss:$0 sm:$0xff] }
  0xcc   :  { %7585 = vmatmul.mubr.msk.f32.gmra.mxu1 %vm325_vm0, %v8873_v24  ;;  %7591 = vmatprep.subr.mxu1 %v456_v25  ;;  %v9018_v47 = vld [vmem:[%s10178_s11] ss:$0 sm:$0xff]  ;;  %s8631_s11 = smov 120  }
  0xcd   :  { %7592 = vmatpush3.msra.mxu1 %v456_v25  ;;  %7595 = vmatprep.mubr.msk.f32.mxu1 %vm325_vm0, %v298_v26 }
  0xce   :  { %7593 = vmatprep.subr.mxu1 %v455_v34  ;;  %7576 = vmatmul.mubr.msk.f32.vlgmr.msra.gmra.mxu0 %vm325_vm0, %v8880_v30 }
  0xcf   :  { %7594 = vmatpush3.msra.mxu1 %v455_v34  ;;  %7578 = vmatprep.mubr.msk.f32.mxu0 %vm325_vm0, %v8884_v35 }
  0xd0   :  { %7596 = vmatmul.mubr.msk.f32.vlgmr.msra.gmra.mxu1 %vm325_vm0, %v299_v38  ;;  %7607 = vmatprep.subr.mxu0 %v598_v56 }
  0xd1   :  { %7598 = vmatprep.mubr.msk.f32.mxu1 %vm325_vm0, %v300_v39  ;;  %7608 = vmatpush3.msra.mxu0 %v598_v56 }
  0xd2   :  { %7579 = vmatmul.mubr.msk.f32.gmra.mxu0 %vm325_vm0, %v8894_v44  ;;  %7609 = vmatprep.subr.mxu0 %v597_v57 }
  0xd3   :  { %7610 = vmatpush3.msra.mxu0 %v597_v57  ;;  %7615 = vmatprep.mubr.msk.f32.mxu0 %vm325_vm0, %v306_v60 }
  0xd4   :  { %7599 = vmatmul.mubr.msk.f32.gmra.mxu1 %vm325_vm0, %v301_v45  ;;  %7611 = vmatprep.subr.mxu0 %v596_v58 }
  0xd5   :  { %7601 = vmatprep.mubr.msk.f32.mxu1 %vm325_vm0, %v302_v46  ;;  %7612 = vmatpush3.msra.mxu0 %v596_v58 }
  0xd6   :  { %7613 = vmatprep.subr.mxu0 %v595_v59  ;;  %7627 = vmatprep.subr.mxu1 %v8629_v0 }
  0xd7   :  { %7614 = vmatpush3.msra.mxu0 %v595_v59 }
  0xd8   :  { %7602 = vmatmul.mubr.msk.f32.gmra.mxu1 %vm325_vm0, %v303_v51  ;;  %7616 = vmatmul.mubr.msk.f32.vlgmr.msra.gmra.mxu0 %vm325_vm0, %v307_v61 }
  0xd9   :  { %7604 = vmatprep.mubr.msk.f32.mxu1 %vm325_vm0, %v304_v52  ;;  %7618 = vmatprep.mubr.msk.f32.mxu0 %vm325_vm0, %v308_v62  ;;  %v735_v62 = vld [vmem:[#allocation8] sm:$0xff] }
  0xda   :  { %7647 = vmatprep.subr.mxu0 %v8629_v0 }
  0xdc   :  { %7605 = vmatmul.mubr.msk.f32.gmra.mxu1 %vm325_vm0, %v305_v55  ;;  %7619 = vmatmul.mubr.msk.f32.gmra.mxu0 %vm325_vm0, %v309_v63  ;;  %v767_v63 = vmax.f32 %v735_v62, 1e-06 }
  0xdd   :  { %7621 = vmatprep.mubr.msk.f32.mxu0 %vm325_vm0, %v310_v1  ;;  %7629 = vmatprep.mubr.msk.f32.mxu1 %vm8630_vm1, %v8629_v0  ;;  %v739_v1 = vld [vmem:[#allocation8 + $0x20] sm:$0xff] }
  0xde   :  { %8047 = vlog2.f32 %v767_v63 }
  0xe0   :  { %7622 = vmatmul.mubr.msk.f32.gmra.mxu0 %vm325_vm0, %v311_v2  ;;  %v771_v2 = vmax.f32 %v739_v1, 1e-06 }
  0xe1   :  { %7624 = vmatprep.mubr.msk.f32.mxu0 %vm325_vm0, %v312_v3  ;;  %v751_v3 = vld [vmem:[#allocation8 + $0x80] sm:$0xff] }
  0xe2   :  { %8049 = vlog2.f32 %v771_v2 }
  0xe4   :  { %7625 = vmatmul.mubr.msk.f32.gmra.mxu0 %vm325_vm0, %v313_v4  ;;  %v743_v4 = vld [vmem:[#allocation8 + $0x40] sm:$0xff] }
  0xe5   :  { %7649 = vmatprep.mubr.msk.f32.mxu0 %vm8630_vm1, %v8629_v0 }
 0x188   :  { %v7583_v6 = vpop.f32.mrf.mxu1 }
 0x189   :  { %v8997_v45 = vadd.f32 %v7583_v6, %v7207_v19  ;;  %v783_v6 = vmax.f32 %v751_v3, 1e-06 }
 0x18a   :  { %v436_v7 = vpop.f32.mrf.mxu1 }
 0x18b   :  { %v8955_v34 = vadd.f32 %v7207_v19, %v436_v7  ;;  %v775_v7 = vmax.f32 %v743_v4, 1e-06  ;;  %8051 = vlog2.f32 %v783_v6 }
 0x18c   :  { %v7586_v8 = vpop.f32.mrf.mxu1 }
 0x18d   :  { %v9008_v46 = vadd.f32 %v7586_v8, %v7207_v19  ;;  %v759_v8 = vld [vmem:[#allocation8 + $0xc0] sm:$0xff]  ;;  %8053 = vlog2.f32 %v775_v7 }
 0x18e   :  { %v446_v9 = vpop.f32.mrf.mxu1  ;;  %v7577_v10 = vpop.f32.mrf.mxu0 }
 0x18f   :  { %v8942_v27 = vadd.f32 %v7577_v10, %v7207_v19  ;;  %v8977_v41 = vadd.f32 %v7207_v19, %v446_v9  ;;  %v747_v9 = vld [vmem:[#allocation8 + $0x60] sm:$0xff]  ;;  %v791_v10 = vmax.f32 %v759_v8, 1e-06 }
 0x190   :  { %v7597_v12 = vpop.f32.mrf.mxu1  ;;  %v416_v17 = vpop.f32.mrf.mxu0 }
 0x191   :  { %v8931_v20 = vadd.f32 %v7207_v19, %v416_v17  ;;  %v8934_v23 = vadd.f32 %v7597_v12, %v7216_v14  ;;  %v779_v12 = vmax.f32 %v747_v9, 1e-06  ;;  %8055 = vlog2.f32 %v791_v10 }
 0x192   :  { %v556_v15 = vpop.f32.mrf.mxu1  ;;  %v7580_v25 = vpop.f32.mrf.mxu0 }
 0x193   :  { %v8924_v16 = vadd.f32 %v7216_v14, %v556_v15  ;;  %v8979_v42 = vadd.f32 %v7580_v25, %v7207_v19  ;;  %8057 = vlog2.f32 %v779_v12 }
 0x194   :  { %v7600_v18 = vpop.f32.mrf.mxu1  ;;  %v426_v32 = vpop.f32.mrf.mxu0 }
 0x195   :  { %7628 = vmatpush3.xpose.msk.msra.mxu1 %vm863_vm2, %v8924_v16  ;;  %v8957_v36 = vadd.f32 %v7207_v19, %v426_v32  ;;  %v8962_v38 = vadd.f32 %v7600_v18, %v7216_v14 }
 0x196   :  { %v566_v22 = vpop.f32.mrf.mxu1  ;;  %7632 = vmatprep.subr.mxu1 %v8629_v0 }
 0x197   :  { %v8945_v29 = vadd.f32 %v7216_v14, %v566_v22 }
 0x198   :  { %v7603_v26 = vpop.f32.mrf.mxu1  ;;  %7630 = vmatmul.mubr.msk.f32.vlgmr.msra.gmra.mxu1 %vm863_vm2, %v8931_v20  ;;  %v7617_v48 = vpop.f32.mrf.mxu0 }
 0x199   :  { %7633 = vmatpush3.xpose.msk.msra.mxu1 %vm863_vm2, %v8934_v23  ;;  %7634 = vmatprep.mubr.msk.f32.mxu1 %vm8630_vm1, %v8629_v0  ;;  %v8971_v40 = vadd.f32 %v7603_v26, %v7216_v14  ;;  %v9021_v49 = vadd.f32 %v7617_v48, %v9018_v47 }
 0x19a   :  { %v576_v28 = vpop.f32.mrf.mxu1  ;;  %7637 = vmatprep.subr.mxu1 %v8629_v0  ;;  %v696_v50 = vpop.f32.mrf.mxu0 }
 0x19b   :  { %v8947_v31 = vadd.f32 %v7216_v14, %v576_v28  ;;  %v9024_v51 = vadd.f32 %v9018_v47, %v696_v50 }
 0x19c   :  { %v7606_v33 = vpop.f32.mrf.mxu1  ;;  %7635 = vmatmul.mubr.msk.f32.vlgmr.msra.gmra.mxu1 %vm863_vm2, %v8942_v27  ;;  %v7620_v52 = vpop.f32.mrf.mxu0 }
 0x19d   :  { %7638 = vmatpush3.xpose.msk.msra.mxu1 %vm863_vm2, %v8945_v29  ;;  %7648 = vmatpush3.xpose.msk.msra.mxu0 %vm863_vm2, %v8947_v31  ;;  %v8991_v43 = vadd.f32 %v7606_v33, %v7216_v14  ;;  %v9029_v53 = vadd.f32 %v7620_v52, %v9018_v47 }
 0x19e   :  { %v586_v37 = vpop.f32.mrf.mxu1  ;;  %7639 = vmatprep.mubr.msk.f32.mxu1 %vm8630_vm1, %v8629_v0  ;;  %7642 = vmatprep.subr.mxu1 %v8629_v0  ;;  %v706_v54 = vpop.f32.mrf.mxu0 }
 0x19f   :  { %v8964_v39 = vadd.f32 %v7216_v14, %v586_v37  ;;  %7657 = vmatprep.subr.mxu0 %v8629_v0  ;;  %v9034_v55 = vadd.f32 %v9018_v47, %v706_v54  ;;  %v8048_v14 = vpop.eup %8047 }
 0x1a0   :  { %7640 = vmatmul.mubr.msk.f32.vlgmr.msra.gmra.mxu1 %vm863_vm2, %v8957_v36  ;;  %7650 = vmatmul.mubr.msk.f32.vlgmr.msra.gmra.mxu0 %vm863_vm2, %v8955_v34  ;;  %v7623_v56 = vpop.f32.mrf.mxu0  ;;  %v800_v15 = vmul.f32 0.6931472, %v8048_v14  ;;  %v8050_v17 = vpop.eup %8049 }
 0x1a1   :  { %7643 = vmatpush3.xpose.msk.msra.mxu1 %vm863_vm2, %v8962_v38  ;;  %7658 = vmatpush3.xpose.msk.msra.mxu0 %vm863_vm2, %v8964_v39  ;;  %v9037_v57 = vadd.f32 %v7623_v56, %v9018_v47  ;;  %v8052_v25 = vpop.eup %8051  ;;  %v808_v28 = vmul.f32 0.6931472, %v8050_v17 }
 0x1a2   :  { %7644 = vmatprep.mubr.msk.f32.mxu1 %vm8630_vm1, %v8629_v0  ;;  %7659 = vmatprep.mubr.msk.f32.mxu0 %vm8630_vm1, %v8629_v0  ;;  %v716_v58 = vpop.f32.mrf.mxu0  ;;  %v8054_v32 = vpop.eup %8053 }
 0x1a3   :  { %7652 = vmatprep.subr.mxu1 %v8629_v0  ;;  %7667 = vmatprep.subr.mxu0 %v8629_v0  ;;  %v9040_v59 = vadd.f32 %v9018_v47, %v716_v58  ;;  %v8056_v54 = vpop.eup %8055  ;;  %v832_v58 = vmul.f32 0.6931472, %v8052_v25 }
 0x1a4   :  { %7645 = vmatmul.mubr.msk.f32.vlgmr.msra.gmra.mxu1 %vm863_vm2, %v8979_v42  ;;  %7660 = vmatmul.mubr.msk.f32.vlgmr.msra.gmra.mxu0 %vm863_vm2, %v8977_v41  ;;  %v7626_v60 = vpop.f32.mrf.mxu0  ;;  %v8058_v62 = vpop.eup %8057  ;;  %v848_v10 = vmul.f32 0.6931472, %v8056_v54 }
 0x1a5   :  { %7653 = vmatpush3.xpose.msk.msra.mxu1 %vm863_vm2, %v8971_v40  ;;  %7654 = vmatprep.mubr.msk.f32.mxu1 %vm8630_vm1, %v8629_v0  ;;  %v9043_v61 = vadd.f32 %v7626_v60, %v9018_v47  ;;  %v816_v60 = vmul.f32 0.6931472, %v8054_v32  ;;  %v824_v12 = vmul.f32 0.6931472, %v8058_v62  ;;  %v755_v62 = vld [vmem:[#allocation8 + $0xa0] sm:$0xff] }
 0x1a6   :  { %7662 = vmatprep.subr.mxu1 %v8629_v0  ;;  %7669 = vmatprep.mubr.msk.f32.mxu0 %vm8630_vm1, %v8629_v0  ;;  %v9047_v37 = vpop.f32.mrf.mxu0 }
 0x1a7   :  { %7668 = vmatpush3.msra.mxu0 %v9024_v51 }
 0x1a8   :  { %7655 = vmatmul.mubr.msk.f32.vlgmr.msra.gmra.mxu1 %vm863_vm2, %v8997_v45  ;;  %7677 = vmatprep.subr.mxu0 %v8629_v0 }
 0x1a9   :  { %7663 = vmatpush3.xpose.msk.msra.mxu1 %vm863_vm2, %v8991_v43  ;;  %7664 = vmatprep.mubr.msk.f32.mxu1 %vm8630_vm1, %v8629_v0 }
 0x1aa   :  { %7672 = vmatprep.subr.mxu1 %v8629_v0 }
 0x1ac   :  { %7665 = vmatmul.mubr.msk.f32.vlgmr.msra.gmra.mxu1 %vm863_vm2, %v9008_v46 }
 0x1ad   :  { %7674 = vmatprep.mubr.msk.f32.mxu1 %vm8630_vm1, %v8629_v0  ;;  %7673 = vmatpush3.msra.mxu1 %v9021_v49 }
 0x1ae   :  { %7682 = vmatprep.subr.mxu1 %v8629_v0 }
 0x258   :  { %v936_v18 = vpop.f32.mrf.mxu1 }
 0x259   :  { %v1472_v19 = vmul.f32 0.35355338, %v936_v18 }
 0x25a   :  { %v7631_v22 = vpop.f32.mrf.mxu1 }
 0x25b   :  { %v9045_v26 = vadd.f32 %v1472_v19, %v800_v15 }
 0x25c   :  { %v1012_v33 = vpop.f32.mrf.mxu1 }
 0x25d   :  { %v1473_v48 = vmul.f32 0.35355338, %v1012_v33  ;;  %v1488_v50 = vsel %vm863_vm2, %v9045_v26, -inf }
 0x25e   :  { %1489 = vmax.xlane.f32.xlu0 %v1488_v50  ;;  %v7636_v52 = vpop.f32.mrf.mxu1 }
 0x25f   :  { %v9051_v56 = vadd.f32 %v1473_v48, %v808_v28 }
 0x260   :  { %v1088_v63 = vpop.f32.mrf.mxu1  ;;  %v1240_v1 = vpop.f32.mrf.mxu0 }
 0x261   :  { %v1474_v2 = vmul.f32 0.35355338, %v1088_v63  ;;  %v1476_v3 = vmul.f32 0.35355338, %v1240_v1  ;;  %v1491_v4 = vsel %vm863_vm2, %v9051_v56, -inf  ;;  %v763_v1 = vld [vmem:[#allocation8 + $0xe0] sm:$0xff] }
 0x262   :  { %v7651_v6 = vpop.f32.mrf.mxu0  ;;  %1492 = vmax.xlane.f32.xlu0 %v1491_v4  ;;  %v7641_v7 = vpop.f32.mrf.mxu1  ;;  %v787_v63 = vmax.f32 %v755_v62, 1e-06 }
 0x263   :  { %v1484_v8 = vadd.f32 %v1476_v3, %v832_v58  ;;  %v1482_v9 = vadd.f32 %v1474_v2, %v816_v60  ;;  %v795_v2 = vmax.f32 %v763_v1, 1e-06 }
 0x264   :  { %v1164_v14 = vpop.f32.mrf.mxu1  ;;  %v1392_v15 = vpop.f32.mrf.mxu0  ;;  %8059 = vlog2.f32 %v787_v63 }
 0x265   :  { %v1475_v17 = vmul.f32 0.35355338, %v1164_v14  ;;  %v1478_v18 = vmul.f32 0.35355338, %v1392_v15  ;;  %v1500_v19 = vsel %vm863_vm2, %v1484_v8, -inf  ;;  %v1494_v22 = vsel %vm863_vm2, %v1482_v9, -inf }
 0x266   :  { %v7661_v25 = vpop.f32.mrf.mxu0  ;;  %1501 = vmax.xlane.f32.xlu0 %v1500_v19  ;;  %1495 = vmax.xlane.f32.xlu1 %v1494_v22  ;;  %v7646_v28 = vpop.f32.mrf.mxu1  ;;  %8061 = vlog2.f32 %v795_v2 }
 0x267   :  { %v1486_v32 = vadd.f32 %v1478_v18, %v848_v10  ;;  %v1483_v33 = vadd.f32 %v1475_v17, %v824_v12 }
 0x268   :  { %v1316_v48 = vpop.f32.mrf.mxu1 }
 0x269   :  { %v1506_v50 = vsel %vm863_vm2, %v1486_v32, -inf  ;;  %v1497_v52 = vsel %vm863_vm2, %v1483_v33, -inf  ;;  %v1477_v4 = vmul.f32 0.35355338, %v1316_v48 }
 0x26a   :  { %1507 = vmax.xlane.f32.xlu0 %v1506_v50  ;;  %1498 = vmax.xlane.f32.xlu1 %v1497_v52  ;;  %v7656_v54 = vpop.f32.mrf.mxu1 }
 0x26c   :  { %v1468_v58 = vpop.f32.mrf.mxu1 }
 0x26d   :  { %v1479_v10 = vmul.f32 0.35355338, %v1468_v58 }
 0x26e   :  { %v7666_v60 = vpop.f32.mrf.mxu1 }
 0x271   :  { %v8060_v3 = vpop.eup %8059 }
 0x272   :  { %v840_v6 = vmul.f32 0.6931472, %v8060_v3 }
 0x273   :  { %v8062_v7 = vpop.eup %8061 }
 0x274   :  { %v1485_v12 = vadd.f32 %v1477_v4, %v840_v6  ;;  %v856_v14 = vmul.f32 0.6931472, %v8062_v7 }
 0x276   :  { %v1503_v15 = vsel %vm863_vm2, %v1485_v12, -inf  ;;  %v9070_v17 = vadd.f32 %v1479_v10, %v856_v14 }
 0x278   :  { %v1509_v18 = vsel %vm863_vm2, %v9070_v17, -inf }
 0x27b   :  { %2248 = vrot.lane.b32.xlu1 %v8934_v23, %s8631_s11 }
 0x27f   :  { %2168 = vrot.lane.b32.xlu1 %v8931_v20, %s8631_s11 }
 0x280   :  { %2170 = vrot.lane.b32.xlu0 %v8924_v16, %s8631_s11 }
 0x283   :  { %2246 = vrot.lane.b32.xlu1 %v8942_v27, %s8631_s11 }
 0x284   :  { %2326 = vrot.lane.b32.xlu0 %v8945_v29, %s8631_s11 }
 0x2a7   :  { %1504 = vmax.xlane.f32.xlu1 %v1503_v15 }
 0x2ab   :  { %1510 = vmax.xlane.f32.xlu1 %v1509_v18 }
 0x2bc   :  { %2404 = vrot.lane.b32.xlu1 %v8962_v38, %s8631_s11 }
 0x2e7   :  { %v1490_v19 = vpop.xlane.xlu0 %1489 }
 0x2e8   :  { %v1512_v22 = vsub.f32 %v9045_v26, %v1490_v19 }
 0x2ea   :  { %v1520_v25 = vmul.f32 1.442695, %v1512_v22 }
 0x2eb   :  { %v1493_v28 = vpop.xlane.xlu0 %1492 }
 0x2ec   :  { %8063 = vpow2.f32 %v1520_v25  ;;  %v1513_v48 = vsub.f32 %v9051_v56, %v1493_v28 }
 0x2ee   :  { %v1522_v50 = vmul.f32 1.442695, %v1513_v48 }
 0x2ef   :  { %v1502_v52 = vpop.xlane.xlu0 %1501  ;;  %v1496_v54 = vpop.xlane.xlu1 %1495 }
 0x2f0   :  { %8065 = vpow2.f32 %v1522_v50  ;;  %v1516_v58 = vsub.f32 %v1484_v8, %v1502_v52  ;;  %v1514_v60 = vsub.f32 %v1482_v9, %v1496_v54 }
 0x2f2   :  { %v1524_v62 = vmul.f32 1.442695, %v1514_v60  ;;  %v1528_v63 = vmul.f32 1.442695, %v1516_v58 }
 0x2f3   :  { %v1508_v1 = vpop.xlane.xlu0 %1507  ;;  %v1499_v2 = vpop.xlane.xlu1 %1498 }
 0x2f4   :  { %v1518_v3 = vsub.f32 %v1486_v32, %v1508_v1  ;;  %v1515_v4 = vsub.f32 %v1483_v33, %v1499_v2  ;;  %8067 = vpow2.f32 %v1524_v62 }
 0x2f5   :  { %8069 = vpow2.f32 %v1528_v63 }
 0x2f6   :  { %v1526_v6 = vmul.f32 1.442695, %v1515_v4  ;;  %v1532_v26 = vmul.f32 1.442695, %v1518_v3 }
 0x2f7   :  { %v9103_v25 = vpop.permute.xlu1 %2248 }
 0x2f8   :  { %8071 = vpow2.f32 %v1526_v6 }
 0x2f9   :  { %v8064_v7 = vpop.eup %8063  ;;  %8073 = vpow2.f32 %v1532_v26 }
 0x2fa   :  { %v1536_v56 = vsel %vm863_vm2, %v8064_v7, 0.0 }
 0x2fb   :  { %1537 = vadd.xlane.f32.xlu0 %v1536_v56  ;;  %v9107_v28 = vpop.permute.xlu1 %2168 }
 0x2fd   :  { %v9079_v10 = vpop.eup %8065 }
 0x2fe   :  { %v1539_v8 = vsel %vm863_vm2, %v9079_v10, 0.0 }
 0x2ff   :  { %1540 = vadd.xlane.f32.xlu1 %v1539_v8  ;;  %v9113_v48 = vpop.permute.xlu1 %2246 }
 0x301   :  { %v9083_v9 = vpop.eup %8067 }
 0x302   :  { %v1542_v32 = vsel %vm863_vm2, %v9083_v9, 0.0  ;;  %v9087_v33 = vpop.eup %8069 }
 0x303   :  { %1543 = vadd.xlane.f32.xlu0 %v1542_v32  ;;  %v1548_v15 = vsel %vm863_vm2, %v9087_v33, 0.0 }
 0x305   :  { %v9089_v14 = vpop.eup %8071 }
 0x306   :  { %v1545_v18 = vsel %vm863_vm2, %v9089_v14, 0.0  ;;  %v9095_v19 = vpop.eup %8073 }
 0x307   :  { %1549 = vadd.xlane.f32.xlu0 %v1548_v15  ;;  %1546 = vadd.xlane.f32.xlu1 %v1545_v18  ;;  %v1554_v22 = vsel %vm863_vm2, %v9095_v19, 0.0 }
 0x30b   :  { %1555 = vadd.xlane.f32.xlu0 %v1554_v22 }
 0x318   :  { %2402 = vrot.lane.b32.xlu1 %v8979_v42, %s8631_s11 }
 0x31c   :  { %2560 = vrot.lane.b32.xlu1 %v8971_v40, %s8631_s11 }
 0x321   :  { %2324 = vrot.lane.b32.xlu0 %v8957_v36, %s8631_s11 }
 0x325   :  { %2482 = vrot.lane.b32.xlu0 %v8947_v31, %s8631_s11 }
 0x329   :  { %2480 = vrot.lane.b32.xlu0 %v8955_v34, %s8631_s11 }
 0x32d   :  { %2638 = vrot.lane.b32.xlu0 %v8964_v39, %s8631_s11 }
 0x330   :  { %v1505_v50 = vpop.xlane.xlu1 %1504 }
 0x331   :  { %v1517_v52 = vsub.f32 %v1485_v12, %v1505_v50  ;;  %2636 = vrot.lane.b32.xlu0 %v8977_v41, %s8631_s11 }
 0x333   :  { %v1530_v54 = vmul.f32 1.442695, %v1517_v52 }
 0x334   :  { %v1511_v58 = vpop.xlane.xlu1 %1510 }
 0x335   :  { %8075 = vpow2.f32 %v1530_v54  ;;  %v1519_v60 = vsub.f32 %v9070_v17, %v1511_v58  ;;  %v2171_v17 = vpop.permute.xlu0 %2170 }
 0x337   :  { %v1534_v62 = vmul.f32 1.442695, %v1519_v60 }
 0x338   :  { %v9134_v4 = vpop.permute.xlu1 %2404 }
 0x339   :  { %8077 = vpow2.f32 %v1534_v62  ;;  %v2327_v3 = vpop.permute.xlu0 %2326 }
 0x342   :  { %v9120_v63 = vpop.eup %8075 }
 0x343   :  { %v1551_v1 = vsel %vm863_vm2, %v9120_v63, 0.0 }
 0x344   :  { %1552 = vadd.xlane.f32.xlu1 %v1551_v1  ;;  %v9156_v1 = vadd.f32 %v9018_v47, %v9047_v37 }
 0x346   :  { %v9124_v2 = vpop.eup %8077 }
 0x347   :  { %v1557_v12 = vsel %vm863_vm2, %v9124_v2, 0.0 }
 0x348   :  { %1558 = vadd.xlane.f32.xlu1 %v1557_v12 }
 0x359   :  { %2558 = vrot.lane.b32.xlu1 %v8997_v45, %s8631_s11 }
 0x35d   :  { %2716 = vrot.lane.b32.xlu1 %v8991_v43, %s8631_s11 }
 0x361   :  { %2714 = vrot.lane.b32.xlu1 %v9008_v46, %s8631_s11 }
 0x384   :  { %v1538_v6 = vpop.xlane.xlu0 %1537 }
 0x385   :  { %8079 = vrcp.f32 %v1538_v6 }
 0x388   :  { %v1541_v26 = vpop.xlane.xlu1 %1540 }
 0x389   :  { %8081 = vrcp.f32 %v1541_v26 }
 0x38c   :  { %v1544_v56 = vpop.xlane.xlu0 %1543 }
 0x38d   :  { %8083 = vrcp.f32 %v1544_v56 }
 0x390   :  { %v1550_v8 = vpop.xlane.xlu0 %1549  ;;  %v1547_v32 = vpop.xlane.xlu1 %1546 }
 0x391   :  { %8085 = vrcp.f32 %v1550_v8 }
 0x392   :  { %v8080_v15 = vpop.eup %8079  ;;  %8087 = vrcp.f32 %v1547_v32 }
 0x393   :  { %v1568_v18 = vmul.f32 %v8080_v15, %v8064_v7 }
 0x394   :  { %v1556_v22 = vpop.xlane.xlu0 %1555 }
 0x395   :  { %7670 = vmatmul.mubr.msk.f32.vlgmr.msra.gmra.mxu0 %vm863_vm2, %v1568_v18  ;;  %8089 = vrcp.f32 %v1556_v22  ;;  %v744_v18 = vld [vmem:[#allocation8 + $0x48] sm:$0xff] }
 0x396   :  { %v8082_v50 = vpop.eup %8081  ;;  %7678 = vmatpush3.msra.mxu0 %v9034_v55  ;;  %7679 = vmatprep.mubr.msk.f32.mxu0 %vm8630_vm1, %v8629_v0 }
 0x397   :  { %v1569_v52 = vmul.f32 %v8082_v50, %v9079_v10  ;;  %7687 = vmatprep.subr.mxu0 %v8629_v0 }
 0x398   :  { %v2325_v58 = vpop.permute.xlu0 %2324 }
 0x399   :  { %7675 = vmatmul.mubr.msk.f32.vlgmr.msra.gmra.mxu1 %vm863_vm2, %v1569_v52  ;;  %v776_v52 = vmax.f32 %v744_v18, 1e-06  ;;  %v740_v18 = vld [vmem:[#allocation8 + $0x28] sm:$0xff] }
 0x39a   :  { %7683 = vmatpush3.msra.mxu1 %v9029_v53  ;;  %7684 = vmatprep.mubr.msk.f32.mxu1 %vm8630_vm1, %v8629_v0  ;;  %v8084_v7 = vpop.eup %8083 }
 0x39b   :  { %7692 = vmatprep.subr.mxu1 %v8629_v0  ;;  %v1570_v54 = vmul.f32 %v8084_v7, %v9083_v9 }
 0x39c   :  { %v2483_v6 = vpop.permute.xlu0 %2482 }
 0x39d   :  { %7680 = vmatmul.mubr.msk.f32.vlgmr.msra.gmra.mxu0 %vm863_vm2, %v1570_v54 }
 0x39e   :  { %v8086_v60 = vpop.eup %8085  ;;  %7688 = vmatpush3.msra.mxu0 %v9040_v59  ;;  %7689 = vmatprep.mubr.msk.f32.mxu0 %vm8630_vm1, %v8629_v0 }
 0x39f   :  { %v8088_v10 = vpop.eup %8087  ;;  %7697 = vmatprep.subr.mxu0 %v8629_v0  ;;  %v1572_v62 = vmul.f32 %v8086_v60, %v9087_v33 }
 0x3a0   :  { %v1571_v9 = vmul.f32 %v8088_v10, %v9089_v14  ;;  %v2481_v47 = vpop.permute.xlu0 %2480 }
 0x3a1   :  { %7690 = vmatmul.mubr.msk.f32.vlgmr.msra.gmra.mxu0 %vm863_vm2, %v1572_v62 }
 0x3a2   :  { %v8090_v12 = vpop.eup %8089  ;;  %7685 = vmatmul.mubr.msk.f32.vlgmr.msra.gmra.mxu1 %vm863_vm2, %v1571_v9  ;;  %7698 = vmatpush3.msra.mxu0 %v9156_v1 }
 0x3a3   :  { %7693 = vmatpush3.msra.mxu1 %v9037_v57  ;;  %7699 = vmatprep.mubr.msk.f32.mxu0 %vm8630_vm1, %v8629_v0  ;;  %v1574_v33 = vmul.f32 %v8090_v12, %v9095_v19  ;;  %v2403_v19 = vpop.permute.xlu1 %2402 }
 0x3a4   :  { %7707 = vmatprep.subr.mxu0 %v8629_v0  ;;  %7694 = vmatprep.mubr.msk.f32.mxu1 %vm8630_vm1, %v8629_v0  ;;  %v2639_v37 = vpop.permute.xlu0 %2638 }
 0x3a5   :  { %7700 = vmatmul.mubr.msk.f32.vlgmr.msra.gmra.mxu0 %vm863_vm2, %v1574_v33  ;;  %7702 = vmatprep.subr.mxu1 %v8629_v0 }
 0x3a6   :  { %7708 = vmatpush3.xpose.msk.msra.mxu0 %vm863_vm2, %v2171_v17  ;;  %7709 = vmatprep.mubr.msk.f32.mxu0 %vm8630_vm1, %v8629_v0 }
 0x3a7   :  { %7717 = vmatprep.subr.mxu0 %v8629_v0 }
 0x3a8   :  { %v2637_v14 = vpop.permute.xlu0 %2636 }
 0x3a9   :  { %7710 = vmatmul.mubr.msk.f32.vlgmr.msra.gmra.mxu0 %vm863_vm2, %v9107_v28  ;;  %v2561_v28 = vpop.permute.xlu1 %2560 }
 0x3aa   :  { %7718 = vmatpush3.xpose.msk.msra.mxu0 %vm863_vm2, %v2327_v3  ;;  %7719 = vmatprep.mubr.msk.f32.mxu0 %vm8630_vm1, %v8629_v0 }
 0x3ab   :  { %7727 = vmatprep.subr.mxu0 %v8629_v0 }
 0x3ad   :  { %7720 = vmatmul.mubr.msk.f32.vlgmr.msra.gmra.mxu0 %vm863_vm2, %v2325_v58 }
 0x3ae   :  { %7728 = vmatpush3.xpose.msk.msra.mxu0 %vm863_vm2, %v2483_v6  ;;  %7729 = vmatprep.mubr.msk.f32.mxu0 %vm8630_vm1, %v8629_v0 }
 0x3af   :  { %7737 = vmatprep.subr.mxu0 %v8629_v0 }
 0x3b1   :  { %7730 = vmatmul.mubr.msk.f32.vlgmr.msra.gmra.mxu0 %vm863_vm2, %v2481_v47 }
 0x3b2   :  { %7738 = vmatpush3.xpose.msk.msra.mxu0 %vm863_vm2, %v2639_v37  ;;  %7739 = vmatprep.mubr.msk.f32.mxu0 %vm8630_vm1, %v8629_v0 }
 0x3b3   :  { %7747 = vmatprep.subr.mxu0 %v8629_v0 }
 0x3b5   :  { %7740 = vmatmul.mubr.msk.f32.vlgmr.msra.gmra.mxu0 %vm863_vm2, %v2637_v14 }
 0x3b6   :  { %7749 = vmatprep.mubr.msk.f32.mxu0 %vm8630_vm1, %v8629_v0 }
 0x3cd   :  { %v1553_v17 = vpop.xlane.xlu1 %1552 }
 0x3ce   :  { %8091 = vrcp.f32 %v1553_v17 }
 0x3d1   :  { %v1559_v3 = vpop.xlane.xlu1 %1558 }
 0x3d2   :  { %8093 = vrcp.f32 %v1559_v3 }
 0x3db   :  { %v8092_v26 = vpop.eup %8091 }
 0x3dc   :  { %v1573_v56 = vmul.f32 %v8092_v26, %v9120_v63  ;;  %v2559_v63 = vpop.permute.xlu1 %2558 }
 0x3de   :  { %7695 = vmatmul.mubr.msk.f32.vlgmr.msra.gmra.mxu1 %vm863_vm2, %v1573_v56 }
 0x3df   :  { %v8094_v8 = vpop.eup %8093  ;;  %7703 = vmatpush3.msra.mxu1 %v9043_v61  ;;  %7704 = vmatprep.mubr.msk.f32.mxu1 %vm8630_vm1, %v8629_v0 }
 0x3e0   :  { %7712 = vmatprep.subr.mxu1 %v8629_v0  ;;  %v1575_v32 = vmul.f32 %v8094_v8, %v9124_v2  ;;  %v736_v2 = vld [vmem:[#allocation8 + $0x8] sm:$0xff] }
 0x3e1   :  { %v768_v15 = vmax.f32 %v736_v2, 1e-06 }
 0x3e2   :  { %7705 = vmatmul.mubr.msk.f32.vlgmr.msra.gmra.mxu1 %vm863_vm2, %v1575_v32 }
 0x3e3   :  { %7713 = vmatpush3.xpose.msk.msra.mxu1 %vm863_vm2, %v9103_v25  ;;  %7714 = vmatprep.mubr.msk.f32.mxu1 %vm8630_vm1, %v8629_v0  ;;  %v2717_v25 = vpop.permute.xlu1 %2716  ;;  %8095 = vlog2.f32 %v768_v15 }
 0x3e4   :  { %7722 = vmatprep.subr.mxu1 %v8629_v0  ;;  %8097 = vlog2.f32 %v776_v52  ;;  %v752_v52 = vld [vmem:[#allocation8 + $0x88] sm:$0xff] }
 0x3e6   :  { %7715 = vmatmul.mubr.msk.f32.vlgmr.msra.gmra.mxu1 %vm863_vm2, %v9113_v48 }
 0x3e7   :  { %7723 = vmatpush3.xpose.msk.msra.mxu1 %vm863_vm2, %v9134_v4  ;;  %7724 = vmatprep.mubr.msk.f32.mxu1 %vm8630_vm1, %v8629_v0  ;;  %v2715_v48 = vpop.permute.xlu1 %2714 }
 0x3e8   :  { %7732 = vmatprep.subr.mxu1 %v8629_v0 }
 0x3ea   :  { %7725 = vmatmul.mubr.msk.f32.vlgmr.msra.gmra.mxu1 %vm863_vm2, %v2403_v19 }
 0x3eb   :  { %7733 = vmatpush3.xpose.msk.msra.mxu1 %vm863_vm2, %v2561_v28  ;;  %7734 = vmatprep.mubr.msk.f32.mxu1 %vm8630_vm1, %v8629_v0 }
 0x3ec   :  { %7742 = vmatprep.subr.mxu1 %v8629_v0 }
 0x3ee   :  { %7735 = vmatmul.mubr.msk.f32.vlgmr.msra.gmra.mxu1 %vm863_vm2, %v2559_v63 }
 0x3ef   :  { %7743 = vmatpush3.xpose.msk.msra.mxu1 %vm863_vm2, %v2717_v25  ;;  %7744 = vmatprep.mubr.msk.f32.mxu1 %vm8630_vm1, %v8629_v0 }
 0x3f0   :  { %7752 = vmatprep.subr.mxu1 %v8629_v0  ;;  %v8096_v12 = vpop.eup %8095 }
 0x3f1   :  { %v802_v47 = vmul.f32 0.6931472, %v8096_v12  ;;  %v8098_v37 = vpop.eup %8097 }
 0x3f2   :  { %7745 = vmatmul.mubr.msk.f32.vlgmr.msra.gmra.mxu1 %vm863_vm2, %v2715_v48  ;;  %v818_v3 = vmul.f32 0.6931472, %v8098_v37 }
 0x3f3   :  { %7754 = vmatprep.mubr.msk.f32.mxu1 %vm8630_vm1, %v8629_v0 }
 0x455   :  { %v1645_v4 = vpop.f32.mrf.mxu0 }
 0x456   :  { %2160 = vst.msk [vmem:[#allocation2] sm:$0xff] %vm863_vm2, %v1645_v4 }
 0x457   :  { %v7671_v22 = vpop.f32.mrf.mxu0 }
 0x458   :  { %v772_v22 = vmax.f32 %v740_v18, 1e-06 }
 0x459   :  { %v1718_v50 = vpop.f32.mrf.mxu1 }
 0x45a   :  { %2161 = vst.msk [vmem:[#allocation2 + $0x8] sm:$0xff] %vm863_vm2, %v1718_v50  ;;  %v748_v50 = vld [vmem:[#allocation8 + $0x68] sm:$0xff]  ;;  %8099 = vlog2.f32 %v772_v22 }
 0x45b   :  { %v7676_v7 = vpop.f32.mrf.mxu1 }
 0x45c   :  { %v780_v7 = vmax.f32 %v748_v50, 1e-06 }
 0x45d   :  { %v1791_v54 = vpop.f32.mrf.mxu0 }
 0x45e   :  { %2162 = vst.msk [vmem:[#allocation2 + $0x10] sm:$0xff] %vm863_vm2, %v1791_v54  ;;  %v784_v54 = vmax.f32 %v752_v52, 1e-06  ;;  %8101 = vlog2.f32 %v780_v7 }
 0x45f   :  { %v7681_v58 = vpop.f32.mrf.mxu0 }
 0x460   :  { %v756_v58 = vld [vmem:[#allocation8 + $0xa8] sm:$0xff]  ;;  %8103 = vlog2.f32 %v784_v54 }
 0x461   :  { %v1937_v60 = vpop.f32.mrf.mxu0 }
 0x462   :  { %v1864_v10 = vpop.f32.mrf.mxu1  ;;  %2164 = vst.msk [vmem:[#allocation2 + $0x20] sm:$0xff] %vm863_vm2, %v1937_v60  ;;  %v760_v60 = vld [vmem:[#allocation8 + $0xc8] sm:$0xff] }
 0x463   :  { %2163 = vst.msk [vmem:[#allocation2 + $0x18] sm:$0xff] %vm863_vm2, %v1864_v10  ;;  %v7691_v62 = vpop.f32.mrf.mxu0  ;;  %v788_v10 = vmax.f32 %v756_v58, 1e-06 }
 0x464   :  { %v7686_v9 = vpop.f32.mrf.mxu1  ;;  %v792_v62 = vmax.f32 %v760_v60, 1e-06 }
 0x465   :  { %v2083_v6 = vpop.f32.mrf.mxu0  ;;  %8105 = vlog2.f32 %v788_v10 }
 0x466   :  { %2166 = vst.msk [vmem:[#allocation2 + $0x30] sm:$0xff] %vm863_vm2, %v2083_v6  ;;  %8107 = vlog2.f32 %v792_v62 }
 0x467   :  { %v7701_v33 = vpop.f32.mrf.mxu0  ;;  %v8100_v6 = vpop.eup %8099 }
 0x468   :  { %v810_v37 = vmul.f32 0.6931472, %v8100_v6 }
 0x469   :  { %v2242_v14 = vpop.f32.mrf.mxu0 }
 0x46a   :  { %v2792_v19 = vmul.f32 0.35355338, %v2242_v14 }
 0x46b   :  { %v7711_v28 = vpop.f32.mrf.mxu0  ;;  %v8102_v14 = vpop.eup %8101 }
 0x46c   :  { %v9233_v17 = vadd.f32 %v2792_v19, %v802_v47 }
 0x46d   :  { %v2398_v26 = vpop.f32.mrf.mxu0  ;;  %v8104_v28 = vpop.eup %8103 }
 0x46e   :  { %v2794_v56 = vmul.f32 0.35355338, %v2398_v26  ;;  %v2808_v8 = vsel %vm863_vm2, %v9233_v17, -inf }
 0x46f   :  { %2809 = vmax.xlane.f32.xlu0 %v2808_v8  ;;  %v7721_v32 = vpop.f32.mrf.mxu0  ;;  %v826_v8 = vmul.f32 0.6931472, %v8102_v14 }
 0x470   :  { %v9237_v63 = vadd.f32 %v2794_v56, %v818_v3 }
 0x471   :  { %v2554_v25 = vpop.f32.mrf.mxu0 }
 0x472   :  { %v2814_v48 = vsel %vm863_vm2, %v9237_v63, -inf  ;;  %v8106_v32 = vpop.eup %8105  ;;  %v2796_v18 = vmul.f32 0.35355338, %v2554_v25 }
 0x473   :  { %2815 = vmax.xlane.f32.xlu0 %v2814_v48  ;;  %v7731_v2 = vpop.f32.mrf.mxu0  ;;  %v842_v54 = vmul.f32 0.6931472, %v8106_v32 }
 0x474   :  { %v834_v2 = vmul.f32 0.6931472, %v8104_v28  ;;  %v764_v28 = vld [vmem:[#allocation8 + $0xe8] sm:$0xff] }
 0x475   :  { %v2710_v4 = vpop.f32.mrf.mxu0 }
 0x476   :  { %v2798_v10 = vmul.f32 0.35355338, %v2710_v4 }
 0x477   :  { %v7741_v15 = vpop.f32.mrf.mxu0 }
 0x478   :  { %v8108_v15 = vpop.eup %8107 }
 0x479   :  { %v850_v60 = vmul.f32 0.6931472, %v8108_v15 }
 0x47b   :  { %v9256_v14 = vadd.f32 %v2798_v10, %v850_v60 }
 0x49e   :  { %v2010_v9 = vpop.f32.mrf.mxu1 }
 0x49f   :  { %2165 = vst.msk [vmem:[#allocation2 + $0x28] sm:$0xff] %vm863_vm2, %v2010_v9 }
 0x4a0   :  { %v7696_v12 = vpop.f32.mrf.mxu1 }
 0x4a1   :  { %v9251_v12 = vadd.f32 %v2796_v18, %v834_v2 }
 0x4a2   :  { %v2156_v33 = vpop.f32.mrf.mxu1 }
 0x4a3   :  { %2167 = vst.msk [vmem:[#allocation2 + $0x38] sm:$0xff] %vm863_vm2, %v2156_v33 }
 0x4a4   :  { %v7706_v47 = vpop.f32.mrf.mxu1 }
 0x4a5   :  { %v2820_v47 = vsel %vm863_vm2, %v9251_v12, -inf }
 0x4a6   :  { %v2320_v19 = vpop.f32.mrf.mxu1 }
 0x4a7   :  { %v2793_v3 = vmul.f32 0.35355338, %v2320_v19  ;;  %v2826_v19 = vsel %vm863_vm2, %v9256_v14, -inf }
 0x4a8   :  { %v7716_v26 = vpop.f32.mrf.mxu1 }
 0x4a9   :  { %v9243_v56 = vadd.f32 %v2793_v3, %v810_v37  ;;  %v796_v3 = vmax.f32 %v764_v28, 1e-06 }
 0x4aa   :  { %v2476_v48 = vpop.f32.mrf.mxu1 }
 0x4ab   :  { %v2795_v22 = vmul.f32 0.35355338, %v2476_v48  ;;  %v2811_v50 = vsel %vm863_vm2, %v9243_v56, -inf  ;;  %8109 = vlog2.f32 %v796_v3 }
 0x4ac   :  { %2812 = vmax.xlane.f32.xlu1 %v2811_v50  ;;  %v7726_v52 = vpop.f32.mrf.mxu1 }
 0x4ad   :  { %v9247_v7 = vadd.f32 %v2795_v22, %v826_v8 }
 0x4ae   :  { %v2632_v58 = vpop.f32.mrf.mxu1 }
 0x4af   :  { %v2797_v62 = vmul.f32 0.35355338, %v2632_v58  ;;  %v2817_v9 = vsel %vm863_vm2, %v9247_v7, -inf }
 0x4b0   :  { %2818 = vmax.xlane.f32.xlu0 %v2817_v9  ;;  %v7736_v25 = vpop.f32.mrf.mxu1 }
 0x4b1   :  { %v2805_v6 = vadd.f32 %v2797_v62, %v842_v54 }
 0x4b2   :  { %v2788_v33 = vpop.f32.mrf.mxu1 }
 0x4b3   :  { %v2823_v37 = vsel %vm863_vm2, %v2805_v6, -inf  ;;  %v2799_v8 = vmul.f32 0.35355338, %v2788_v33 }
 0x4b4   :  { %2821 = vmax.xlane.f32.xlu0 %v2820_v47  ;;  %2824 = vmax.xlane.f32.xlu1 %v2823_v37  ;;  %v7746_v4 = vpop.f32.mrf.mxu1 }
 0x4b8   :  { %2827 = vmax.xlane.f32.xlu0 %v2826_v19  ;;  %v8110_v26 = vpop.eup %8109 }
 0x4b9   :  { %v858_v32 = vmul.f32 0.6931472, %v8110_v26 }
 0x4bb   :  { %v9287_v18 = vadd.f32 %v2799_v8, %v858_v32 }
 0x4bd   :  { %v2829_v54 = vsel %vm863_vm2, %v9287_v18, -inf }
 0x4c5   :  { %2974 = vrot.lane.b32.xlu1 %v9021_v49, %s8631_s11 }
 0x4c9   :  { %3051 = vrot.lane.b32.xlu1 %v9034_v55, %s8631_s11 }
 0x4cd   :  { %3128 = vrot.lane.b32.xlu1 %v9029_v53, %s8631_s11 }
 0x4ce   :  { %2897 = vrot.lane.b32.xlu0 %v9024_v51, %s8631_s11 }
 0x4d1   :  { %3282 = vrot.lane.b32.xlu1 %v9037_v57, %s8631_s11 }
 0x4d2   :  { %3205 = vrot.lane.b32.xlu0 %v9040_v59, %s8631_s11 }
 0x4d5   :  { %3436 = vrot.lane.b32.xlu1 %v9043_v61, %s8631_s11 }
 0x4d6   :  { %3359 = vrot.lane.b32.xlu0 %v9156_v1, %s8631_s11 }
 0x4d9   :  { %3633 = vrot.lane.b32.xlu1 %v8934_v23, %s8632_s1 }
 0x4da   :  { %3555 = vrot.lane.b32.xlu0 %v8924_v16, %s8632_s1 }
 0x4dd   :  { %3631 = vrot.lane.b32.xlu1 %v8942_v27, %s8632_s1 }
 0x4de   :  { %3553 = vrot.lane.b32.xlu0 %v8931_v20, %s8632_s1 }
 0x4e2   :  { %3711 = vrot.lane.b32.xlu0 %v8945_v29, %s8632_s1 }
 0x4f8   :  { %v2810_v48 = vpop.xlane.xlu0 %2809 }
 0x4f9   :  { %v2832_v2 = vsub.f32 %v9233_v17, %v2810_v48 }
 0x4fb   :  { %v2840_v15 = vmul.f32 1.442695, %v2832_v2 }
 0x4fc   :  { %v2816_v22 = vpop.xlane.xlu0 %2815 }
 0x4fd   :  { %8111 = vpow2.f32 %v2840_v15  ;;  %v2834_v50 = vsub.f32 %v9237_v63, %v2816_v22 }
 0x4ff   :  { %v2844_v52 = vmul.f32 1.442695, %v2834_v50 }
 0x501   :  { %2830 = vmax.xlane.f32.xlu1 %v2829_v54  ;;  %8113 = vpow2.f32 %v2844_v52 }
 0x50a   :  { %v9292_v58 = vpop.eup %8111 }
 0x50b   :  { %v2856_v60 = vsel %vm863_vm2, %v9292_v58, 0.0 }
 0x50c   :  { %2857 = vadd.xlane.f32.xlu0 %v2856_v60 }
 0x50e   :  { %v9296_v17 = vpop.eup %8113 }
 0x50f   :  { %v2862_v10 = vsel %vm863_vm2, %v9296_v17, 0.0 }
 0x510   :  { %2863 = vadd.xlane.f32.xlu0 %v2862_v10 }
 0x512   :  { %3789 = vrot.lane.b32.xlu1 %v8962_v38, %s8632_s1 }
 0x535   :  { %v2813_v63 = vpop.xlane.xlu1 %2812 }
 0x536   :  { %v2833_v62 = vsub.f32 %v9243_v56, %v2813_v63 }
 0x538   :  { %v2842_v9 = vmul.f32 1.442695, %v2833_v62 }
 0x539   :  { %v2819_v25 = vpop.xlane.xlu0 %2818 }
 0x53a   :  { %8115 = vpow2.f32 %v2842_v9  ;;  %v2835_v33 = vsub.f32 %v9247_v7, %v2819_v25 }
 0x53c   :  { %v2846_v47 = vmul.f32 1.442695, %v2835_v33 }
 0x53d   :  { %v2822_v37 = vpop.xlane.xlu0 %2821  ;;  %v2825_v4 = vpop.xlane.xlu1 %2824 }
 0x53e   :  { %8117 = vpow2.f32 %v2846_v47  ;;  %v2836_v19 = vsub.f32 %v9251_v12, %v2822_v37  ;;  %v2837_v28 = vsub.f32 %v2805_v6, %v2825_v4 }
 0x540   :  { %v2848_v3 = vmul.f32 1.442695, %v2836_v19  ;;  %v2850_v26 = vmul.f32 1.442695, %v2837_v28 }
 0x541   :  { %v2828_v8 = vpop.xlane.xlu0 %2827  ;;  %v2975_v32 = vpop.permute.xlu1 %2974 }
 0x542   :  { %8119 = vpow2.f32 %v2848_v3  ;;  %v2838_v48 = vsub.f32 %v9256_v14, %v2828_v8  ;;  %7753 = vmatpush3.msra.mxu1 %v2975_v32 }
 0x543   :  { %8121 = vpow2.f32 %v2850_v26  ;;  %7762 = vmatprep.subr.mxu1 %v8629_v0 }
 0x544   :  { %v2852_v56 = vmul.f32 1.442695, %v2838_v48 }
 0x545   :  { %v2898_v7 = vpop.permute.xlu0 %2897  ;;  %v3052_v10 = vpop.permute.xlu1 %3051 }
 0x546   :  { %8123 = vpow2.f32 %v2852_v56  ;;  %7748 = vmatpush3.msra.mxu0 %v2898_v7 }
 0x547   :  { %v9307_v2 = vpop.eup %8115  ;;  %7757 = vmatprep.subr.mxu0 %v8629_v0 }
 0x548   :  { %v2859_v12 = vsel %vm863_vm2, %v9307_v2, 0.0 }
 0x549   :  { %2860 = vadd.xlane.f32.xlu1 %v2859_v12  ;;  %v3129_v63 = vpop.permute.xlu1 %3128  ;;  %v3206_v9 = vpop.permute.xlu0 %3205 }
 0x54b   :  { %v9312_v6 = vpop.eup %8117 }
 0x54c   :  { %v2865_v14 = vsel %vm863_vm2, %v9312_v6, 0.0 }
 0x54d   :  { %2866 = vadd.xlane.f32.xlu1 %v2865_v14  ;;  %v3283_v62 = vpop.permute.xlu1 %3282  ;;  %v9344_v33 = vpop.permute.xlu0 %3359 }
 0x54f   :  { %v9316_v15 = vpop.eup %8119 }
 0x550   :  { %v9318_v22 = vpop.eup %8121  ;;  %v2868_v50 = vsel %vm863_vm2, %v9316_v15, 0.0 }
 0x551   :  { %2869 = vadd.xlane.f32.xlu0 %v2868_v50  ;;  %v2871_v52 = vsel %vm863_vm2, %v9318_v22, 0.0  ;;  %v9340_v25 = vpop.permute.xlu1 %3436  ;;  %v9348_v37 = vpop.permute.xlu0 %3555 }
 0x552   :  { %2872 = vadd.xlane.f32.xlu1 %v2871_v52 }
 0x553   :  { %v9324_v54 = vpop.eup %8123 }
 0x554   :  { %v2874_v60 = vsel %vm863_vm2, %v9324_v54, 0.0 }
 0x555   :  { %2875 = vadd.xlane.f32.xlu0 %v2874_v60  ;;  %v9346_v47 = vpop.permute.xlu1 %3633  ;;  %v9353_v3 = vpop.permute.xlu0 %3553 }
 0x559   :  { %v9350_v4 = vpop.permute.xlu1 %3631  ;;  %v9355_v8 = vpop.permute.xlu0 %3711 }
 0x563   :  { %3787 = vrot.lane.b32.xlu1 %v8979_v42, %s8632_s1 }
 0x567   :  { %3945 = vrot.lane.b32.xlu1 %v8971_v40, %s8632_s1 }
 0x56b   :  { %3709 = vrot.lane.b32.xlu0 %v8957_v36, %s8632_s1 }
 0x56f   :  { %3867 = vrot.lane.b32.xlu0 %v8947_v31, %s8632_s1 }
 0x573   :  { %3865 = vrot.lane.b32.xlu0 %v8955_v34, %s8632_s1 }
 0x577   :  { %4023 = vrot.lane.b32.xlu0 %v8964_v39, %s8632_s1 }
 0x57b   :  { %4021 = vrot.lane.b32.xlu0 %v8977_v41, %s8632_s1 }
 0x58a   :  { %v2831_v19 = vpop.xlane.xlu1 %2830 }
 0x58b   :  { %v2839_v28 = vsub.f32 %v9287_v18, %v2831_v19 }
 0x58d   :  { %v2854_v26 = vmul.f32 1.442695, %v2839_v28 }
 0x58f   :  { %8125 = vpow2.f32 %v2854_v26 }
 0x595   :  { %v2858_v32 = vpop.xlane.xlu0 %2857 }
 0x596   :  { %8127 = vrcp.f32 %v2858_v32 }
 0x599   :  { %v2864_v48 = vpop.xlane.xlu0 %2863 }
 0x59a   :  { %8129 = vrcp.f32 %v2864_v48 }
 0x59c   :  { %v9357_v56 = vpop.eup %8125 }
 0x59d   :  { %v2877_v7 = vsel %vm863_vm2, %v9357_v56, 0.0 }
 0x59e   :  { %2878 = vadd.xlane.f32.xlu1 %v2877_v7 }
 0x5a3   :  { %v8128_v12 = vpop.eup %8127 }
 0x5a4   :  { %v2888_v14 = vmul.f32 %v8128_v12, %v9292_v58  ;;  %v9377_v58 = vpop.permute.xlu1 %3789 }
 0x5a6   :  { %7750 = vmatmul.mubr.msk.f32.vlgmr.msra.gmra.mxu0 %vm863_vm2, %v2888_v14 }
 0x5a7   :  { %v8130_v18 = vpop.eup %8129  ;;  %7758 = vmatpush3.msra.mxu0 %v3052_v10  ;;  %7759 = vmatprep.mubr.msk.f32.mxu0 %vm8630_vm1, %v8629_v0 }
 0x5a8   :  { %7767 = vmatprep.subr.mxu0 %v8629_v0  ;;  %v2890_v50 = vmul.f32 %v8130_v18, %v9296_v17 }
 0x5aa   :  { %7760 = vmatmul.mubr.msk.f32.vlgmr.msra.gmra.mxu0 %vm863_vm2, %v2890_v50 }
 0x5ab   :  { %7768 = vmatpush3.msra.mxu0 %v3206_v9  ;;  %7769 = vmatprep.mubr.msk.f32.mxu0 %vm8630_vm1, %v8629_v0 }
 0x5ac   :  { %7777 = vmatprep.subr.mxu0 %v8629_v0 }
 0x5af   :  { %3943 = vrot.lane.b32.xlu1 %v8997_v45, %s8632_s1 }
 0x5b3   :  { %4101 = vrot.lane.b32.xlu1 %v8991_v43, %s8632_s1 }
 0x5b7   :  { %4099 = vrot.lane.b32.xlu1 %v9008_v46, %s8632_s1 }
 0x5d2   :  { %v2861_v17 = vpop.xlane.xlu1 %2860 }
 0x5d3   :  { %8131 = vrcp.f32 %v2861_v17 }
 0x5d6   :  { %v2867_v52 = vpop.xlane.xlu1 %2866 }
 0x5d7   :  { %8133 = vrcp.f32 %v2867_v52  ;;  %v737_v52 = vld [vmem:[#allocation8 + $0x10] sm:$0xff] }
 0x5da   :  { %v2870_v60 = vpop.xlane.xlu0 %2869 }
 0x5db   :  { %8135 = vrcp.f32 %v2870_v60  ;;  %v2873_v10 = vpop.xlane.xlu1 %2872  ;;  %v769_v60 = vmax.f32 %v737_v52, 1e-06 }
 0x5dc   :  { %8137 = vrcp.f32 %v2873_v10  ;;  %v745_v10 = vld [vmem:[#allocation8 + $0x50] sm:$0xff] }
 0x5de   :  { %v2876_v9 = vpop.xlane.xlu0 %2875 }
 0x5df   :  { %8139 = vrcp.f32 %v2876_v9  ;;  %v777_v9 = vmax.f32 %v745_v10, 1e-06 }
 0x5e0   :  { %v8132_v19 = vpop.eup %8131 }
 0x5e1   :  { %v2889_v28 = vmul.f32 %v8132_v19, %v9307_v2 }
 0x5e2   :  { %v3710_v48 = vpop.permute.xlu0 %3709 }
 0x5e3   :  { %7755 = vmatmul.mubr.msk.f32.vlgmr.msra.gmra.mxu1 %vm863_vm2, %v2889_v28 }
 0x5e4   :  { %v8134_v26 = vpop.eup %8133  ;;  %7763 = vmatpush3.msra.mxu1 %v3129_v63  ;;  %7764 = vmatprep.mubr.msk.f32.mxu1 %vm8630_vm1, %v8629_v0 }
 0x5e5   :  { %7772 = vmatprep.subr.mxu1 %v8629_v0  ;;  %v2891_v32 = vmul.f32 %v8134_v26, %v9312_v6 }
 0x5e6   :  { %v3868_v18 = vpop.permute.xlu0 %3867 }
 0x5e7   :  { %7765 = vmatmul.mubr.msk.f32.vlgmr.msra.gmra.mxu1 %vm863_vm2, %v2891_v32 }
 0x5e8   :  { %v8136_v7 = vpop.eup %8135  ;;  %7773 = vmatpush3.msra.mxu1 %v3283_v62  ;;  %7774 = vmatprep.mubr.msk.f32.mxu1 %vm8630_vm1, %v8629_v0  ;;  %v3788_v62 = vpop.permute.xlu1 %3787 }
 0x5e9   :  { %v8138_v2 = vpop.eup %8137  ;;  %7782 = vmatprep.subr.mxu1 %v8629_v0  ;;  %v2892_v63 = vmul.f32 %v8136_v7, %v9316_v15 }
 0x5ea   :  { %v2893_v12 = vmul.f32 %v8138_v2, %v9318_v22  ;;  %v3866_v15 = vpop.permute.xlu0 %3865 }
 0x5eb   :  { %7770 = vmatmul.mubr.msk.f32.vlgmr.msra.gmra.mxu0 %vm863_vm2, %v2892_v63 }
 0x5ec   :  { %v8140_v14 = vpop.eup %8139  ;;  %7775 = vmatmul.mubr.msk.f32.vlgmr.msra.gmra.mxu1 %vm863_vm2, %v2893_v12  ;;  %7778 = vmatpush3.msra.mxu0 %v9344_v33 }
 0x5ed   :  { %7783 = vmatpush3.msra.mxu1 %v9340_v25  ;;  %7779 = vmatprep.mubr.msk.f32.mxu0 %vm8630_vm1, %v8629_v0  ;;  %v2894_v6 = vmul.f32 %v8140_v14, %v9324_v54  ;;  %v3946_v25 = vpop.permute.xlu1 %3945 }
 0x5ee   :  { %7787 = vmatprep.subr.mxu0 %v8629_v0  ;;  %7784 = vmatprep.mubr.msk.f32.mxu1 %vm8630_vm1, %v8629_v0  ;;  %v4024_v22 = vpop.permute.xlu0 %4023 }
 0x5ef   :  { %7780 = vmatmul.mubr.msk.f32.vlgmr.msra.gmra.mxu0 %vm863_vm2, %v2894_v6  ;;  %7792 = vmatprep.subr.mxu1 %v8629_v0 }
 0x5f0   :  { %7788 = vmatpush3.xpose.msk.msra.mxu0 %vm863_vm2, %v9348_v37  ;;  %7789 = vmatprep.mubr.msk.f32.mxu0 %vm8630_vm1, %v8629_v0 }
 0x5f1   :  { %7797 = vmatprep.subr.mxu0 %v8629_v0 }
 0x5f2   :  { %v4022_v54 = vpop.permute.xlu0 %4021 }
 0x5f3   :  { %7790 = vmatmul.mubr.msk.f32.vlgmr.msra.gmra.mxu0 %vm863_vm2, %v9353_v3 }
 0x5f4   :  { %7798 = vmatpush3.xpose.msk.msra.mxu0 %vm863_vm2, %v9355_v8  ;;  %7799 = vmatprep.mubr.msk.f32.mxu0 %vm8630_vm1, %v8629_v0 }
 0x5f5   :  { %7807 = vmatprep.subr.mxu0 %v8629_v0 }
 0x5f7   :  { %7800 = vmatmul.mubr.msk.f32.vlgmr.msra.gmra.mxu0 %vm863_vm2, %v3710_v48 }
 0x5f8   :  { %7808 = vmatpush3.xpose.msk.msra.mxu0 %vm863_vm2, %v3868_v18  ;;  %7809 = vmatprep.mubr.msk.f32.mxu0 %vm8630_vm1, %v8629_v0 }
 0x5f9   :  { %7817 = vmatprep.subr.mxu0 %v8629_v0 }
 0x5fb   :  { %7810 = vmatmul.mubr.msk.f32.vlgmr.msra.gmra.mxu0 %vm863_vm2, %v3866_v15 }
 0x5fc   :  { %7818 = vmatpush3.xpose.msk.msra.mxu0 %vm863_vm2, %v4024_v22  ;;  %7819 = vmatprep.mubr.msk.f32.mxu0 %vm8630_vm1, %v8629_v0 }
 0x5fd   :  { %7827 = vmatprep.subr.mxu0 %v8629_v0 }
 0x5ff   :  { %7820 = vmatmul.mubr.msk.f32.vlgmr.msra.gmra.mxu0 %vm863_vm2, %v4022_v54 }
 0x600   :  { %7829 = vmatprep.mubr.msk.f32.mxu0 %vm8630_vm1, %v8629_v0 }
 0x627   :  { %v2879_v33 = vpop.xlane.xlu1 %2878 }
 0x628   :  { %8141 = vrcp.f32 %v2879_v33 }
 0x629   :  { %8143 = vlog2.f32 %v769_v60 }
 0x62a   :  { %8145 = vlog2.f32 %v777_v9  ;;  %v741_v9 = vld [vmem:[#allocation8 + $0x30] sm:$0xff] }
 0x62b   :  { %v3944_v8 = vpop.permute.xlu1 %3943 }
 0x635   :  { %v8142_v37 = vpop.eup %8141 }
 0x636   :  { %v2895_v3 = vmul.f32 %v8142_v37, %v9357_v56  ;;  %v8144_v12 = vpop.eup %8143 }
 0x637   :  { %v804_v6 = vmul.f32 0.6931472, %v8144_v12  ;;  %v8146_v15 = vpop.eup %8145 }
 0x638   :  { %7785 = vmatmul.mubr.msk.f32.vlgmr.msra.gmra.mxu1 %vm863_vm2, %v2895_v3  ;;  %v820_v33 = vmul.f32 0.6931472, %v8146_v15 }
 0x639   :  { %7793 = vmatpush3.xpose.msk.msra.mxu1 %vm863_vm2, %v9346_v47  ;;  %7794 = vmatprep.mubr.msk.f32.mxu1 %vm8630_vm1, %v8629_v0  ;;  %v4102_v47 = vpop.permute.xlu1 %4101 }
 0x63a   :  { %7802 = vmatprep.subr.mxu1 %v8629_v0 }
 0x63c   :  { %7795 = vmatmul.mubr.msk.f32.vlgmr.msra.gmra.mxu1 %vm863_vm2, %v9350_v4 }
 0x63d   :  { %7803 = vmatpush3.xpose.msk.msra.mxu1 %vm863_vm2, %v9377_v58  ;;  %7804 = vmatprep.mubr.msk.f32.mxu1 %vm8630_vm1, %v8629_v0  ;;  %v4100_v4 = vpop.permute.xlu1 %4099 }
 0x63e   :  { %7812 = vmatprep.subr.mxu1 %v8629_v0 }
 0x640   :  { %7805 = vmatmul.mubr.msk.f32.vlgmr.msra.gmra.mxu1 %vm863_vm2, %v3788_v62 }
 0x641   :  { %7813 = vmatpush3.xpose.msk.msra.mxu1 %vm863_vm2, %v3946_v25  ;;  %7814 = vmatprep.mubr.msk.f32.mxu1 %vm8630_vm1, %v8629_v0 }
 0x642   :  { %7822 = vmatprep.subr.mxu1 %v8629_v0 }
 0x644   :  { %7815 = vmatmul.mubr.msk.f32.vlgmr.msra.gmra.mxu1 %vm863_vm2, %v3944_v8 }
 0x645   :  { %7823 = vmatpush3.xpose.msk.msra.mxu1 %vm863_vm2, %v4102_v47  ;;  %7824 = vmatprep.mubr.msk.f32.mxu1 %vm8630_vm1, %v8629_v0 }
 0x646   :  { %7832 = vmatprep.subr.mxu1 %v8629_v0 }
 0x648   :  { %7825 = vmatmul.mubr.msk.f32.vlgmr.msra.gmra.mxu1 %vm863_vm2, %v4100_v4 }
 0x649   :  { %7834 = vmatprep.mubr.msk.f32.mxu1 %vm8630_vm1, %v8629_v0 }
 0x666   :  { %v9455_v56 = vpop.f32.mrf.mxu0 }
 0x668   :  { %v7751_v50 = vpop.f32.mrf.mxu0 }
 0x66a   :  { %v9457_v58 = vpop.f32.mrf.mxu0 }
 0x66c   :  { %v7761_v17 = vpop.f32.mrf.mxu0 }
 0x6a3   :  { %v9459_v19 = vpop.f32.mrf.mxu1 }
 0x6a5   :  { %v7756_v28 = vpop.f32.mrf.mxu1 }
 0x6a6   :  { %v773_v28 = vmax.f32 %v741_v9, 1e-06 }
 0x6a7   :  { %v9461_v26 = vpop.f32.mrf.mxu1 }
 0x6a8   :  { %8147 = vlog2.f32 %v773_v28 }
 0x6a9   :  { %v7766_v32 = vpop.f32.mrf.mxu1 }
 0x6aa   :  { %v749_v32 = vld [vmem:[#allocation8 + $0x70] sm:$0xff] }
 0x6ab   :  { %v9463_v48 = vpop.f32.mrf.mxu0 }
 0x6ac   :  { %v9465_v7 = vpop.f32.mrf.mxu1 }
 0x6ad   :  { %v7771_v2 = vpop.f32.mrf.mxu0 }
 0x6ae   :  { %v7776_v63 = vpop.f32.mrf.mxu1  ;;  %v753_v2 = vld [vmem:[#allocation8 + $0x90] sm:$0xff] }
 0x6af   :  { %v9467_v14 = vpop.f32.mrf.mxu0  ;;  %v781_v63 = vmax.f32 %v749_v32, 1e-06  ;;  %v785_v12 = vmax.f32 %v753_v2, 1e-06 }
 0x6b1   :  { %v7781_v18 = vpop.f32.mrf.mxu0  ;;  %8149 = vlog2.f32 %v781_v63 }
 0x6b2   :  { %v757_v18 = vld [vmem:[#allocation8 + $0xb0] sm:$0xff]  ;;  %8151 = vlog2.f32 %v785_v12 }
 0x6b3   :  { %v3627_v22 = vpop.f32.mrf.mxu0  ;;  %v789_v15 = vmax.f32 %v757_v18, 1e-06 }
 0x6b4   :  { %v4177_v54 = vmul.f32 0.35355338, %v3627_v22 }
 0x6b5   :  { %v7791_v62 = vpop.f32.mrf.mxu0  ;;  %8153 = vlog2.f32 %v789_v15 }
 0x6b6   :  { %v9469_v25 = vadd.f32 %v4177_v54, %v804_v6  ;;  %v761_v6 = vld [vmem:[#allocation8 + $0xd0] sm:$0xff]  ;;  %v8148_v54 = vpop.eup %8147 }
 0x6b7   :  { %v3783_v37 = vpop.f32.mrf.mxu0  ;;  %v793_v22 = vmax.f32 %v761_v6, 1e-06 }
 0x6b8   :  { %v4179_v3 = vmul.f32 0.35355338, %v3783_v37  ;;  %v4193_v8 = vsel %vm863_vm2, %v9469_v25, -inf  ;;  %v812_v37 = vmul.f32 0.6931472, %v8148_v54 }
 0x6b9   :  { %4194 = vmax.xlane.f32.xlu0 %v4193_v8  ;;  %v7801_v47 = vpop.f32.mrf.mxu0  ;;  %8155 = vlog2.f32 %v793_v22 }
 0x6ba   :  { %v9473_v4 = vadd.f32 %v4179_v3, %v820_v33 }
 0x6bb   :  { %v3939_v50 = vpop.f32.mrf.mxu0 }
 0x6bc   :  { %v4199_v17 = vsel %vm863_vm2, %v9473_v4, -inf  ;;  %v4181_v12 = vmul.f32 0.35355338, %v3939_v50 }
 0x6bd   :  { %4200 = vmax.xlane.f32.xlu0 %v4199_v17  ;;  %v7811_v52 = vpop.f32.mrf.mxu0 }
 0x6be   :  { %v8150_v3 = vpop.eup %8149 }
 0x6bf   :  { %v4095_v60 = vpop.f32.mrf.mxu0  ;;  %v8152_v47 = vpop.eup %8151  ;;  %v828_v9 = vmul.f32 0.6931472, %v8150_v3 }
 0x6c0   :  { %v836_v2 = vmul.f32 0.6931472, %v8152_v47 }
 0x6c1   :  { %v7821_v10 = vpop.f32.mrf.mxu0 }
 0x6c2   :  { %v8154_v28 = vpop.eup %8153 }
 0x6c3   :  { %v844_v54 = vmul.f32 0.6931472, %v8154_v28 }
 0x6c6   :  { %v8156_v63 = vpop.eup %8155 }
 0x6f8   :  { %v9477_v62 = vpop.f32.mrf.mxu1 }
 0x6fa   :  { %v7786_v33 = vpop.f32.mrf.mxu1 }
 0x6fc   :  { %v3705_v8 = vpop.f32.mrf.mxu1 }
 0x6fd   :  { %v4178_v17 = vmul.f32 0.35355338, %v3705_v8  ;;  %v852_v8 = vmul.f32 0.6931472, %v8156_v63 }
 0x6fe   :  { %v7796_v52 = vpop.f32.mrf.mxu1 }
 0x6ff   :  { %v9479_v10 = vadd.f32 %v4178_v17, %v812_v37  ;;  %v4183_v52 = vmul.f32 0.35355338, %v4095_v60  ;;  %v9487_v17 = vadd.f32 %v4181_v12, %v836_v2  ;;  %v765_v2 = vld [vmem:[#allocation8 + $0xf0] sm:$0xff] }
 0x700   :  { %v3861_v32 = vpop.f32.mrf.mxu1  ;;  %v797_v63 = vmax.f32 %v765_v2, 1e-06 }
 0x701   :  { %v4180_v18 = vmul.f32 0.35355338, %v3861_v32  ;;  %v4196_v6 = vsel %vm863_vm2, %v9479_v10, -inf }
 0x702   :  { %4197 = vmax.xlane.f32.xlu1 %v4196_v6  ;;  %v7806_v15 = vpop.f32.mrf.mxu1  ;;  %v4205_v6 = vsel %vm863_vm2, %v9487_v17, -inf  ;;  %8157 = vlog2.f32 %v797_v63 }
 0x703   :  { %v9483_v22 = vadd.f32 %v4180_v18, %v828_v9  ;;  %v9492_v18 = vadd.f32 %v4183_v52, %v852_v8 }
 0x704   :  { %v4017_v33 = vpop.f32.mrf.mxu1 }
 0x705   :  { %v4182_v37 = vmul.f32 0.35355338, %v4017_v33  ;;  %v4202_v3 = vsel %vm863_vm2, %v9483_v22, -inf  ;;  %v4211_v28 = vsel %vm863_vm2, %v9492_v18, -inf }
 0x706   :  { %4203 = vmax.xlane.f32.xlu0 %v4202_v3  ;;  %v7816_v50 = vpop.f32.mrf.mxu1 }
 0x707   :  { %v4190_v47 = vadd.f32 %v4182_v37, %v844_v54 }
 0x708   :  { %v4173_v32 = vpop.f32.mrf.mxu1 }
 0x709   :  { %v4208_v9 = vsel %vm863_vm2, %v4190_v47, -inf }
 0x70a   :  { %4206 = vmax.xlane.f32.xlu0 %v4205_v6  ;;  %4209 = vmax.xlane.f32.xlu1 %v4208_v9  ;;  %v7826_v60 = vpop.f32.mrf.mxu1 }
 0x70e   :  { %4212 = vmax.xlane.f32.xlu0 %v4211_v28 }
 0x70f   :  { %v8158_v8 = vpop.eup %8157 }
 0x710   :  { %v860_v52 = vmul.f32 0.6931472, %v8158_v8 }
 0x71b   :  { %4357 = vrot.lane.b32.xlu1 %v9021_v49, %s8632_s1 }
 0x71f   :  { %4433 = vrot.lane.b32.xlu1 %v9034_v55, %s8632_s1 }
 0x723   :  { %4509 = vrot.lane.b32.xlu1 %v9029_v53, %s8632_s1 }
 0x724   :  { %4281 = vrot.lane.b32.xlu0 %v9024_v51, %s8632_s1 }
 0x727   :  { %4661 = vrot.lane.b32.xlu1 %v9037_v57, %s8632_s1 }
 0x728   :  { %4585 = vrot.lane.b32.xlu0 %v9040_v59, %s8632_s1 }
 0x72b   :  { %4813 = vrot.lane.b32.xlu1 %v9043_v61, %s8632_s1 }
 0x72c   :  { %4737 = vrot.lane.b32.xlu0 %v9156_v1, %s8632_s1 }
 0x72f   :  { %5010 = vrot.lane.b32.xlu1 %v8934_v23, %s8633_s15 }
 0x730   :  { %4932 = vrot.lane.b32.xlu0 %v8924_v16, %s8633_s15 }
 0x733   :  { %5008 = vrot.lane.b32.xlu1 %v8942_v27, %s8633_s15  ;;  %v4184_v27 = vmul.f32 0.35355338, %v4173_v32 }
 0x734   :  { %4930 = vrot.lane.b32.xlu0 %v8931_v20, %s8633_s15 }
 0x735   :  { %v9524_v20 = vadd.f32 %v4184_v27, %v860_v52 }
 0x738   :  { %5088 = vrot.lane.b32.xlu0 %v8945_v29, %s8633_s15 }
 0x742   :  { %v4195_v12 = vpop.xlane.xlu0 %4194 }
 0x743   :  { %v4217_v15 = vsub.f32 %v9469_v25, %v4195_v12  ;;  %v4214_v25 = vsel %vm863_vm2, %v9524_v20, -inf }
 0x745   :  { %v4225_v54 = vmul.f32 1.442695, %v4217_v15 }
 0x746   :  { %v4201_v23 = vpop.xlane.xlu0 %4200 }
 0x747   :  { %8159 = vpow2.f32 %v4225_v54  ;;  %v4219_v16 = vsub.f32 %v9473_v4, %v4201_v23 }
 0x749   :  { %v4229_v33 = vmul.f32 1.442695, %v4219_v16 }
 0x74b   :  { %8161 = vpow2.f32 %v4229_v33 }
 0x754   :  { %v9526_v37 = vpop.eup %8159 }
 0x755   :  { %v4241_v29 = vsel %vm863_vm2, %v9526_v37, 0.0 }
 0x757   :  { %4242 = vadd.xlane.f32.xlu0 %v4241_v29  ;;  %4215 = vmax.xlane.f32.xlu1 %v4214_v25 }
 0x758   :  { %v9532_v3 = vpop.eup %8161 }
 0x759   :  { %v4247_v4 = vsel %vm863_vm2, %v9532_v3, 0.0 }
 0x75b   :  { %4248 = vadd.xlane.f32.xlu0 %v4247_v4 }
 0x768   :  { %5166 = vrot.lane.b32.xlu1 %v8962_v38, %s8633_s15 }
 0x78b   :  { %v4198_v50 = vpop.xlane.xlu1 %4197 }
 0x78c   :  { %v4218_v32 = vsub.f32 %v9479_v10, %v4198_v50 }
 0x78e   :  { %v4227_v6 = vmul.f32 1.442695, %v4218_v32 }
 0x78f   :  { %v4204_v9 = vpop.xlane.xlu0 %4203 }
 0x790   :  { %8163 = vpow2.f32 %v4227_v6  ;;  %v4220_v60 = vsub.f32 %v9483_v22, %v4204_v9 }
 0x792   :  { %v4231_v28 = vmul.f32 1.442695, %v4220_v60 }
 0x793   :  { %v4207_v2 = vpop.xlane.xlu0 %4206  ;;  %v4210_v63 = vpop.xlane.xlu1 %4209 }
 0x794   :  { %8165 = vpow2.f32 %v4231_v28  ;;  %v4221_v12 = vsub.f32 %v9487_v17, %v4207_v2  ;;  %v4222_v15 = vsub.f32 %v4190_v47, %v4210_v63 }
 0x796   :  { %v4233_v54 = vmul.f32 1.442695, %v4221_v12  ;;  %v4235_v23 = vmul.f32 1.442695, %v4222_v15 }
 0x797   :  { %v4213_v16 = vpop.xlane.xlu0 %4212  ;;  %v4358_v33 = vpop.permute.xlu1 %4357 }
 0x798   :  { %8167 = vpow2.f32 %v4233_v54  ;;  %v4223_v38 = vsub.f32 %v9492_v18, %v4213_v16  ;;  %7833 = vmatpush3.msra.mxu1 %v4358_v33 }
 0x799   :  { %8169 = vpow2.f32 %v4235_v23  ;;  %7842 = vmatprep.subr.mxu1 %v8629_v0 }
 0x79a   :  { %v4237_v10 = vmul.f32 1.442695, %v4223_v38 }
 0x79b   :  { %v4282_v22 = vpop.permute.xlu0 %4281  ;;  %v4434_v32 = vpop.permute.xlu1 %4433 }
 0x79c   :  { %8171 = vpow2.f32 %v4237_v10  ;;  %7828 = vmatpush3.msra.mxu0 %v4282_v22 }
 0x79d   :  { %v9543_v8 = vpop.eup %8163  ;;  %7837 = vmatprep.subr.mxu0 %v8629_v0 }
 0x79e   :  { %v4244_v17 = vsel %vm863_vm2, %v9543_v8, 0.0 }
 0x79f   :  { %4245 = vadd.xlane.f32.xlu1 %v4244_v17  ;;  %v4586_v6 = vpop.permute.xlu0 %4585  ;;  %v4510_v9 = vpop.permute.xlu1 %4509 }
 0x7a1   :  { %v9548_v47 = vpop.eup %8165 }
 0x7a2   :  { %v4250_v18 = vsel %vm863_vm2, %v9548_v47, 0.0 }
 0x7a3   :  { %4251 = vadd.xlane.f32.xlu1 %v4250_v18  ;;  %v9574_v60 = vpop.permute.xlu0 %4737  ;;  %v4662_v28 = vpop.permute.xlu1 %4661 }
 0x7a5   :  { %v9552_v27 = vpop.eup %8167 }
 0x7a6   :  { %v9554_v52 = vpop.eup %8169  ;;  %v4253_v29 = vsel %vm863_vm2, %v9552_v27, 0.0 }
 0x7a7   :  { %4254 = vadd.xlane.f32.xlu0 %v4253_v29  ;;  %v4256_v25 = vsel %vm863_vm2, %v9554_v52, 0.0 }
 0x7a8   :  { %4257 = vadd.xlane.f32.xlu1 %v4256_v25 }
 0x7a9   :  { %v9560_v4 = vpop.eup %8171 }
 0x7aa   :  { %v4259_v50 = vsel %vm863_vm2, %v9560_v4, 0.0 }
 0x7ab   :  { %4260 = vadd.xlane.f32.xlu0 %v4259_v50 }
 0x7b9   :  { %5164 = vrot.lane.b32.xlu1 %v8979_v42, %s8633_s15  ;;  %v9578_v42 = vpop.permute.xlu0 %4932 }
 0x7bd   :  { %5322 = vrot.lane.b32.xlu1 %v8971_v40, %s8633_s15  ;;  %v9580_v40 = vpop.permute.xlu1 %4813 }
 0x7c1   :  { %5086 = vrot.lane.b32.xlu0 %v8957_v36, %s8633_s15  ;;  %v9584_v36 = vpop.permute.xlu0 %4930  ;;  %v9586_v2 = vpop.permute.xlu1 %5010 }
 0x7c5   :  { %5244 = vrot.lane.b32.xlu0 %v8947_v31, %s8633_s15  ;;  %v9588_v31 = vpop.permute.xlu0 %5088 }
 0x7c9   :  { %5242 = vrot.lane.b32.xlu0 %v8955_v34, %s8633_s15  ;;  %v9590_v34 = vpop.permute.xlu1 %5008 }
 0x7cd   :  { %5400 = vrot.lane.b32.xlu0 %v8964_v39, %s8633_s15 }
 0x7d1   :  { %5398 = vrot.lane.b32.xlu0 %v8977_v41, %s8633_s15 }
 0x7e0   :  { %v4243_v63 = vpop.xlane.xlu0 %4242  ;;  %v4216_v12 = vpop.xlane.xlu1 %4215 }
 0x7e1   :  { %8173 = vrcp.f32 %v4243_v63  ;;  %v4224_v39 = vsub.f32 %v9524_v20, %v4216_v12 }
 0x7e3   :  { %v4239_v15 = vmul.f32 1.442695, %v4224_v39 }
 0x7e4   :  { %v4249_v54 = vpop.xlane.xlu0 %4248 }
 0x7e5   :  { %8175 = vpow2.f32 %v4239_v15 }
 0x7e6   :  { %8177 = vrcp.f32 %v4249_v54 }
 0x7ee   :  { %v8174_v23 = vpop.eup %8173 }
 0x7ef   :  { %v4273_v41 = vmul.f32 %v8174_v23, %v9526_v37  ;;  %v9613_v37 = vpop.permute.xlu1 %5166  ;;  %v738_v23 = vld [vmem:[#allocation8 + $0x18] sm:$0xff] }
 0x7f1   :  { %7830 = vmatmul.mubr.msk.f32.vlgmr.msra.gmra.mxu0 %vm863_vm2, %v4273_v41  ;;  %v770_v41 = vmax.f32 %v738_v23, 1e-06 }
 0x7f2   :  { %v9595_v16 = vpop.eup %8175  ;;  %7838 = vmatpush3.msra.mxu0 %v4434_v32  ;;  %7839 = vmatprep.mubr.msk.f32.mxu0 %vm8630_vm1, %v8629_v0 }
 0x7f3   :  { %v8178_v33 = vpop.eup %8177  ;;  %7847 = vmatprep.subr.mxu0 %v8629_v0  ;;  %v4262_v20 = vsel %vm863_vm2, %v9595_v16, 0.0 }
 0x7f4   :  { %4263 = vadd.xlane.f32.xlu1 %v4262_v20  ;;  %v4275_v38 = vmul.f32 %v8178_v33, %v9532_v3 }
 0x7f6   :  { %7840 = vmatmul.mubr.msk.f32.vlgmr.msra.gmra.mxu0 %vm863_vm2, %v4275_v38 }
 0x7f7   :  { %7848 = vmatpush3.msra.mxu0 %v4586_v6  ;;  %7849 = vmatprep.mubr.msk.f32.mxu0 %vm8630_vm1, %v8629_v0 }
 0x7f8   :  { %7857 = vmatprep.subr.mxu0 %v8629_v0 }
 0x805   :  { %5320 = vrot.lane.b32.xlu1 %v8997_v45, %s8633_s15 }
 0x809   :  { %5478 = vrot.lane.b32.xlu1 %v8991_v43, %s8633_s15 }
 0x80d   :  { %5476 = vrot.lane.b32.xlu1 %v9008_v46, %s8633_s15 }
 0x828   :  { %v4246_v3 = vpop.xlane.xlu1 %4245 }
 0x829   :  { %8179 = vrcp.f32 %v4246_v3 }
 0x82c   :  { %v4252_v10 = vpop.xlane.xlu1 %4251 }
 0x82d   :  { %8181 = vrcp.f32 %v4252_v10 }
 0x830   :  { %v4255_v22 = vpop.xlane.xlu0 %4254 }
 0x831   :  { %8183 = vrcp.f32 %v4255_v22  ;;  %v4258_v17 = vpop.xlane.xlu1 %4257 }
 0x832   :  { %8185 = vrcp.f32 %v4258_v17 }
 0x834   :  { %v4261_v18 = vpop.xlane.xlu0 %4260 }
 0x835   :  { %8187 = vrcp.f32 %v4261_v18 }
 0x836   :  { %v8180_v29 = vpop.eup %8179 }
 0x837   :  { %v4274_v45 = vmul.f32 %v8180_v29, %v9543_v8 }
 0x838   :  { %v5087_v25 = vpop.permute.xlu0 %5086 }
 0x839   :  { %7835 = vmatmul.mubr.msk.f32.vlgmr.msra.gmra.mxu1 %vm863_vm2, %v4274_v45 }
 0x83a   :  { %v8182_v43 = vpop.eup %8181  ;;  %7843 = vmatpush3.msra.mxu1 %v4510_v9  ;;  %7844 = vmatprep.mubr.msk.f32.mxu1 %vm8630_vm1, %v8629_v0 }
 0x83b   :  { %7852 = vmatprep.subr.mxu1 %v8629_v0  ;;  %v4276_v46 = vmul.f32 %v8182_v43, %v9548_v47 }
 0x83c   :  { %v5245_v63 = vpop.permute.xlu0 %5244 }
 0x83d   :  { %7845 = vmatmul.mubr.msk.f32.vlgmr.msra.gmra.mxu1 %vm863_vm2, %v4276_v46 }
 0x83e   :  { %v8184_v50 = vpop.eup %8183  ;;  %7853 = vmatpush3.msra.mxu1 %v4662_v28  ;;  %7854 = vmatprep.mubr.msk.f32.mxu1 %vm8630_vm1, %v8629_v0 }
 0x83f   :  { %v8186_v8 = vpop.eup %8185  ;;  %7862 = vmatprep.subr.mxu1 %v8629_v0  ;;  %v4277_v32 = vmul.f32 %v8184_v50, %v9552_v27 }
 0x840   :  { %v4278_v6 = vmul.f32 %v8186_v8, %v9554_v52  ;;  %v5243_v27 = vpop.permute.xlu0 %5242 }
 0x841   :  { %7850 = vmatmul.mubr.msk.f32.vlgmr.msra.gmra.mxu0 %vm863_vm2, %v4277_v32 }
 0x842   :  { %v8188_v9 = vpop.eup %8187  ;;  %7855 = vmatmul.mubr.msk.f32.vlgmr.msra.gmra.mxu1 %vm863_vm2, %v4278_v6  ;;  %7858 = vmatpush3.msra.mxu0 %v9574_v60  ;;  %v5165_v60 = vpop.permute.xlu1 %5164 }
 0x843   :  { %7863 = vmatpush3.msra.mxu1 %v9580_v40  ;;  %7859 = vmatprep.mubr.msk.f32.mxu0 %vm8630_vm1, %v8629_v0  ;;  %v4279_v47 = vmul.f32 %v8188_v9, %v9560_v4 }
 0x844   :  { %7867 = vmatprep.subr.mxu0 %v8629_v0  ;;  %7864 = vmatprep.mubr.msk.f32.mxu1 %vm8630_vm1, %v8629_v0  ;;  %v5401_v52 = vpop.permute.xlu0 %5400 }
 0x845   :  { %7860 = vmatmul.mubr.msk.f32.vlgmr.msra.gmra.mxu0 %vm863_vm2, %v4279_v47  ;;  %7872 = vmatprep.subr.mxu1 %v8629_v0 }
 0x846   :  { %7868 = vmatpush3.xpose.msk.msra.mxu0 %vm863_vm2, %v9578_v42  ;;  %7869 = vmatprep.mubr.msk.f32.mxu0 %vm8630_vm1, %v8629_v0  ;;  %v5323_v28 = vpop.permute.xlu1 %5322 }
 0x847   :  { %7877 = vmatprep.subr.mxu0 %v8629_v0 }
 0x848   :  { %v5399_v4 = vpop.permute.xlu0 %5398 }
 0x849   :  { %7870 = vmatmul.mubr.msk.f32.vlgmr.msra.gmra.mxu0 %vm863_vm2, %v9584_v36 }
 0x84a   :  { %7878 = vmatpush3.xpose.msk.msra.mxu0 %vm863_vm2, %v9588_v31  ;;  %7879 = vmatprep.mubr.msk.f32.mxu0 %vm8630_vm1, %v8629_v0 }
 0x84b   :  { %7887 = vmatprep.subr.mxu0 %v8629_v0 }
 0x84d   :  { %7880 = vmatmul.mubr.msk.f32.vlgmr.msra.gmra.mxu0 %vm863_vm2, %v5087_v25 }
 0x84e   :  { %7888 = vmatpush3.xpose.msk.msra.mxu0 %vm863_vm2, %v5245_v63  ;;  %7889 = vmatprep.mubr.msk.f32.mxu0 %vm8630_vm1, %v8629_v0 }
 0x84f   :  { %7897 = vmatprep.subr.mxu0 %v8629_v0 }
 0x851   :  { %7890 = vmatmul.mubr.msk.f32.vlgmr.msra.gmra.mxu0 %vm863_vm2, %v5243_v27 }
 0x852   :  { %7898 = vmatpush3.xpose.msk.msra.mxu0 %vm863_vm2, %v5401_v52  ;;  %7899 = vmatprep.mubr.msk.f32.mxu0 %vm8630_vm1, %v8629_v0 }
 0x853   :  { %7907 = vmatprep.subr.mxu0 %v8629_v0 }
 0x855   :  { %7900 = vmatmul.mubr.msk.f32.vlgmr.msra.gmra.mxu0 %vm863_vm2, %v5399_v4 }
 0x856   :  { %7909 = vmatprep.mubr.msk.f32.mxu0 %vm8630_vm1, %v8629_v0 }
 0x87d   :  { %v4264_v42 = vpop.xlane.xlu1 %4263 }
 0x87e   :  { %8189 = vrcp.f32 %v4264_v42 }
 0x87f   :  { %8191 = vlog2.f32 %v770_v41  ;;  %v758_v41 = vld [vmem:[#allocation8 + $0xb8] sm:$0xff] }
 0x881   :  { %v5321_v31 = vpop.permute.xlu1 %5320 }
 0x88b   :  { %v8190_v40 = vpop.eup %8189 }
 0x88c   :  { %v4280_v36 = vmul.f32 %v8190_v40, %v9595_v16  ;;  %v746_v16 = vld [vmem:[#allocation8 + $0x58] sm:$0xff]  ;;  %v8192_v29 = vpop.eup %8191 }
 0x88d   :  { %v778_v33 = vmax.f32 %v746_v16, 1e-06  ;;  %v806_v46 = vmul.f32 0.6931472, %v8192_v29  ;;  %v762_v16 = vld [vmem:[#allocation8 + $0xd8] sm:$0xff] }
 0x88e   :  { %7865 = vmatmul.mubr.msk.f32.vlgmr.msra.gmra.mxu1 %vm863_vm2, %v4280_v36 }
 0x88f   :  { %7873 = vmatpush3.xpose.msk.msra.mxu1 %vm863_vm2, %v9586_v2  ;;  %7874 = vmatprep.mubr.msk.f32.mxu1 %vm8630_vm1, %v8629_v0  ;;  %v5479_v2 = vpop.permute.xlu1 %5478  ;;  %8193 = vlog2.f32 %v778_v33  ;;  %v790_v33 = vmax.f32 %v758_v41, 1e-06 }
 0x890   :  { %7882 = vmatprep.subr.mxu1 %v8629_v0 }
 0x892   :  { %7875 = vmatmul.mubr.msk.f32.vlgmr.msra.gmra.mxu1 %vm863_vm2, %v9590_v34 }
 0x893   :  { %7883 = vmatpush3.xpose.msk.msra.mxu1 %vm863_vm2, %v9613_v37  ;;  %7884 = vmatprep.mubr.msk.f32.mxu1 %vm8630_vm1, %v8629_v0  ;;  %v5477_v34 = vpop.permute.xlu1 %5476 }
 0x894   :  { %7892 = vmatprep.subr.mxu1 %v8629_v0 }
 0x896   :  { %7885 = vmatmul.mubr.msk.f32.vlgmr.msra.gmra.mxu1 %vm863_vm2, %v5165_v60 }
 0x897   :  { %7893 = vmatpush3.xpose.msk.msra.mxu1 %vm863_vm2, %v5323_v28  ;;  %7894 = vmatprep.mubr.msk.f32.mxu1 %vm8630_vm1, %v8629_v0 }
 0x898   :  { %7902 = vmatprep.subr.mxu1 %v8629_v0 }
 0x89a   :  { %7895 = vmatmul.mubr.msk.f32.vlgmr.msra.gmra.mxu1 %vm863_vm2, %v5321_v31  ;;  %v742_v31 = vld [vmem:[#allocation8 + $0x38] sm:$0xff] }
 0x89b   :  { %7903 = vmatpush3.xpose.msk.msra.mxu1 %vm863_vm2, %v5479_v2  ;;  %7904 = vmatprep.mubr.msk.f32.mxu1 %vm8630_vm1, %v8629_v0  ;;  %v774_v2 = vmax.f32 %v742_v31, 1e-06 }
 0x89c   :  { %7912 = vmatprep.subr.mxu1 %v8629_v0  ;;  %v8194_v25 = vpop.eup %8193 }
 0x89d   :  { %v822_v9 = vmul.f32 0.6931472, %v8194_v25  ;;  %8195 = vlog2.f32 %v774_v2 }
 0x89e   :  { %7905 = vmatmul.mubr.msk.f32.vlgmr.msra.gmra.mxu1 %vm863_vm2, %v5477_v34  ;;  %v750_v34 = vld [vmem:[#allocation8 + $0x78] sm:$0xff] }
 0x89f   :  { %7914 = vmatprep.mubr.msk.f32.mxu1 %vm8630_vm1, %v8629_v0 }
 0x8b1   :  { %v9691_v12 = vpop.f32.mrf.mxu0 }
 0x8b3   :  { %v7831_v39 = vpop.f32.mrf.mxu0 }
 0x8b4   :  { %v754_v39 = vld [vmem:[#allocation8 + $0x98] sm:$0xff] }
 0x8b5   :  { %v786_v23 = vmax.f32 %v754_v39, 1e-06 }
 0x8b6   :  { %v9693_v15 = vpop.f32.mrf.mxu0 }
 0x8b8   :  { %v7841_v54 = vpop.f32.mrf.mxu0 }
 0x8b9   :  { %v782_v54 = vmax.f32 %v750_v34, 1e-06 }
 0x8bb   :  { %8197 = vlog2.f32 %v782_v54 }
 0x8bc   :  { %8199 = vlog2.f32 %v786_v23 }
 0x8bd   :  { %8201 = vlog2.f32 %v790_v33 }
 0x8f9   :  { %v9695_v20 = vpop.f32.mrf.mxu1 }
 0x8fb   :  { %v7836_v38 = vpop.f32.mrf.mxu1 }
 0x8fc   :  { %v794_v38 = vmax.f32 %v762_v16, 1e-06 }
 0x8fd   :  { %v9697_v37 = vpop.f32.mrf.mxu1 }
 0x8fe   :  { %8203 = vlog2.f32 %v794_v38 }
 0x8ff   :  { %v7846_v3 = vpop.f32.mrf.mxu1 }
 0x900   :  { %v766_v3 = vld [vmem:[#allocation8 + $0xf8] sm:$0xff] }
 0x901   :  { %v9699_v10 = vpop.f32.mrf.mxu0 }
 0x902   :  { %v9701_v22 = vpop.f32.mrf.mxu1 }
 0x903   :  { %v7851_v17 = vpop.f32.mrf.mxu0 }
 0x904   :  { %v7856_v18 = vpop.f32.mrf.mxu1  ;;  %v798_v17 = vmax.f32 %v766_v3, 1e-06 }
 0x905   :  { %v9703_v45 = vpop.f32.mrf.mxu0  ;;  %v8196_v18 = vpop.eup %8195 }
 0x906   :  { %8205 = vlog2.f32 %v798_v17  ;;  %v8198_v25 = vpop.eup %8197 }
 0x907   :  { %v7861_v43 = vpop.f32.mrf.mxu0 }
 0x909   :  { %v5004_v50 = vpop.f32.mrf.mxu0 }
 0x90a   :  { %v5554_v8 = vmul.f32 0.35355338, %v5004_v50 }
 0x90b   :  { %v7871_v32 = vpop.f32.mrf.mxu0 }
 0x90c   :  { %v9705_v6 = vadd.f32 %v5554_v8, %v806_v46  ;;  %v814_v46 = vmul.f32 0.6931472, %v8196_v18  ;;  %v8200_v8 = vpop.eup %8199 }
 0x90d   :  { %v5160_v63 = vpop.f32.mrf.mxu0 }
 0x90e   :  { %v5556_v47 = vmul.f32 0.35355338, %v5160_v63  ;;  %v5570_v27 = vsel %vm863_vm2, %v9705_v6, -inf }
 0x90f   :  { %5571 = vmax.xlane.f32.xlu0 %v5570_v27  ;;  %v7881_v52 = vpop.f32.mrf.mxu0  ;;  %v8202_v27 = vpop.eup %8201 }
 0x910   :  { %v9709_v4 = vadd.f32 %v5556_v47, %v822_v9  ;;  %v830_v47 = vmul.f32 0.6931472, %v8198_v25  ;;  %v838_v52 = vmul.f32 0.6931472, %v8200_v8  ;;  %v846_v54 = vmul.f32 0.6931472, %v8202_v27 }
 0x911   :  { %v5316_v60 = vpop.f32.mrf.mxu0 }
 0x912   :  { %v5576_v28 = vsel %vm863_vm2, %v9709_v4, -inf }
 0x913   :  { %5577 = vmax.xlane.f32.xlu0 %v5576_v28  ;;  %v7891_v42 = vpop.f32.mrf.mxu0 }
 0x914   :  { %v8204_v42 = vpop.eup %8203 }
 0x915   :  { %v5472_v40 = vpop.f32.mrf.mxu0  ;;  %v8206_v23 = vpop.eup %8205  ;;  %v854_v41 = vmul.f32 0.6931472, %v8204_v42 }
 0x916   :  { %v5560_v38 = vmul.f32 0.35355338, %v5472_v40 }
 0x917   :  { %v7901_v36 = vpop.f32.mrf.mxu0 }
 0x918   :  { %v5558_v36 = vmul.f32 0.35355338, %v5316_v60  ;;  %v5568_v25 = vadd.f32 %v5560_v38, %v854_v41 }
 0x91a   :  { %v5566_v33 = vadd.f32 %v5558_v36, %v838_v52  ;;  %v5588_v40 = vsel %vm863_vm2, %v5568_v25, -inf }
 0x91c   :  { %v5582_v8 = vsel %vm863_vm2, %v5566_v33, -inf }
 0x94e   :  { %v9713_v29 = vpop.f32.mrf.mxu1 }
 0x950   :  { %v7866_v43 = vpop.f32.mrf.mxu1 }
 0x952   :  { %v5082_v50 = vpop.f32.mrf.mxu1 }
 0x953   :  { %v5555_v32 = vmul.f32 0.35355338, %v5082_v50 }
 0x954   :  { %v7876_v9 = vpop.f32.mrf.mxu1 }
 0x955   :  { %v5563_v63 = vadd.f32 %v5555_v32, %v814_v46  ;;  %v862_v46 = vmul.f32 0.6931472, %v8206_v23 }
 0x956   :  { %v5238_v28 = vpop.f32.mrf.mxu1 }
 0x957   :  { %v5557_v31 = vmul.f32 0.35355338, %v5238_v28  ;;  %v5573_v2 = vsel %vm863_vm2, %v5563_v63, -inf }
 0x958   :  { %5574 = vmax.xlane.f32.xlu1 %v5573_v2  ;;  %v7886_v34 = vpop.f32.mrf.mxu1 }
 0x959   :  { %v5565_v39 = vadd.f32 %v5557_v31, %v830_v47 }
 0x95a   :  { %v5394_v16 = vpop.f32.mrf.mxu1 }
 0x95b   :  { %v5559_v3 = vmul.f32 0.35355338, %v5394_v16  ;;  %v5579_v17 = vsel %vm863_vm2, %v5565_v39, -inf }
 0x95c   :  { %5580 = vmax.xlane.f32.xlu0 %v5579_v17  ;;  %v7896_v18 = vpop.f32.mrf.mxu1 }
 0x95d   :  { %v5567_v43 = vadd.f32 %v5559_v3, %v846_v54 }
 0x95e   :  { %v5550_v60 = vpop.f32.mrf.mxu1 }
 0x95f   :  { %v5561_v50 = vmul.f32 0.35355338, %v5550_v60  ;;  %v5585_v32 = vsel %vm863_vm2, %v5567_v43, -inf }
 0x960   :  { %5583 = vmax.xlane.f32.xlu0 %v5582_v8  ;;  %5586 = vmax.xlane.f32.xlu1 %v5585_v32  ;;  %v7906_v9 = vpop.f32.mrf.mxu1 }
 0x961   :  { %v5569_v47 = vadd.f32 %v5561_v50, %v862_v46 }
 0x963   :  { %v5591_v27 = vsel %vm863_vm2, %v5569_v47, -inf }
 0x964   :  { %5589 = vmax.xlane.f32.xlu0 %v5588_v40  ;;  %5592 = vmax.xlane.f32.xlu1 %v5591_v27 }
 0x975   :  { %5734 = vrot.lane.b32.xlu1 %v9021_v49, %s8633_s15 }
 0x979   :  { %5810 = vrot.lane.b32.xlu1 %v9034_v55, %s8633_s15 }
 0x97a   :  { %5658 = vrot.lane.b32.xlu0 %v9024_v51, %s8633_s15 }
 0x97d   :  { %5886 = vrot.lane.b32.xlu1 %v9029_v53, %s8633_s15 }
 0x97e   :  { %5962 = vrot.lane.b32.xlu0 %v9040_v59, %s8633_s15 }
 0x981   :  { %6038 = vrot.lane.b32.xlu1 %v9037_v57, %s8633_s15 }
 0x998   :  { %v5572_v52 = vpop.xlane.xlu0 %5571 }
 0x999   :  { %v5594_v28 = vsub.f32 %v9705_v6, %v5572_v52 }
 0x99b   :  { %v5602_v42 = vmul.f32 1.442695, %v5594_v28 }
 0x99c   :  { %v5578_v49 = vpop.xlane.xlu0 %5577 }
 0x99d   :  { %8207 = vpow2.f32 %v5602_v42  ;;  %v5596_v55 = vsub.f32 %v9709_v4, %v5578_v49 }
 0x99f   :  { %v5606_v36 = vmul.f32 1.442695, %v5596_v55 }
 0x9a1   :  { %8209 = vpow2.f32 %v5606_v36 }
 0x9aa   :  { %v9735_v51 = vpop.eup %8207 }
 0x9ab   :  { %v5618_v53 = vsel %vm863_vm2, %v9735_v51, 0.0 }
 0x9ac   :  { %5619 = vadd.xlane.f32.xlu0 %v5618_v53 }
 0x9ae   :  { %v9739_v59 = vpop.eup %8209 }
 0x9af   :  { %v5624_v57 = vsel %vm863_vm2, %v9739_v59, 0.0 }
 0x9b0   :  { %5625 = vadd.xlane.f32.xlu0 %v5624_v57 }
 0x9e1   :  { %v5575_v6 = vpop.xlane.xlu1 %5574 }
 0x9e2   :  { %v5595_v31 = vsub.f32 %v5563_v63, %v5575_v6 }
 0x9e4   :  { %v5604_v2 = vmul.f32 1.442695, %v5595_v31 }
 0x9e5   :  { %v5581_v34 = vpop.xlane.xlu0 %5580 }
 0x9e6   :  { %8211 = vpow2.f32 %v5604_v2  ;;  %v5597_v4 = vsub.f32 %v5565_v39, %v5581_v34 }
 0x9e8   :  { %v5608_v54 = vmul.f32 1.442695, %v5597_v4 }
 0x9e9   :  { %v5584_v23 = vpop.xlane.xlu0 %5583  ;;  %v5587_v41 = vpop.xlane.xlu1 %5586 }
 0x9ea   :  { %8213 = vpow2.f32 %v5608_v54  ;;  %v5598_v16 = vsub.f32 %v5566_v33, %v5584_v23  ;;  %v5599_v38 = vsub.f32 %v5567_v43, %v5587_v41 }
 0x9ec   :  { %v5610_v3 = vmul.f32 1.442695, %v5598_v16  ;;  %v5612_v17 = vmul.f32 1.442695, %v5599_v38 }
 0x9ed   :  { %v5590_v18 = vpop.xlane.xlu0 %5589  ;;  %v5593_v46 = vpop.xlane.xlu1 %5592 }
 0x9ee   :  { %8215 = vpow2.f32 %v5610_v3  ;;  %v5600_v60 = vsub.f32 %v5568_v25, %v5590_v18  ;;  %v5601_v50 = vsub.f32 %v5569_v47, %v5593_v46 }
 0x9ef   :  { %8217 = vpow2.f32 %v5612_v17 }
 0x9f0   :  { %v5614_v8 = vmul.f32 1.442695, %v5600_v60  ;;  %v5616_v63 = vmul.f32 1.442695, %v5601_v50 }
 0x9f1   :  { %v5659_v32 = vpop.permute.xlu0 %5658  ;;  %v5735_v9 = vpop.permute.xlu1 %5734 }
 0x9f2   :  { %8219 = vpow2.f32 %v5614_v8  ;;  %7908 = vmatpush3.msra.mxu0 %v5659_v32  ;;  %7913 = vmatpush3.msra.mxu1 %v5735_v9 }
 0x9f3   :  { %v9743_v39 = vpop.eup %8211  ;;  %8221 = vpow2.f32 %v5616_v63  ;;  %7917 = vmatprep.subr.mxu0 %v8629_v0  ;;  %7922 = vmatprep.subr.mxu1 %v8629_v0 }
 0x9f4   :  { %v5621_v33 = vsel %vm863_vm2, %v9743_v39, 0.0 }
 0x9f5   :  { %5622 = vadd.xlane.f32.xlu1 %v5621_v33 }
 0x9f7   :  { %v9749_v43 = vpop.eup %8213 }
 0x9f8   :  { %v5627_v25 = vsel %vm863_vm2, %v9749_v43, 0.0 }
 0x9f9   :  { %5628 = vadd.xlane.f32.xlu1 %v5627_v25 }
 0x9fb   :  { %v9753_v47 = vpop.eup %8215 }
 0x9fc   :  { %v9755_v40 = vpop.eup %8217  ;;  %v5630_v27 = vsel %vm863_vm2, %v9753_v47, 0.0 }
 0x9fd   :  { %5631 = vadd.xlane.f32.xlu0 %v5630_v27  ;;  %v5633_v52 = vsel %vm863_vm2, %v9755_v40, 0.0  ;;  %v6318_v27 = vld [vmem:[#allocation15 + $0x18] sm:$0xff] }
 0x9fe   :  { %5634 = vadd.xlane.f32.xlu1 %v5633_v52  ;;  %v6317_v52 = vld [vmem:[#allocation15 + $0x10] sm:$0xff] }
 0x9ff   :  { %v9761_v28 = vpop.eup %8219 }
 0xa00   :  { %v9763_v42 = vpop.eup %8221  ;;  %v5636_v49 = vsel %vm863_vm2, %v9761_v28, 0.0 }
 0xa01   :  { %5637 = vadd.xlane.f32.xlu0 %v5636_v49  ;;  %v5639_v55 = vsel %vm863_vm2, %v9763_v42, 0.0 }
 0xa02   :  { %5640 = vadd.xlane.f32.xlu1 %v5639_v55 }
 0xa13   :  { %6190 = vrot.lane.b32.xlu1 %v9043_v61, %s8633_s15  ;;  %v5963_v61 = vpop.permute.xlu0 %5962 }
 0xa17   :  { %3522 = vrot.lane.b32.xlu1 %v9459_v19, %s8616_s29  ;;  %6114 = vrot.lane.b32.xlu0 %v9156_v1, %s8633_s15 }
 0xa1b   :  { %4899 = vrot.lane.b32.xlu1 %v9695_v20, %s8634_s4  ;;  %3520 = vrot.lane.b32.xlu0 %v9455_v56, %s8616_s29 }
 0xa1f   :  { %3526 = vrot.lane.b32.xlu1 %v9461_v26, %s8616_s29  ;;  %4897 = vrot.lane.b32.xlu0 %v9691_v12, %s8634_s4  ;;  %v5811_v26 = vpop.permute.xlu1 %5810 }
 0xa23   :  { %4903 = vrot.lane.b32.xlu1 %v9697_v37, %s8634_s4  ;;  %3524 = vrot.lane.b32.xlu0 %v9457_v58, %s8616_s29 }
 0xa27   :  { %3530 = vrot.lane.b32.xlu1 %v9465_v7, %s8616_s29  ;;  %4901 = vrot.lane.b32.xlu0 %v9693_v15, %s8634_s4 }
 0xa2b   :  { %4907 = vrot.lane.b32.xlu1 %v9701_v22, %s8634_s4  ;;  %3528 = vrot.lane.b32.xlu0 %v9463_v48, %s8616_s29 }
 0xa2f   :  { %3534 = vrot.lane.b32.xlu1 %v9477_v62, %s8616_s29  ;;  %4905 = vrot.lane.b32.xlu0 %v9699_v10, %s8634_s4 }
 0xa33   :  { %4911 = vrot.lane.b32.xlu1 %v9713_v29, %s8634_s4  ;;  %3532 = vrot.lane.b32.xlu0 %v9467_v14, %s8616_s29  ;;  %v5887_v14 = vpop.permute.xlu1 %5886 }
 0xa35   :  { %v5620_v1 = vpop.xlane.xlu0 %5619 }
 0xa36   :  { %8223 = vrcp.f32 %v5620_v1 }
 0xa37   :  { %4909 = vrot.lane.b32.xlu0 %v9703_v45, %s8634_s4  ;;  %v6039_v62 = vpop.permute.xlu1 %6038 }
 0xa39   :  { %v5626_v56 = vpop.xlane.xlu0 %5625 }
 0xa3a   :  { %8225 = vrcp.f32 %v5626_v56 }
 0xa43   :  { %v8224_v58 = vpop.eup %8223 }
 0xa44   :  { %v5650_v19 = vmul.f32 %v8224_v58, %v9735_v51 }
 0xa46   :  { %7910 = vmatmul.mubr.msk.f32.vlgmr.msra.gmra.mxu0 %vm863_vm2, %v5650_v19 }
 0xa47   :  { %v8226_v48 = vpop.eup %8225  ;;  %7918 = vmatpush3.msra.mxu0 %v5811_v26  ;;  %7919 = vmatprep.mubr.msk.f32.mxu0 %vm8630_vm1, %v8629_v0 }
 0xa48   :  { %7927 = vmatprep.subr.mxu0 %v8629_v0  ;;  %v5652_v7 = vmul.f32 %v8226_v48, %v9739_v59 }
 0xa4a   :  { %7920 = vmatmul.mubr.msk.f32.vlgmr.msra.gmra.mxu0 %vm863_vm2, %v5652_v7 }
 0xa4b   :  { %7928 = vmatpush3.msra.mxu0 %v5963_v61  ;;  %7929 = vmatprep.mubr.msk.f32.mxu0 %vm8630_vm1, %v8629_v0 }
 0xa4c   :  { %7937 = vmatprep.subr.mxu0 %v8629_v0 }
 0xa7e   :  { %v5623_v12 = vpop.xlane.xlu1 %5622 }
 0xa7f   :  { %8227 = vrcp.f32 %v5623_v12 }
 0xa82   :  { %v5629_v15 = vpop.xlane.xlu1 %5628 }
 0xa83   :  { %8229 = vrcp.f32 %v5629_v15 }
 0xa86   :  { %v5632_v20 = vpop.xlane.xlu0 %5631 }
 0xa87   :  { %8231 = vrcp.f32 %v5632_v20  ;;  %v5635_v37 = vpop.xlane.xlu1 %5634 }
 0xa88   :  { %8233 = vrcp.f32 %v5635_v37 }
 0xa8a   :  { %v5638_v10 = vpop.xlane.xlu0 %5637 }
 0xa8b   :  { %8235 = vrcp.f32 %v5638_v10  ;;  %v5641_v22 = vpop.xlane.xlu1 %5640 }
 0xa8c   :  { %v8228_v45 = vpop.eup %8227  ;;  %8237 = vrcp.f32 %v5641_v22 }
 0xa8d   :  { %v5651_v29 = vmul.f32 %v8228_v45, %v9743_v39 }
 0xa8e   :  { %v6115_v36 = vpop.permute.xlu0 %6114 }
 0xa8f   :  { %v6191_v51 = vpop.permute.xlu1 %6190  ;;  %7915 = vmatmul.mubr.msk.f32.vlgmr.msra.gmra.mxu1 %vm863_vm2, %v5651_v29 }
 0xa90   :  { %v8230_v53 = vpop.eup %8229  ;;  %7923 = vmatpush3.msra.mxu1 %v5887_v14  ;;  %7924 = vmatprep.mubr.msk.f32.mxu1 %vm8630_vm1, %v8629_v0 }
 0xa91   :  { %7932 = vmatprep.subr.mxu1 %v8629_v0  ;;  %v5653_v59 = vmul.f32 %v8230_v53, %v9749_v43 }
 0xa92   :  { %v3521_v57 = vpop.permute.xlu0 %3520 }
 0xa93   :  { %3545 = vst.msk [vmem:[#allocation2] sm:$0xff] %vm3544_vm3, %v3521_v57  ;;  %v3523_v6 = vpop.permute.xlu1 %3522  ;;  %7925 = vmatmul.mubr.msk.f32.vlgmr.msra.gmra.mxu1 %vm863_vm2, %v5653_v59 }
 0xa94   :  { %v8232_v31 = vpop.eup %8231  ;;  %3546 = vst.msk [vmem:[#allocation2 + $0x8] sm:$0xff] %vm3544_vm3, %v3523_v6  ;;  %7933 = vmatpush3.msra.mxu1 %v6039_v62  ;;  %7934 = vmatprep.mubr.msk.f32.mxu1 %vm8630_vm1, %v8629_v0 }
 0xa95   :  { %v8234_v2 = vpop.eup %8233  ;;  %7942 = vmatprep.subr.mxu1 %v8629_v0  ;;  %v5654_v34 = vmul.f32 %v8232_v31, %v9753_v47 }
 0xa96   :  { %v4898_v4 = vpop.permute.xlu0 %4897  ;;  %v5655_v54 = vmul.f32 %v8234_v2, %v9755_v40 }
 0xa97   :  { %4922 = vst.msk [vmem:[#allocation2] sm:$0xff] %vm4921_vm4, %v4898_v4  ;;  %v4900_v23 = vpop.permute.xlu1 %4899  ;;  %7930 = vmatmul.mubr.msk.f32.vlgmr.msra.gmra.mxu0 %vm863_vm2, %v5654_v34  ;;  %v7330_v34 = vld [vmem:[%s10180_s13] ss:$0 sm:$0xff] }
 0xa98   :  { %v8236_v41 = vpop.eup %8235  ;;  %4923 = vst.msk [vmem:[#allocation2 + $0x8] sm:$0xff] %vm4921_vm4, %v4900_v23  ;;  %7935 = vmatmul.mubr.msk.f32.vlgmr.msra.gmra.mxu1 %vm863_vm2, %v5655_v54  ;;  %7938 = vmatpush3.msra.mxu0 %v6115_v36 }
 0xa99   :  { %v8238_v16 = vpop.eup %8237  ;;  %7943 = vmatpush3.msra.mxu1 %v6191_v51  ;;  %7939 = vmatprep.mubr.msk.f32.mxu0 %vm8630_vm1, %v8629_v0  ;;  %v5656_v38 = vmul.f32 %v8236_v41, %v9761_v28  ;;  %v6316_v28 = vld [vmem:[#allocation15 + $0x8] sm:$0xff] }
 0xa9a   :  { %v3525_v3 = vpop.permute.xlu0 %3524  ;;  %7944 = vmatprep.mubr.msk.f32.mxu1 %vm8630_vm1, %v8629_v0  ;;  %v5657_v17 = vmul.f32 %v8238_v16, %v9763_v42  ;;  %7947 = vmatprep.subr.mxu0 %v6318_v27  ;;  %v6315_v42 = vld [vmem:[#allocation15] sm:$0xff] }
 0xa9b   :  { %3547 = vst.msk [vmem:[#allocation2 + $0x10] sm:$0xff] %vm3544_vm3, %v3525_v3  ;;  %v3527_v18 = vpop.permute.xlu1 %3526  ;;  %7940 = vmatmul.mubr.msk.f32.vlgmr.msra.gmra.mxu0 %vm863_vm2, %v5656_v38 }
 0xa9c   :  { %3548 = vst.msk [vmem:[#allocation2 + $0x18] sm:$0xff] %vm3544_vm3, %v3527_v18  ;;  %7945 = vmatmul.mubr.msk.f32.vlgmr.msra.gmra.mxu1 %vm863_vm2, %v5657_v17  ;;  %7948 = vmatpush3.msra.mxu0 %v6318_v27 }
 0xa9d   :  { %7949 = vmatprep.subr.mxu0 %v6317_v52 }
 0xa9e   :  { %v4902_v46 = vpop.permute.xlu0 %4901  ;;  %7950 = vmatpush3.msra.mxu0 %v6317_v52 }
 0xa9f   :  { %4924 = vst.msk [vmem:[#allocation2 + $0x10] sm:$0xff] %vm4921_vm4, %v4902_v46  ;;  %v4904_v60 = vpop.permute.xlu1 %4903  ;;  %7951 = vmatprep.subr.mxu0 %v6316_v28 }
 0xaa0   :  { %4925 = vst.msk [vmem:[#allocation2 + $0x18] sm:$0xff] %vm4921_vm4, %v4904_v60  ;;  %7952 = vmatpush3.msra.mxu0 %v6316_v28 }
 0xaa1   :  { %7953 = vmatprep.subr.mxu0 %v6315_v42 }
 0xaa2   :  { %v3529_v50 = vpop.permute.xlu0 %3528  ;;  %7954 = vmatpush3.msra.mxu0 %v6315_v42 }
 0xaa3   :  { %3549 = vst.msk [vmem:[#allocation2 + $0x20] sm:$0xff] %vm3544_vm3, %v3529_v50  ;;  %v3531_v0 = vpop.permute.xlu1 %3530 }
 0xaa4   :  { %3550 = vst.msk [vmem:[#allocation2 + $0x28] sm:$0xff] %vm3544_vm3, %v3531_v0 }
 0xaa6   :  { %v4906_v8 = vpop.permute.xlu0 %4905 }
 0xaa7   :  { %4926 = vst.msk [vmem:[#allocation2 + $0x20] sm:$0xff] %vm4921_vm4, %v4906_v8  ;;  %v4908_v63 = vpop.permute.xlu1 %4907 }
 0xaa8   :  { %4927 = vst.msk [vmem:[#allocation2 + $0x28] sm:$0xff] %vm4921_vm4, %v4908_v63 }
 0xaaa   :  { %v3533_v32 = vpop.permute.xlu0 %3532 }
 0xaab   :  { %3551 = vst.msk [vmem:[#allocation2 + $0x30] sm:$0xff] %vm3544_vm3, %v3533_v32  ;;  %v3535_v9 = vpop.permute.xlu1 %3534 }
 0xaac   :  { %3552 = vst.msk [vmem:[#allocation2 + $0x38] sm:$0xff] %vm3544_vm3, %v3535_v9 }
 0xaae   :  { %v4910_v39 = vpop.permute.xlu0 %4909 }
 0xaaf   :  { %4928 = vst.msk [vmem:[#allocation2 + $0x30] sm:$0xff] %vm4921_vm4, %v4910_v39  ;;  %v4912_v33 = vpop.permute.xlu1 %4911 }
 0xab0   :  { %4929 = vst.msk [vmem:[#allocation2 + $0x38] sm:$0xff] %vm4921_vm4, %v4912_v33 }
 0xb06   :  { %v5730_v43 = vpop.f32.mrf.mxu0 }
 0xb07   :  { %6274 = vrot.lane.b32.xlu0 %v5730_v43, %s8635_s14 }
 0xb08   :  { %v7911_v25 = vpop.f32.mrf.mxu0 }
 0xb0a   :  { %v5882_v47 = vpop.f32.mrf.mxu0 }
 0xb0b   :  { %6278 = vrot.lane.b32.xlu0 %v5882_v47, %s8635_s14 }
 0xb0c   :  { %v7921_v40 = vpop.f32.mrf.mxu0 }
 0xb4f   :  { %v5806_v49 = vpop.f32.mrf.mxu1 }
 0xb50   :  { %6276 = vrot.lane.b32.xlu1 %v5806_v49, %s8635_s14 }
 0xb51   :  { %v7916_v55 = vpop.f32.mrf.mxu1 }
 0xb53   :  { %v5958_v61 = vpop.f32.mrf.mxu1 }
 0xb54   :  { %6280 = vrot.lane.b32.xlu1 %v5958_v61, %s8635_s14 }
 0xb55   :  { %v7926_v1 = vpop.f32.mrf.mxu1 }
 0xb57   :  { %v6034_v56 = vpop.f32.mrf.mxu0 }
 0xb58   :  { %v6110_v58 = vpop.f32.mrf.mxu1  ;;  %6282 = vrot.lane.b32.xlu0 %v6034_v56, %s8635_s14 }
 0xb59   :  { %6284 = vrot.lane.b32.xlu1 %v6110_v58, %s8635_s14  ;;  %v7931_v19 = vpop.f32.mrf.mxu0 }
 0xb5a   :  { %v7936_v26 = vpop.f32.mrf.mxu1 }
 0xb5b   :  { %v6186_v48 = vpop.f32.mrf.mxu0 }
 0xb5c   :  { %v6262_v7 = vpop.f32.mrf.mxu1  ;;  %6286 = vrot.lane.b32.xlu0 %v6186_v48, %s8635_s14 }
 0xb5d   :  { %6288 = vrot.lane.b32.xlu1 %v6262_v7, %s8635_s14  ;;  %v7941_v14 = vpop.f32.mrf.mxu0 }
 0xb5e   :  { %v7946_v62 = vpop.f32.mrf.mxu1 }
 0xb79   :  { %v6275_v12 = vpop.permute.xlu0 %6274 }
 0xb7a   :  { %6299 = vst.msk [vmem:[#allocation2] sm:$0xff] %vm6298_vm5, %v6275_v12 }
 0xb7d   :  { %v6279_v15 = vpop.permute.xlu0 %6278 }
 0xb7e   :  { %6301 = vst.msk [vmem:[#allocation2 + $0x10] sm:$0xff] %vm6298_vm5, %v6279_v15 }
 0xb81   :  { %v6307_v20 = vld [vmem:[#allocation2] sm:$0xff] }
 0xb82   :  { %7955 = vmatprep.mubr.msk.f32.mxu0 %vm325_vm0, %v6307_v20 }
 0xb85   :  { %v6309_v36 = vld [vmem:[#allocation2 + $0x10] sm:$0xff] }
 0xbc2   :  { %v6277_v37 = vpop.permute.xlu1 %6276 }
 0xbc3   :  { %6300 = vst.msk [vmem:[#allocation2 + $0x8] sm:$0xff] %vm6298_vm5, %v6277_v37 }
 0xbc6   :  { %v6281_v10 = vpop.permute.xlu1 %6280 }
 0xbc7   :  { %6302 = vst.msk [vmem:[#allocation2 + $0x18] sm:$0xff] %vm6298_vm5, %v6281_v10 }
 0xbca   :  { %v6283_v22 = vpop.permute.xlu0 %6282  ;;  %v6308_v45 = vld [vmem:[#allocation2 + $0x8] sm:$0xff] }
 0xbcb   :  { %6303 = vst.msk [vmem:[#allocation2 + $0x20] sm:$0xff] %vm6298_vm5, %v6283_v22  ;;  %v6285_v29 = vpop.permute.xlu1 %6284  ;;  %7956 = vmatmul.mubr.msk.f32.vlgmr.msra.gmra.mxu0 %vm325_vm0, %v6308_v45 }
 0xbcc   :  { %6304 = vst.msk [vmem:[#allocation2 + $0x28] sm:$0xff] %vm6298_vm5, %v6285_v29  ;;  %7958 = vmatprep.mubr.msk.f32.mxu0 %vm325_vm0, %v6309_v36 }
 0xbce   :  { %v6287_v51 = vpop.permute.xlu0 %6286  ;;  %v6310_v53 = vld [vmem:[#allocation2 + $0x18] sm:$0xff] }
 0xbcf   :  { %6305 = vst.msk [vmem:[#allocation2 + $0x30] sm:$0xff] %vm6298_vm5, %v6287_v51  ;;  %v6289_v59 = vpop.permute.xlu1 %6288  ;;  %7959 = vmatmul.mubr.msk.f32.gmra.mxu0 %vm325_vm0, %v6310_v53 }
 0xbd0   :  { %6306 = vst.msk [vmem:[#allocation2 + $0x38] sm:$0xff] %vm6298_vm5, %v6289_v59 }
 0xbd2   :  { %v6311_v57 = vld [vmem:[#allocation2 + $0x20] sm:$0xff] }
 0xbd3   :  { %7961 = vmatprep.mubr.msk.f32.mxu0 %vm325_vm0, %v6311_v57  ;;  %v6312_v6 = vld [vmem:[#allocation2 + $0x28] sm:$0xff] }
 0xbd4   :  { %7962 = vmatmul.mubr.msk.f32.gmra.mxu0 %vm325_vm0, %v6312_v6 }
 0xbd6   :  { %v6313_v31 = vld [vmem:[#allocation2 + $0x30] sm:$0xff] }
 0xbd7   :  { %7964 = vmatprep.mubr.msk.f32.mxu0 %vm325_vm0, %v6313_v31  ;;  %v6314_v2 = vld [vmem:[#allocation2 + $0x38] sm:$0xff] }
 0xbd8   :  { %7965 = vmatmul.mubr.msk.f32.gmra.mxu0 %vm325_vm0, %v6314_v2 }
 0xc8b   :  { %v7957_v4 = vpop.f32.mrf.mxu0 }
 0xc8c   :  { %v6422_v54 = vadd.f32 %v7957_v4, %v7330_v34 }
 0xc8d   :  { %v6416_v23 = vpop.f32.mrf.mxu0 }
 0xc8e   :  { %v6456_v41 = vadd.f32 %v6422_v54, %v8880_v30  ;;  %v6417_v16 = vadd.f32 %v7330_v34, %v6416_v23 }
 0xc8f   :  { %v7960_v38 = vpop.f32.mrf.mxu0 }
 0xc90   :  { %v6455_v3 = vadd.f32 %v6417_v16, %v8866_v21  ;;  %v6432_v17 = vadd.f32 %v7960_v38, %v7330_v34  ;;  %v6468_v18 = vsel %vm325_vm0, %v6456_v41, 0.0 }
 0xc91   :  { %v6426_v46 = vpop.f32.mrf.mxu0  ;;  %6469 = vadd.xlane.f32.xlu1 %v6468_v18 }
 0xc92   :  { %v6458_v60 = vadd.f32 %v6432_v17, %v8894_v44  ;;  %v6427_v50 = vadd.f32 %v7330_v34, %v6426_v46  ;;  %v6465_v0 = vsel %vm325_vm0, %v6455_v3, 0.0 }
 0xc93   :  { %6466 = vadd.xlane.f32.xlu0 %v6465_v0 }
 0xc94   :  { %v7963_v8 = vpop.f32.mrf.mxu0  ;;  %v6457_v32 = vadd.f32 %v6427_v50, %v8884_v35  ;;  %v6474_v9 = vsel %vm325_vm0, %v6458_v60, 0.0 }
 0xc95   :  { %v6442_v63 = vadd.f32 %v7963_v8, %v7330_v34 }
 0xc96   :  { %v6436_v30 = vpop.f32.mrf.mxu0  ;;  %v6471_v40 = vsel %vm325_vm0, %v6457_v32, 0.0 }
 0xc97   :  { %v6460_v21 = vadd.f32 %v6442_v63, %v8856_v11  ;;  %v6437_v39 = vadd.f32 %v7330_v34, %v6436_v30  ;;  %6475 = vadd.xlane.f32.xlu0 %v6474_v9 }
 0xc98   :  { %v7966_v33 = vpop.f32.mrf.mxu0 }
 0xc99   :  { %v6452_v43 = vadd.f32 %v7966_v33, %v7330_v34  ;;  %v6480_v25 = vsel %vm325_vm0, %v6460_v21, 0.0  ;;  %v6459_v44 = vadd.f32 %v6437_v39, %v8843_v5 }
 0xc9a   :  { %6481 = vadd.xlane.f32.xlu1 %v6480_v25  ;;  %v6446_v47 = vpop.f32.mrf.mxu0 }
 0xc9b   :  { %v6462_v27 = vadd.f32 %v6452_v43, %v8873_v24  ;;  %v6447_v35 = vadd.f32 %v7330_v34, %v6446_v47  ;;  %6472 = vadd.xlane.f32.xlu0 %v6471_v40  ;;  %v6477_v28 = vsel %vm325_vm0, %v6459_v44, 0.0 }
 0xc9d   :  { %v6486_v52 = vsel %vm325_vm0, %v6462_v27, 0.0  ;;  %v6461_v11 = vadd.f32 %v6447_v35, %v8858_v13 }
 0xc9e   :  { %6487 = vadd.xlane.f32.xlu1 %v6486_v52 }
 0xc9f   :  { %6478 = vadd.xlane.f32.xlu0 %v6477_v28  ;;  %v6483_v42 = vsel %vm325_vm0, %v6461_v11, 0.0 }
 0xca3   :  { %6484 = vadd.xlane.f32.xlu0 %v6483_v42  ;;  %v7339_v42 = vld [vmem:[#allocation17] ss:$0 sm:$0xff] }
 0xd1a   :  { %v6470_v5 = vpop.xlane.xlu1 %6469 }
 0xd1b   :  { %v6491_v49 = vmul.f32 0.03125, %v6470_v5 }
 0xd1c   :  { %v6467_v55 = vpop.xlane.xlu0 %6466 }
 0xd1d   :  { %v9888_v61 = vsub.f32 %v6456_v41, %v6491_v49  ;;  %v6490_v1 = vmul.f32 0.03125, %v6467_v55 }
 0xd1f   :  { %v9890_v24 = vsub.f32 %v6455_v3, %v6490_v1  ;;  %v6507_v56 = vmul.f32 %v9888_v61, %v9888_v61  ;;  %v7340_v1 = vld [vmem:[#allocation18] ss:$0 sm:$0xff] }
 0xd20   :  { %v6476_v58 = vpop.xlane.xlu0 %6475 }
 0xd21   :  { %v6493_v13 = vmul.f32 0.03125, %v6476_v58  ;;  %v6517_v19 = vsel %vm325_vm0, %v6507_v56, 0.0  ;;  %v6506_v26 = vmul.f32 %v9890_v24, %v9890_v24 }
 0xd22   :  { %6518 = vadd.xlane.f32.xlu1 %v6517_v19 }
 0xd23   :  { %v9897_v48 = vsub.f32 %v6458_v60, %v6493_v13  ;;  %v6482_v7 = vpop.xlane.xlu1 %6481  ;;  %v6514_v14 = vsel %vm325_vm0, %v6506_v26, 0.0 }
 0xd24   :  { %v6495_v62 = vmul.f32 0.03125, %v6482_v7  ;;  %v6473_v12 = vpop.xlane.xlu0 %6472  ;;  %6515 = vadd.xlane.f32.xlu0 %v6514_v14  ;;  %v8287_v14 = vld [vmem:[%s10210_s10 + $0x8] sm:$0xff] }
 0xd25   :  { %v6492_v15 = vmul.f32 0.03125, %v6473_v12  ;;  %v6509_v20 = vmul.f32 %v9897_v48, %v9897_v48 }
 0xd26   :  { %v9902_v37 = vsub.f32 %v6460_v21, %v6495_v62 }
 0xd27   :  { %v9904_v10 = vsub.f32 %v6457_v32, %v6492_v15  ;;  %v6488_v22 = vpop.xlane.xlu1 %6487  ;;  %v6523_v45 = vsel %vm325_vm0, %v6509_v20, 0.0  ;;  %v8288_v20 = vld [vmem:[%s10210_s10] sm:$0xff] }
 0xd28   :  { %v6497_v29 = vmul.f32 0.03125, %v6488_v22  ;;  %v6479_v36 = vpop.xlane.xlu0 %6478  ;;  %6524 = vadd.xlane.f32.xlu1 %v6523_v45  ;;  %v6511_v51 = vmul.f32 %v9902_v37, %v9902_v37 }
 0xd29   :  { %v6494_v53 = vmul.f32 0.03125, %v6479_v36  ;;  %v6508_v59 = vmul.f32 %v9904_v10, %v9904_v10 }
 0xd2a   :  { %v9911_v57 = vsub.f32 %v6462_v27, %v6497_v29  ;;  %v6529_v6 = vsel %vm325_vm0, %v6511_v51, 0.0 }
 0xd2b   :  { %v9914_v31 = vsub.f32 %v6459_v44, %v6494_v53  ;;  %v6520_v2 = vsel %vm325_vm0, %v6508_v59, 0.0 }
 0xd2c   :  { %6521 = vadd.xlane.f32.xlu0 %v6520_v2  ;;  %v6485_v34 = vpop.xlane.xlu0 %6484  ;;  %6530 = vadd.xlane.f32.xlu1 %v6529_v6  ;;  %v6513_v4 = vmul.f32 %v9911_v57, %v9911_v57 }
 0xd2d   :  { %v6496_v54 = vmul.f32 0.03125, %v6485_v34  ;;  %v6510_v23 = vmul.f32 %v9914_v31, %v9914_v31 }
 0xd2e   :  { %v6535_v41 = vsel %vm325_vm0, %v6513_v4, 0.0 }
 0xd2f   :  { %v9922_v16 = vsub.f32 %v6461_v11, %v6496_v54  ;;  %v6526_v38 = vsel %vm325_vm0, %v6510_v23, 0.0 }
 0xd30   :  { %6527 = vadd.xlane.f32.xlu0 %v6526_v38  ;;  %6536 = vadd.xlane.f32.xlu1 %v6535_v41 }
 0xd31   :  { %v6512_v3 = vmul.f32 %v9922_v16, %v9922_v16 }
 0xd33   :  { %v6532_v17 = vsel %vm325_vm0, %v6512_v3, 0.0 }
 0xd34   :  { %6533 = vadd.xlane.f32.xlu0 %v6532_v17 }
 0xdab   :  { %v6519_v18 = vpop.xlane.xlu1 %6518 }
 0xdac   :  { %v6539_v46 = vmul.f32 0.03125, %v6519_v18 }
 0xdad   :  { %v6516_v60 = vpop.xlane.xlu0 %6515 }
 0xdae   :  { %v6547_v50 = vadd.f32 1e-05, %v6539_v46  ;;  %v6538_v0 = vmul.f32 0.03125, %v6516_v60  ;;  %v8291_v60 = vld [vmem:[%s10210_s10 + $0x28] sm:$0xff] }
 0xdb0   :  { %8239 = vrsqrt.f32 %v6547_v50  ;;  %v6546_v8 = vadd.f32 1e-05, %v6538_v0 }
 0xdb1   :  { %v6525_v63 = vpop.xlane.xlu1 %6524 }
 0xdb2   :  { %8241 = vrsqrt.f32 %v6546_v8  ;;  %v6541_v32 = vmul.f32 0.03125, %v6525_v63 }
 0xdb4   :  { %v6549_v30 = vadd.f32 1e-05, %v6541_v32 }
 0xdb5   :  { %v6522_v9 = vpop.xlane.xlu0 %6521  ;;  %v6531_v21 = vpop.xlane.xlu1 %6530 }
 0xdb6   :  { %8243 = vrsqrt.f32 %v6549_v30  ;;  %v6540_v39 = vmul.f32 0.03125, %v6522_v9  ;;  %v6543_v33 = vmul.f32 0.03125, %v6531_v21  ;;  %v8292_v30 = vld [vmem:[%s10210_s10 + $0x20] sm:$0xff] }
 0xdb8   :  { %v6548_v43 = vadd.f32 1e-05, %v6540_v39  ;;  %v6551_v25 = vadd.f32 1e-05, %v6543_v33  ;;  %v8293_v39 = vld [vmem:[%s10210_s10 + $0x38] sm:$0xff] }
 0xdb9   :  { %v6528_v44 = vpop.xlane.xlu0 %6527  ;;  %v6537_v47 = vpop.xlane.xlu1 %6536 }
 0xdba   :  { %8245 = vrsqrt.f32 %v6548_v43  ;;  %v6542_v40 = vmul.f32 0.03125, %v6528_v44  ;;  %v6545_v27 = vmul.f32 0.03125, %v6537_v47  ;;  %v8294_v44 = vld [vmem:[%s10210_s10 + $0x30] sm:$0xff] }
 0xdbb   :  { %8247 = vrsqrt.f32 %v6551_v25 }
 0xdbc   :  { %v6550_v35 = vadd.f32 1e-05, %v6542_v40  ;;  %v6553_v52 = vadd.f32 1e-05, %v6545_v27 }
 0xdbd   :  { %v8240_v11 = vpop.eup %8239  ;;  %v6534_v28 = vpop.xlane.xlu0 %6533 }
 0xdbe   :  { %8249 = vrsqrt.f32 %v6550_v35  ;;  %v6544_v5 = vmul.f32 0.03125, %v6534_v28  ;;  %v6563_v49 = vmul.f32 %v8240_v11, %v9888_v61 }
 0xdbf   :  { %v8242_v55 = vpop.eup %8241  ;;  %8251 = vrsqrt.f32 %v6553_v52 }
 0xdc0   :  { %v6552_v56 = vadd.f32 1e-05, %v6544_v5  ;;  %v6577_v58 = vmul.f32 %v7339_v42, %v6563_v49  ;;  %v6562_v13 = vmul.f32 %v8242_v55, %v9890_v24 }
 0xdc2   :  { %8253 = vrsqrt.f32 %v6552_v56  ;;  %v6591_v19 = vadd.f32 %v7340_v1, %v6577_v58  ;;  %v6576_v26 = vmul.f32 %v7339_v42, %v6562_v13 }
 0xdc3   :  { %v8244_v7 = vpop.eup %8243 }
 0xdc4   :  { %v6599_v62 = vadd.f32 %v8287_v14, %v6591_v19  ;;  %v6590_v12 = vadd.f32 %v7340_v1, %v6576_v26  ;;  %v6565_v15 = vmul.f32 %v8244_v7, %v9897_v48  ;;  %v8289_v48 = vld [vmem:[%s10210_s10 + $0x18] sm:$0xff] }
 0xdc6   :  { %v6611_v61 = vsel %vm325_vm0, %v6599_v62, 0.0  ;;  %v6598_v22 = vadd.f32 %v8288_v20, %v6590_v12  ;;  %v6579_v24 = vmul.f32 %v7339_v42, %v6565_v15 }
 0xdc7   :  { %v8246_v45 = vpop.eup %8245  ;;  %6612 = vadd.xlane.f32.xlu1 %v6611_v61 }
 0xdc8   :  { %v8248_v29 = vpop.eup %8247  ;;  %v6608_v36 = vsel %vm325_vm0, %v6598_v22, 0.0  ;;  %v6593_v51 = vadd.f32 %v7340_v1, %v6579_v24  ;;  %v6564_v53 = vmul.f32 %v8246_v45, %v9904_v10 }
 0xdc9   :  { %6609 = vadd.xlane.f32.xlu0 %v6608_v36  ;;  %v6567_v59 = vmul.f32 %v8248_v29, %v9902_v37  ;;  %v8290_v37 = vld [vmem:[%s10210_s10 + $0x10] sm:$0xff] }
 0xdca   :  { %v6601_v6 = vadd.f32 %v8289_v48, %v6593_v51  ;;  %v6578_v2 = vmul.f32 %v7339_v42, %v6564_v53 }
 0xdcb   :  { %v8250_v34 = vpop.eup %8249  ;;  %v6581_v4 = vmul.f32 %v7339_v42, %v6567_v59 }
 0xdcc   :  { %v8252_v54 = vpop.eup %8251  ;;  %v6617_v23 = vsel %vm325_vm0, %v6601_v6, 0.0  ;;  %v6592_v41 = vadd.f32 %v7340_v1, %v6578_v2  ;;  %v6566_v38 = vmul.f32 %v8250_v34, %v9914_v31 }
 0xdcd   :  { %6618 = vadd.xlane.f32.xlu1 %v6617_v23  ;;  %v6595_v3 = vadd.f32 %v7340_v1, %v6581_v4  ;;  %v6569_v10 = vmul.f32 %v8252_v54, %v9911_v57 }
 0xdce   :  { %v6600_v17 = vadd.f32 %v8290_v37, %v6592_v41  ;;  %v6580_v18 = vmul.f32 %v7339_v42, %v6566_v38  ;;  %v6742_v37 = vld [vmem:[#allocation23 + $0x10] sm:$0xff] }
 0xdcf   :  { %v8254_v46 = vpop.eup %8253  ;;  %v6603_v50 = vadd.f32 %v8291_v60, %v6595_v3  ;;  %v6583_v0 = vmul.f32 %v7339_v42, %v6569_v10  ;;  %v6743_v10 = vld [vmem:[#allocation23 + $0x18] sm:$0xff]  ;;  %v6894_v60 = vld [vmem:[%s10187_s20 + $0x30] sm:$0xff] }
 0xdd0   :  { %v6614_v8 = vsel %vm325_vm0, %v6600_v17, 0.0  ;;  %v6594_v31 = vadd.f32 %v7340_v1, %v6580_v18  ;;  %v6568_v63 = vmul.f32 %v8254_v46, %v9922_v16  ;;  %7967 = vmatprep.subr.mxu1 %v6743_v10  ;;  %v6740_v18 = vld [vmem:[#allocation23] sm:$0xff]  ;;  %v6895_v46 = vld [vmem:[%s10187_s20 + $0x38] sm:$0xff] }
 0xdd1   :  { %6615 = vadd.xlane.f32.xlu0 %v6614_v8  ;;  %v6623_v57 = vsel %vm325_vm0, %v6603_v50, 0.0  ;;  %v6597_v32 = vadd.f32 %v7340_v1, %v6583_v0  ;;  %7968 = vmatpush3.msra.mxu1 %v6743_v10  ;;  %v6892_v0 = vld [vmem:[%s10187_s20 + $0x20] sm:$0xff] }
 0xdd2   :  { %6624 = vadd.xlane.f32.xlu1 %v6623_v57  ;;  %v6602_v9 = vadd.f32 %v8292_v30, %v6594_v31  ;;  %v6582_v21 = vmul.f32 %v7339_v42, %v6568_v63  ;;  %7969 = vmatprep.subr.mxu1 %v6742_v37 }
 0xdd3   :  { %v6605_v33 = vadd.f32 %v8293_v39, %v6597_v32  ;;  %7970 = vmatpush3.msra.mxu1 %v6742_v37  ;;  %7987 = vmatprep.subr.mxu0 %v6895_v46 }
 0xdd4   :  { %v6620_v43 = vsel %vm325_vm0, %v6602_v9, 0.0  ;;  %v6596_v25 = vadd.f32 %v7340_v1, %v6582_v21  ;;  %7988 = vmatpush3.msra.mxu0 %v6895_v46  ;;  %v6889_v46 = vld [vmem:[%s10187_s20 + $0x8] sm:$0xff] }
 0xdd5   :  { %6621 = vadd.xlane.f32.xlu0 %v6620_v43  ;;  %v6629_v16 = vsel %vm325_vm0, %v6605_v33, 0.0  ;;  %7989 = vmatprep.subr.mxu0 %v6894_v60 }
 0xdd6   :  { %6630 = vadd.xlane.f32.xlu1 %v6629_v16  ;;  %v6604_v47 = vadd.f32 %v8294_v44, %v6596_v25  ;;  %7990 = vmatpush3.msra.mxu0 %v6894_v60  ;;  %v6888_v60 = vld [vmem:[%s10187_s20] sm:$0xff] }
 0xdd8   :  { %v6626_v40 = vsel %vm325_vm0, %v6604_v47, 0.0 }
 0xdd9   :  { %6627 = vadd.xlane.f32.xlu0 %v6626_v40 }
 0xe50   :  { %v6613_v27 = vpop.xlane.xlu1 %6612 }
 0xe51   :  { %v6633_v35 = vmul.f32 0.03125, %v6613_v27 }
 0xe52   :  { %v6610_v52 = vpop.xlane.xlu0 %6609 }
 0xe53   :  { %v9968_v11 = vsub.f32 %v6599_v62, %v6633_v35  ;;  %v6632_v28 = vmul.f32 0.03125, %v6610_v52 }
 0xe55   :  { %v9970_v42 = vsub.f32 %v6598_v22, %v6632_v28  ;;  %v6649_v5 = vmul.f32 %v9968_v11, %v9968_v11 }
 0xe56   :  { %v6619_v49 = vpop.xlane.xlu1 %6618 }
 0xe57   :  { %v6635_v55 = vmul.f32 0.03125, %v6619_v49  ;;  %v6659_v1 = vsel %vm325_vm0, %v6649_v5, 0.0  ;;  %v6648_v56 = vmul.f32 %v9970_v42, %v9970_v42 }
 0xe58   :  { %6660 = vadd.xlane.f32.xlu1 %v6659_v1 }
 0xe59   :  { %v9977_v58 = vsub.f32 %v6601_v6, %v6635_v55  ;;  %v6656_v13 = vsel %vm325_vm0, %v6648_v56, 0.0 }
 0xe5a   :  { %6657 = vadd.xlane.f32.xlu0 %v6656_v13  ;;  %v6616_v19 = vpop.xlane.xlu0 %6615  ;;  %v7341_v13 = vld [vmem:[#allocation20] ss:$0 sm:$0xff] }
 0xe5b   :  { %v6634_v26 = vmul.f32 0.03125, %v6616_v19  ;;  %v6625_v7 = vpop.xlane.xlu1 %6624  ;;  %v6651_v14 = vmul.f32 %v9977_v58, %v9977_v58 }
 0xe5c   :  { %v6637_v62 = vmul.f32 0.03125, %v6625_v7 }
 0xe5d   :  { %v9982_v12 = vsub.f32 %v6600_v17, %v6634_v26  ;;  %v6665_v15 = vsel %vm325_vm0, %v6651_v14, 0.0  ;;  %v6741_v17 = vld [vmem:[#allocation23 + $0x8] sm:$0xff] }
 0xe5e   :  { %v9985_v61 = vsub.f32 %v6603_v50, %v6637_v62  ;;  %v6622_v20 = vpop.xlane.xlu0 %6621  ;;  %6666 = vadd.xlane.f32.xlu1 %v6665_v15  ;;  %7971 = vmatprep.subr.mxu1 %v6741_v17  ;;  %v6893_v50 = vld [vmem:[%s10187_s20 + $0x28] sm:$0xff]  ;;  %v7342_v62 = vld [vmem:[#allocation21] ss:$0 sm:$0xff] }
 0xe5f   :  { %v6636_v22 = vmul.f32 0.03125, %v6622_v20  ;;  %v6631_v24 = vpop.xlane.xlu1 %6630  ;;  %v6650_v45 = vmul.f32 %v9982_v12, %v9982_v12  ;;  %7972 = vmatpush3.msra.mxu1 %v6741_v17  ;;  %7991 = vmatprep.subr.mxu0 %v6893_v50 }
 0xe60   :  { %v6639_v29 = vmul.f32 0.03125, %v6631_v24  ;;  %v6653_v36 = vmul.f32 %v9985_v61, %v9985_v61  ;;  %7973 = vmatprep.subr.mxu1 %v6740_v18  ;;  %7992 = vmatpush3.msra.mxu0 %v6893_v50  ;;  %v7343_v50 = vld [vmem:[#allocation24] ss:$0 sm:$0xff] }
 0xe61   :  { %v9991_v51 = vsub.f32 %v6602_v9, %v6636_v22  ;;  %v6662_v53 = vsel %vm325_vm0, %v6650_v45, 0.0  ;;  %7974 = vmatpush3.msra.mxu1 %v6740_v18  ;;  %7993 = vmatprep.subr.mxu0 %v6892_v0  ;;  %v6890_v18 = vld [vmem:[%s10187_s20 + $0x10] sm:$0xff] }
 0xe62   :  { %v9994_v59 = vsub.f32 %v6605_v33, %v6639_v29  ;;  %6663 = vadd.xlane.f32.xlu0 %v6662_v53  ;;  %v6628_v48 = vpop.xlane.xlu0 %6627  ;;  %v6671_v6 = vsel %vm325_vm0, %v6653_v36, 0.0  ;;  %7994 = vmatpush3.msra.mxu0 %v6892_v0 }
 0xe63   :  { %v6638_v2 = vmul.f32 0.03125, %v6628_v48  ;;  %6672 = vadd.xlane.f32.xlu1 %v6671_v6  ;;  %v6652_v34 = vmul.f32 %v9991_v51, %v9991_v51 }
 0xe64   :  { %v6655_v4 = vmul.f32 %v9994_v59, %v9994_v59 }
 0xe65   :  { %v10001_v54 = vsub.f32 %v6604_v47, %v6638_v2  ;;  %v6668_v23 = vsel %vm325_vm0, %v6652_v34, 0.0 }
 0xe66   :  { %6669 = vadd.xlane.f32.xlu0 %v6668_v23  ;;  %v6677_v41 = vsel %vm325_vm0, %v6655_v4, 0.0 }
 0xe67   :  { %6678 = vadd.xlane.f32.xlu1 %v6677_v41  ;;  %v6654_v38 = vmul.f32 %v10001_v54, %v10001_v54 }
 0xe69   :  { %v6674_v3 = vsel %vm325_vm0, %v6654_v38, 0.0 }
 0xe6a   :  { %6675 = vadd.xlane.f32.xlu0 %v6674_v3 }
 0xee1   :  { %v6661_v8 = vpop.xlane.xlu1 %6660 }
 0xee2   :  { %v6681_v31 = vmul.f32 0.03125, %v6661_v8 }
 0xee3   :  { %v6658_v63 = vpop.xlane.xlu0 %6657 }
 0xee4   :  { %v6689_v57 = vadd.f32 1e-05, %v6681_v31  ;;  %v6680_v32 = vmul.f32 0.03125, %v6658_v63 }
 0xee6   :  { %8255 = vrsqrt.f32 %v6689_v57  ;;  %v6688_v30 = vadd.f32 1e-05, %v6680_v32 }
 0xee7   :  { %v6667_v9 = vpop.xlane.xlu1 %6666 }
 0xee8   :  { %8257 = vrsqrt.f32 %v6688_v30  ;;  %v6683_v21 = vmul.f32 0.03125, %v6667_v9 }
 0xeea   :  { %v6691_v39 = vadd.f32 1e-05, %v6683_v21 }
 0xeeb   :  { %v6664_v33 = vpop.xlane.xlu0 %6663 }
 0xeec   :  { %8259 = vrsqrt.f32 %v6691_v39  ;;  %v6682_v43 = vmul.f32 0.03125, %v6664_v33  ;;  %v6673_v25 = vpop.xlane.xlu1 %6672 }
 0xeed   :  { %v6685_v16 = vmul.f32 0.03125, %v6673_v25 }
 0xeee   :  { %v6690_v44 = vadd.f32 1e-05, %v6682_v43 }
 0xeef   :  { %v6693_v47 = vadd.f32 1e-05, %v6685_v16  ;;  %v6670_v40 = vpop.xlane.xlu0 %6669 }
 0xef0   :  { %8261 = vrsqrt.f32 %v6690_v44  ;;  %v6684_v27 = vmul.f32 0.03125, %v6670_v40  ;;  %v6679_v35 = vpop.xlane.xlu1 %6678 }
 0xef1   :  { %8263 = vrsqrt.f32 %v6693_v47  ;;  %v6687_v52 = vmul.f32 0.03125, %v6679_v35 }
 0xef2   :  { %v6692_v28 = vadd.f32 1e-05, %v6684_v27 }
 0xef3   :  { %v8256_v5 = vpop.eup %8255  ;;  %v6695_v49 = vadd.f32 1e-05, %v6687_v52  ;;  %v6676_v55 = vpop.xlane.xlu0 %6675 }
 0xef4   :  { %v6705_v1 = vmul.f32 %v8256_v5, %v9968_v11  ;;  %8265 = vrsqrt.f32 %v6692_v28  ;;  %v6686_v56 = vmul.f32 0.03125, %v6676_v55 }
 0xef5   :  { %v8258_v19 = vpop.eup %8257  ;;  %8267 = vrsqrt.f32 %v6695_v49 }
 0xef6   :  { %v6694_v26 = vadd.f32 1e-05, %v6686_v56  ;;  %v6704_v7 = vmul.f32 %v8258_v19, %v9970_v42  ;;  %v6719_v14 = vmul.f32 %v7341_v13, %v6705_v1  ;;  %v7352_v1 = vld [vmem:[%s10188_s21] ss:$0 sm:$0xff] }
 0xef8   :  { %8269 = vrsqrt.f32 %v6694_v26  ;;  %v6718_v15 = vmul.f32 %v7341_v13, %v6704_v7  ;;  %v10024_v24 = vadd.f32 %v7342_v62, %v6719_v14 }
 0xef9   :  { %v8260_v20 = vpop.eup %8259 }
 0xefa   :  { %v10022_v22 = vadd.f32 %v7342_v62, %v6718_v15  ;;  %v6707_v45 = vmul.f32 %v8260_v20, %v9977_v58 }
 0xefc   :  { %7975 = vmatprep.mubr.msk.f32.mxu1 %vm325_vm0, %v10022_v22  ;;  %v6721_v36 = vmul.f32 %v7341_v13, %v6707_v45 }
 0xefd   :  { %v8262_v11 = vpop.eup %8261  ;;  %7976 = vmatmul.mubr.msk.f32.vlgmr.msra.gmra.mxu1 %vm325_vm0, %v10024_v24 }
 0xefe   :  { %v8264_v29 = vpop.eup %8263  ;;  %v6706_v42 = vmul.f32 %v8262_v11, %v9982_v12  ;;  %v10036_v4 = vadd.f32 %v7342_v62, %v6721_v36 }
 0xeff   :  { %v6709_v53 = vmul.f32 %v8264_v29, %v9985_v61 }
 0xf00   :  { %v6720_v48 = vmul.f32 %v7341_v13, %v6706_v42 }
 0xf01   :  { %v8266_v6 = vpop.eup %8265  ;;  %v6723_v23 = vmul.f32 %v7341_v13, %v6709_v53 }
 0xf02   :  { %v8268_v2 = vpop.eup %8267  ;;  %v10033_v34 = vadd.f32 %v7342_v62, %v6720_v48  ;;  %v6708_v58 = vmul.f32 %v8266_v6, %v9991_v51 }
 0xf03   :  { %v6711_v41 = vmul.f32 %v8268_v2, %v9994_v59  ;;  %v10046_v10 = vadd.f32 %v7342_v62, %v6723_v23 }
 0xf04   :  { %7978 = vmatprep.mubr.msk.f32.mxu1 %vm325_vm0, %v10033_v34  ;;  %v6722_v38 = vmul.f32 %v7341_v13, %v6708_v58 }
 0xf05   :  { %v8270_v12 = vpop.eup %8269  ;;  %7979 = vmatmul.mubr.msk.f32.gmra.mxu1 %vm325_vm0, %v10036_v4  ;;  %v6725_v51 = vmul.f32 %v7341_v13, %v6711_v41 }
 0xf06   :  { %v10043_v61 = vadd.f32 %v7342_v62, %v6722_v38  ;;  %v6710_v3 = vmul.f32 %v8270_v12, %v10001_v54  ;;  %v6891_v54 = vld [vmem:[%s10187_s20 + $0x18] sm:$0xff] }
 0xf07   :  { %v10054_v17 = vadd.f32 %v7342_v62, %v6725_v51  ;;  %7995 = vmatprep.subr.mxu0 %v6891_v54 }
 0xf08   :  { %7981 = vmatprep.mubr.msk.f32.mxu1 %vm325_vm0, %v10043_v61  ;;  %v6724_v37 = vmul.f32 %v7341_v13, %v6710_v3  ;;  %7996 = vmatpush3.msra.mxu0 %v6891_v54 }
 0xf09   :  { %7982 = vmatmul.mubr.msk.f32.gmra.mxu1 %vm325_vm0, %v10046_v10  ;;  %7997 = vmatprep.subr.mxu0 %v6890_v18 }
 0xf0a   :  { %v10052_v59 = vadd.f32 %v7342_v62, %v6724_v37  ;;  %7998 = vmatpush3.msra.mxu0 %v6890_v18 }
 0xf0b   :  { %7999 = vmatprep.subr.mxu0 %v6889_v46 }
 0xf0c   :  { %7984 = vmatprep.mubr.msk.f32.mxu1 %vm325_vm0, %v10052_v59  ;;  %8000 = vmatpush3.msra.mxu0 %v6889_v46 }
 0xf0d   :  { %7985 = vmatmul.mubr.msk.f32.gmra.mxu1 %vm325_vm0, %v10054_v17  ;;  %8001 = vmatprep.subr.mxu0 %v6888_v60 }
 0xf0e   :  { %8002 = vmatpush3.msra.mxu0 %v6888_v60 }
 0xfbd   :  { %v7977_v0 = vpop.f32.mrf.mxu1 }
 0xfbe   :  { %v6847_v8 = vadd.f32 %v7977_v0, %v7343_v50 }
 0xfbf   :  { %v6841_v31 = vpop.f32.mrf.mxu1 }
 0xfc0   :  { %v6842_v63 = vadd.f32 %v7343_v50, %v6841_v31  ;;  %v6881_v32 = vmax.f32 %v6847_v8, 0.0 }
 0xfc2   :  { %v6880_v57 = vmax.f32 %v6842_v63, 0.0 }
 0xfc4   :  { %8003 = vmatprep.mubr.msk.f32.mxu0 %vm6903_vm6, %v6880_v57 }
 0xfc5   :  { %v7980_v30 = vpop.f32.mrf.mxu1  ;;  %8004 = vmatmul.mubr.msk.f32.vlgmr.msra.gmra.mxu0 %vm6903_vm6, %v6881_v32 }
 0xfc6   :  { %v6857_v9 = vadd.f32 %v7980_v30, %v7343_v50 }
 0xfc7   :  { %v6851_v21 = vpop.f32.mrf.mxu1 }
 0xfc8   :  { %v6852_v39 = vadd.f32 %v7343_v50, %v6851_v21  ;;  %v6883_v25 = vmax.f32 %v6857_v9, 0.0 }
 0xfc9   :  { %v7983_v33 = vpop.f32.mrf.mxu1 }
 0xfca   :  { %v6882_v43 = vmax.f32 %v6852_v39, 0.0  ;;  %v6867_v16 = vadd.f32 %v7983_v33, %v7343_v50 }
 0xfcb   :  { %v6861_v44 = vpop.f32.mrf.mxu1 }
 0xfcc   :  { %v6862_v47 = vadd.f32 %v7343_v50, %v6861_v44  ;;  %8006 = vmatprep.mubr.msk.f32.mxu0 %vm6903_vm6, %v6882_v43  ;;  %v6885_v35 = vmax.f32 %v6867_v16, 0.0 }
 0xfcd   :  { %v7986_v40 = vpop.f32.mrf.mxu1  ;;  %8007 = vmatmul.mubr.msk.f32.gmra.mxu0 %vm6903_vm6, %v6883_v25 }
 0xfce   :  { %v6884_v27 = vmax.f32 %v6862_v47, 0.0  ;;  %v6877_v52 = vadd.f32 %v7986_v40, %v7343_v50 }
 0xfcf   :  { %v6871_v28 = vpop.f32.mrf.mxu1 }
 0xfd0   :  { %v6872_v5 = vadd.f32 %v7343_v50, %v6871_v28  ;;  %8009 = vmatprep.mubr.msk.f32.mxu0 %vm6903_vm6, %v6884_v27  ;;  %v6887_v55 = vmax.f32 %v6877_v52, 0.0 }
 0xfd1   :  { %8010 = vmatmul.mubr.msk.f32.gmra.mxu0 %vm6903_vm6, %v6885_v35 }
 0xfd2   :  { %v6886_v49 = vmax.f32 %v6872_v5, 0.0 }
 0xfd4   :  { %8012 = vmatprep.mubr.msk.f32.mxu0 %vm6903_vm6, %v6886_v49 }
 0xfd5   :  { %8013 = vmatmul.mubr.msk.f32.gmra.mxu0 %vm6903_vm6, %v6887_v55 }
0x1085   :  { %v8005_v56 = vpop.f32.mrf.mxu0 }
0x1086   :  { %v7000_v13 = vadd.f32 %v8005_v56, %v7352_v1 }
0x1087   :  { %v6994_v19 = vpop.f32.mrf.mxu0 }
0x1088   :  { %v7034_v26 = vadd.f32 %v7000_v13, %v10024_v24  ;;  %v6995_v7 = vadd.f32 %v7352_v1, %v6994_v19 }
0x108a   :  { %v7033_v14 = vadd.f32 %v6995_v7, %v10022_v22  ;;  %v7046_v62 = vsel %vm325_vm0, %v7034_v26, 0.0 }
0x108b   :  { %7047 = vadd.xlane.f32.xlu1 %v7046_v62 }
0x108c   :  { %v7043_v15 = vsel %vm325_vm0, %v7033_v14, 0.0 }
0x108d   :  { %v8008_v20 = vpop.f32.mrf.mxu0  ;;  %7044 = vadd.xlane.f32.xlu0 %v7043_v15 }
0x108e   :  { %v7010_v45 = vadd.f32 %v8008_v20, %v7352_v1 }
0x108f   :  { %v7004_v11 = vpop.f32.mrf.mxu0 }
0x1090   :  { %v7036_v29 = vadd.f32 %v7010_v45, %v10036_v4  ;;  %v7005_v42 = vadd.f32 %v7352_v1, %v7004_v11 }
0x1091   :  { %v8011_v36 = vpop.f32.mrf.mxu0 }
0x1092   :  { %v7035_v53 = vadd.f32 %v7005_v42, %v10033_v34  ;;  %v7020_v48 = vadd.f32 %v8011_v36, %v7352_v1  ;;  %v7052_v24 = vsel %vm325_vm0, %v7036_v29, 0.0 }
0x1093   :  { %7053 = vadd.xlane.f32.xlu1 %v7052_v24  ;;  %v7014_v22 = vpop.f32.mrf.mxu0 }
0x1094   :  { %v7038_v6 = vadd.f32 %v7020_v48, %v10046_v10  ;;  %v7015_v2 = vadd.f32 %v7352_v1, %v7014_v22  ;;  %v7049_v58 = vsel %vm325_vm0, %v7035_v53, 0.0 }
0x1095   :  { %v8014_v23 = vpop.f32.mrf.mxu0  ;;  %7050 = vadd.xlane.f32.xlu0 %v7049_v58 }
0x1096   :  { %v7037_v41 = vadd.f32 %v7015_v2, %v10043_v61  ;;  %v7030_v38 = vadd.f32 %v8014_v23, %v7352_v1  ;;  %v7058_v4 = vsel %vm325_vm0, %v7038_v6, 0.0 }
0x1097   :  { %7059 = vadd.xlane.f32.xlu1 %v7058_v4  ;;  %v7024_v12 = vpop.f32.mrf.mxu0 }
0x1098   :  { %v7040_v34 = vadd.f32 %v7030_v38, %v10054_v17  ;;  %v7025_v3 = vadd.f32 %v7352_v1, %v7024_v12  ;;  %v7055_v51 = vsel %vm325_vm0, %v7037_v41, 0.0 }
0x1099   :  { %7056 = vadd.xlane.f32.xlu0 %v7055_v51 }
0x109a   :  { %v7039_v10 = vadd.f32 %v7025_v3, %v10052_v59  ;;  %v7064_v37 = vsel %vm325_vm0, %v7040_v34, 0.0 }
0x109b   :  { %7065 = vadd.xlane.f32.xlu1 %v7064_v37 }
0x109c   :  { %v7061_v54 = vsel %vm325_vm0, %v7039_v10, 0.0 }
0x109d   :  { %7062 = vadd.xlane.f32.xlu0 %v7061_v54 }
0x1114   :  { %v7048_v61 = vpop.xlane.xlu1 %7047 }
0x1115   :  { %v7068_v18 = vmul.f32 0.03125, %v7048_v61 }
0x1116   :  { %v7045_v46 = vpop.xlane.xlu0 %7044 }
0x1117   :  { %v10099_v60 = vsub.f32 %v7034_v26, %v7068_v18  ;;  %v7067_v50 = vmul.f32 0.03125, %v7045_v46 }
0x1119   :  { %v10101_v0 = vsub.f32 %v7033_v14, %v7067_v50  ;;  %v7084_v17 = vmul.f32 %v10099_v60, %v10099_v60  ;;  %v7362_v50 = vld [vmem:[%s10190_s23] ss:$0 sm:$0xff] }
0x111b   :  { %v7094_v8 = vsel %vm325_vm0, %v7084_v17, 0.0  ;;  %v7083_v59 = vmul.f32 %v10101_v0, %v10101_v0 }
0x111c   :  { %v7054_v31 = vpop.xlane.xlu1 %7053  ;;  %7095 = vadd.xlane.f32.xlu1 %v7094_v8 }
0x111d   :  { %v7070_v63 = vmul.f32 0.03125, %v7054_v31  ;;  %v7091_v57 = vsel %vm325_vm0, %v7083_v59, 0.0 }
0x111e   :  { %7092 = vadd.xlane.f32.xlu0 %v7091_v57  ;;  %v7051_v32 = vpop.xlane.xlu0 %7050 }
0x111f   :  { %v10109_v30 = vsub.f32 %v7036_v29, %v7070_v63  ;;  %v7069_v9 = vmul.f32 0.03125, %v7051_v32 }
0x1120   :  { %v7060_v21 = vpop.xlane.xlu1 %7059 }
0x1121   :  { %v10111_v39 = vsub.f32 %v7035_v53, %v7069_v9  ;;  %v7072_v33 = vmul.f32 0.03125, %v7060_v21  ;;  %v7086_v43 = vmul.f32 %v10109_v30, %v10109_v30 }
0x1122   :  { %v7057_v25 = vpop.xlane.xlu0 %7056 }
0x1123   :  { %v10115_v16 = vsub.f32 %v7038_v6, %v7072_v33  ;;  %v7071_v44 = vmul.f32 0.03125, %v7057_v25  ;;  %v7100_v47 = vsel %vm325_vm0, %v7086_v43, 0.0  ;;  %v7085_v40 = vmul.f32 %v10111_v39, %v10111_v39 }
0x1124   :  { %7101 = vadd.xlane.f32.xlu1 %v7100_v47  ;;  %v7066_v27 = vpop.xlane.xlu1 %7065 }
0x1125   :  { %v10120_v35 = vsub.f32 %v7037_v41, %v7071_v44  ;;  %v7074_v52 = vmul.f32 0.03125, %v7066_v27  ;;  %v7097_v28 = vsel %vm325_vm0, %v7085_v40, 0.0  ;;  %v7088_v5 = vmul.f32 %v10115_v16, %v10115_v16 }
0x1126   :  { %7098 = vadd.xlane.f32.xlu0 %v7097_v28  ;;  %v7063_v49 = vpop.xlane.xlu0 %7062 }
0x1127   :  { %v10125_v55 = vsub.f32 %v7040_v34, %v7074_v52  ;;  %v7073_v1 = vmul.f32 0.03125, %v7063_v49  ;;  %v7106_v56 = vsel %vm325_vm0, %v7088_v5, 0.0  ;;  %v7087_v13 = vmul.f32 %v10120_v35, %v10120_v35 }
0x1128   :  { %7107 = vadd.xlane.f32.xlu1 %v7106_v56 }
0x1129   :  { %v10130_v19 = vsub.f32 %v7039_v10, %v7073_v1  ;;  %v7103_v26 = vsel %vm325_vm0, %v7087_v13, 0.0  ;;  %v7090_v7 = vmul.f32 %v10125_v55, %v10125_v55  ;;  %v7361_v10 = vld [vmem:[%s10189_s22] ss:$0 sm:$0xff]  ;;  %s8636_s22 = smov [#allocation26]  }
0x112a   :  { %7104 = vadd.xlane.f32.xlu0 %v7103_v26  ;;  %s7188_s23 = sshll.u32 %s8636_s22, 4  ;;  %s7189_s23 = int_to_ptr.vmem [resolvable:$true] %s7188_s23 }
0x112b   :  { %v7112_v14 = vsel %vm325_vm0, %v7090_v7, 0.0  ;;  %v7089_v62 = vmul.f32 %v10130_v19, %v10130_v19  ;;  %s8575_s25 = scalar_lea.vmem %s7189_s23, 1024  ;;  %p8580_p1 = scmp.lt.s32.totalorder %s7189_s23, %s7189_s23 }
0x112c   :  { %7113 = vadd.xlane.f32.xlu1 %v7112_v14  ;;  %p8576_p0 = scmp.ne.s32.totalorder %s7189_s23, %s8575_s25  ;;  %p8581_p2 = scmp.lt.s32.totalorder %s8575_s25, %s8575_s25 }
0x112d   :  { %v7109_v15 = vsel %vm325_vm0, %v7089_v62, 0.0 }
0x112e   :  { %7110 = vadd.xlane.f32.xlu0 %v7109_v15  ;;  %p8582_p3 = por %p8581_p2, %p8580_p1 }
0x1130   :  { %p8583_p4 = pnand %p8582_p3, %p8576_p0 }
0x11a5   :  { %v7096_v20 = vpop.xlane.xlu1 %7095 }
0x11a6   :  { %v7116_v45 = vmul.f32 0.03125, %v7096_v20 }
0x11a7   :  { %v7093_v11 = vpop.xlane.xlu0 %7092 }
0x11a8   :  { %v7124_v29 = vadd.f32 1e-05, %v7116_v45  ;;  %v7115_v42 = vmul.f32 0.03125, %v7093_v11 }
0x11aa   :  { %8271 = vrsqrt.f32 %v7124_v29  ;;  %v7123_v36 = vadd.f32 1e-05, %v7115_v42 }
0x11ac   :  { %8273 = vrsqrt.f32 %v7123_v36 }
0x11ad   :  { %v7102_v53 = vpop.xlane.xlu1 %7101 }
0x11ae   :  { %v7118_v48 = vmul.f32 0.03125, %v7102_v53 }
0x11af   :  { %v7099_v24 = vpop.xlane.xlu0 %7098 }
0x11b0   :  { %v7126_v22 = vadd.f32 1e-05, %v7118_v48  ;;  %v7117_v6 = vmul.f32 0.03125, %v7099_v24 }
0x11b1   :  { %v7108_v2 = vpop.xlane.xlu1 %7107 }
0x11b2   :  { %8275 = vrsqrt.f32 %v7126_v22  ;;  %v7125_v58 = vadd.f32 1e-05, %v7117_v6  ;;  %v7120_v23 = vmul.f32 0.03125, %v7108_v2 }
0x11b3   :  { %v7105_v41 = vpop.xlane.xlu0 %7104 }
0x11b4   :  { %8277 = vrsqrt.f32 %v7125_v58  ;;  %v7128_v38 = vadd.f32 1e-05, %v7120_v23  ;;  %v7119_v4 = vmul.f32 0.03125, %v7105_v41 }
0x11b5   :  { %v7114_v12 = vpop.xlane.xlu1 %7113 }
0x11b6   :  { %8279 = vrsqrt.f32 %v7128_v38  ;;  %v7127_v34 = vadd.f32 1e-05, %v7119_v4  ;;  %v7122_v3 = vmul.f32 0.03125, %v7114_v12 }
0x11b7   :  { %v8272_v51 = vpop.eup %8271  ;;  %v7111_v37 = vpop.xlane.xlu0 %7110 }
0x11b8   :  { %v7140_v54 = vmul.f32 %v8272_v51, %v10099_v60  ;;  %8281 = vrsqrt.f32 %v7127_v34  ;;  %v7130_v61 = vadd.f32 1e-05, %v7122_v3  ;;  %v7121_v18 = vmul.f32 0.03125, %v7111_v37 }
0x11b9   :  { %v8274_v46 = vpop.eup %8273 }
0x11ba   :  { %v7154_v17 = vmul.f32 %v7361_v10, %v7140_v54  ;;  %v7139_v8 = vmul.f32 %v8274_v46, %v10101_v0  ;;  %8283 = vrsqrt.f32 %v7130_v61  ;;  %v7129_v59 = vadd.f32 1e-05, %v7121_v18 }
0x11bc   :  { %v7168_v31 = vadd.f32 %v7362_v50, %v7154_v17  ;;  %v7153_v63 = vmul.f32 %v7361_v10, %v7139_v8  ;;  %8285 = vrsqrt.f32 %v7129_v59 }
0x11be   :  { %7176 = vst.msk [vmem:[#allocation26 + $0x8] sm:$0xff] %vm325_vm0, %v7168_v31  ;;  %v7167_v57 = vadd.f32 %v7362_v50, %v7153_v63 }
0x11bf   :  { %v8276_v60 = vpop.eup %8275 }
0x11c0   :  { %7175 = vst.msk [vmem:[#allocation26] sm:$0xff] %vm325_vm0, %v7167_v57  ;;  %v7142_v32 = vmul.f32 %v8276_v60, %v10109_v30 }
0x11c1   :  { %v8278_v9 = vpop.eup %8277 }
0x11c2   :  { %v7156_v21 = vmul.f32 %v7361_v10, %v7142_v32  ;;  %v7141_v33 = vmul.f32 %v8278_v9, %v10111_v39 }
0x11c3   :  { %v8280_v43 = vpop.eup %8279 }
0x11c4   :  { %v7170_v25 = vadd.f32 %v7362_v50, %v7156_v21  ;;  %v7155_v0 = vmul.f32 %v7361_v10, %v7141_v33  ;;  %v7144_v44 = vmul.f32 %v8280_v43, %v10115_v16 }
0x11c5   :  { %v8282_v47 = vpop.eup %8281 }
0x11c6   :  { %7178 = vst.msk [vmem:[#allocation26 + $0x18] sm:$0xff] %vm325_vm0, %v7170_v25  ;;  %v7169_v40 = vadd.f32 %v7362_v50, %v7155_v0  ;;  %v7158_v27 = vmul.f32 %v7361_v10, %v7144_v44  ;;  %v7143_v52 = vmul.f32 %v8282_v47, %v10120_v35 }
0x11c7   :  { %v8284_v28 = vpop.eup %8283 }
0x11c8   :  { %7177 = vst.msk [vmem:[#allocation26 + $0x10] sm:$0xff] %vm325_vm0, %v7169_v40  ;;  %v7172_v30 = vadd.f32 %v7362_v50, %v7158_v27  ;;  %v7157_v5 = vmul.f32 %v7361_v10, %v7143_v52  ;;  %v7146_v49 = vmul.f32 %v8284_v28, %v10125_v55 }
0x11c9   :  { %v8286_v39 = vpop.eup %8285 }
0x11ca   :  { %7180 = vst.msk [vmem:[#allocation26 + $0x28] sm:$0xff] %vm325_vm0, %v7172_v30  ;;  %v7171_v1 = vadd.f32 %v7362_v50, %v7157_v5  ;;  %v7160_v56 = vmul.f32 %v7361_v10, %v7146_v49  ;;  %v7145_v16 = vmul.f32 %v8286_v39, %v10130_v19 }
0x11cc   :  { %7179 = vst.msk [vmem:[#allocation26 + $0x20] sm:$0xff] %vm325_vm0, %v7171_v1  ;;  %v7174_v13 = vadd.f32 %v7362_v50, %v7160_v56  ;;  %v7159_v35 = vmul.f32 %v7361_v10, %v7145_v16 }
0x11ce   :  { %7182 = vst.msk [vmem:[#allocation26 + $0x38] sm:$0xff] %vm325_vm0, %v7174_v13  ;;  %v7173_v26 = vadd.f32 %v7362_v50, %v7159_v35 }
0x11d0   :  { %7181 = vst.msk [vmem:[#allocation26 + $0x30] sm:$0xff] %vm325_vm0, %v7173_v26 }
0x11d1   :  { %8586 = shalt.err (!%p8583_p4)
}
0x11d2   :  { %7194 = dma.vmem_to_hbm [thread:$0]  %s7189_s23, 1024, %s10191_s24, [#allocation5], %s8615_s2, %s8615_s2, %s8616_s29  }
0x11d3   :  { %8611 = dma.done.wait [#allocation5], 1024  }
0x11d4   :  { %8612 = vsyncadd [#allocation5], 4294966272 }
0x11d5   :  { %7198 = vsyncpa [#allocation4], 1 }
0x11d6   :  { %7199 = vsyncpa [#allocation7], 1 }
0x11d7   :  { %7200 = vsyncpa [#allocation10], 1 }
0x11d8   :  { %7201 = vsyncpa [#allocation13], 1 }
0x11d9   :  { %7202 = vsyncpa [#allocation16], 1 }
0x11da   :  { %7203 = vsyncpa [#allocation19], 1 }
0x11db   :  { %7204 = vsyncpa [#allocation22], 1 }
0x11dc   :  { %7205 = vsyncpa [#allocation25], 1 }
0x11dd   :  { %7206 = vsyncpa [#allocation5], 1 }

</bundles_post_ra>
